<compile_context>
chip_gen: v5e
topology: v5e:2x2
jax: 0.10.0
libtpu: 0.0.40
codegen_flags: <defaults>
</compile_context>

<pallas_src>
import math
import functools

import jax
import jax.numpy as jnp
from jax.experimental import pallas as pl
from jax.experimental.pallas import tpu as pltpu


# Lane-aligned padded dims.
IN_PAD = 128    # first-layer input features padded from (in_channels + embedding_dim)
OUT_PAD = 128   # final-layer output features padded from in_channels


def _round_up(x, m):
    return ((x + m - 1) // m) * m


# ----------------------------------------------------------------------------
# Pallas kernel: fused 6-layer MLP (Linear->ReLU x5, final Linear)
# Activations enter as f32, are cast to bf16 for each MXU matmul; accumulation,
# bias-add and ReLU are f32.
# ----------------------------------------------------------------------------
def _mlp_kernel(x_ref,
                w1_ref, b1_ref,
                w2_ref, b2_ref,
                w3_ref, b3_ref,
                w4_ref, b4_ref,
                w5_ref, b5_ref,
                w6_ref, b6_ref,
                o_ref):
    h = x_ref[...].astype(jnp.bfloat16)

    def hidden(h_bf16, w_ref, b_ref):
        y = jnp.dot(h_bf16, w_ref[...], preferred_element_type=jnp.float32)
        y = jnp.maximum(y + b_ref[...], 0.0)          # bias + ReLU in f32
        return y.astype(jnp.bfloat16)                 # back to bf16 for next MXU op

    h = hidden(h, w1_ref, b1_ref)                     # (TB, 1024)
    h = hidden(h, w2_ref, b2_ref)                     # (TB, 512)
    h = hidden(h, w3_ref, b3_ref)                     # (TB, 256)
    h = hidden(h, w4_ref, b4_ref)                     # (TB, 512)
    h = hidden(h, w5_ref, b5_ref)                     # (TB, 1024)

    out = jnp.dot(h, w6_ref[...], preferred_element_type=jnp.float32)
    out = out + b6_ref[...]                           # (TB, OUT_PAD), no ReLU
    o_ref[...] = out.astype(o_ref.dtype)


def mlp_forward(x, params, *, tile_b=None):
    """x: (B, IN_PAD) f32; params: list of (W bf16 [K,N], b f32 [1,N])."""
    B, d_in = x.shape
    out_dim = params[-1][0].shape[1]

    if tile_b is None:
        tile_b = min(256, max(8, _round_up(B, 8)))
    b_pad = _round_up(B, tile_b)
    if b_pad != B:
        x = jnp.pad(x, ((0, b_pad - B), (0, 0)))

    flat_args = [x]
    for w, b in params:
        flat_args.append(w)
        flat_args.append(b)

    # x / out: batch-tiled. Weights & biases: constant index_map -> fetched once,
    # resident in VMEM across the whole grid.
    in_specs = [pl.BlockSpec((tile_b, d_in), lambda i: (i, 0))]
    for w, b in params:
        in_specs.append(pl.BlockSpec(w.shape, lambda i: (0, 0)))
        in_specs.append(pl.BlockSpec(b.shape, lambda i: (0, 0)))
    out_spec = pl.BlockSpec((tile_b, out_dim), lambda i: (i, 0))

    flops = 2 * b_pad * sum(int(w.shape[0]) * int(w.shape[1]) for w, _ in params)
    bytes_accessed = (
        sum(int(w.size) * w.dtype.itemsize + int(b.size) * b.dtype.itemsize
            for w, b in params)
        + b_pad * (d_in + out_dim) * 4
    )

    out = pl.pallas_call(
        _mlp_kernel,
        out_shape=jax.ShapeDtypeStruct((b_pad, out_dim), jnp.float32),
        grid=(b_pad // tile_b,),
        in_specs=in_specs,
        out_specs=out_spec,
        compiler_params=pltpu.CompilerParams(
            dimension_semantics=("parallel",),
            vmem_limit_bytes=32 * 1024 * 1024,
        ),
        cost_estimate=pl.CostEstimate(
            flops=flops, transcendentals=0, bytes_accessed=bytes_accessed),
    )(*flat_args)
    return out[:B]


# ----------------------------------------------------------------------------
# Glue: sinusoidal timestep embedding (matches the PyTorch reference)
# ----------------------------------------------------------------------------
def timestep_embedding(timesteps, embedding_dim):
    assert timesteps.ndim == 1
    half_dim = embedding_dim // 2
    emb = jnp.arange(half_dim, dtype=jnp.float32)
    emb = jnp.exp(emb * (-math.log(10000.0) / (half_dim - 1)))
    emb = timesteps.reshape(-1, 1).astype(jnp.float32) * emb.reshape(1, -1)
    emb = jnp.concatenate([jnp.sin(emb), jnp.cos(emb)], axis=1)
    if embedding_dim % 2 == 1:
        emb = jnp.pad(emb, ((0, 0), (0, 1)))
    assert emb.shape == (timesteps.shape[0], embedding_dim)
    return emb


# ----------------------------------------------------------------------------
# Parameter init (PyTorch-Linear-style uniform(-1/sqrt(fan_in))), stored with
# lane-aligned padding:  W1 rows padded 36->IN_PAD, W6/b6 cols padded 4->OUT_PAD.
# Weights are bf16, biases f32.
# ----------------------------------------------------------------------------
def init_params(key, in_channels, embedding_dim):
    dims = [in_channels + embedding_dim, 1024, 512, 256, 512, 1024, in_channels]
    params = []
    for i in range(len(dims) - 1):
        fan_in, fan_out = dims[i], dims[i + 1]
        key, kw, kb = jax.random.split(key, 3)
        bound = 1.0 / math.sqrt(fan_in)
        w = jax.random.uniform(kw, (fan_in, fan_out), jnp.float32, -bound, bound)
        b = jax.random.uniform(kb, (1, fan_out), jnp.float32, -bound, bound)
        if i == 0:                                   # pad K dim 36 -> IN_PAD with zeros
            w = jnp.pad(w, ((0, IN_PAD - fan_in), (0, 0)))
        if i == len(dims) - 2:                       # pad N dim 4 -> OUT_PAD with zeros
            w = jnp.pad(w, ((0, 0), (0, OUT_PAD - fan_out)))
            b = jnp.pad(b, ((0, 0), (0, OUT_PAD - fan_out)))
        params.append((w.astype(jnp.bfloat16), b))
    return params


# ----------------------------------------------------------------------------
# SimpleNet forward
# ----------------------------------------------------------------------------
def simplenet_forward(params, inputs, time_step, embedding_dim, out_channels):
    # inputs: (B, in_channels), time_step: (1,)
    B = inputs.shape[0]
    emb = timestep_embedding(time_step, embedding_dim)             # (1, E)
    emb = jnp.broadcast_to(emb, (B, embedding_dim))                # no-copy broadcast
    x = jnp.concatenate([inputs, emb], axis=1)                     # (B, C+E)
    x = jnp.pad(x, ((0, 0), (0, IN_PAD - x.shape[1])))             # lane-align K
    out = mlp_forward(x, params)                                   # (B, OUT_PAD)
    return out[:, :out_channels]


# Pure-JAX reference (same bf16-weight / f32-accumulate numerics) for a check.
def simplenet_reference(params, inputs, time_step, embedding_dim, out_channels):
    B = inputs.shape[0]
    emb = timestep_embedding(time_step, embedding_dim)
    emb = jnp.broadcast_to(emb, (B, embedding_dim))
    h = jnp.concatenate([inputs, emb], axis=1)
    h = jnp.pad(h, ((0, 0), (0, IN_PAD - h.shape[1])))
    h = h.astype(jnp.bfloat16)
    for i, (w, b) in enumerate(params):
        y = jnp.dot(h, w, preferred_element_type=jnp.float32) + b
        if i < len(params) - 1:
            h = jnp.maximum(y, 0.0).astype(jnp.bfloat16)
        else:
            h = y
    return h[:, :out_channels]


if __name__ == "__main__":
    in_channels = 4
    embedding_dim = 32
    batch = 8

    key = jax.random.PRNGKey(0)
    key, k_in = jax.random.split(key)

    params = init_params(key, in_channels, embedding_dim)
    inputs = jax.random.normal(k_in, (batch, in_channels), jnp.float32)
    time_step = jnp.array([7.0], dtype=jnp.float32)                # shape (1,)

    fwd = jax.jit(functools.partial(simplenet_forward,
                                    embedding_dim=embedding_dim,
                                    out_channels=in_channels))
    out = jax.block_until_ready(fwd(params, inputs, time_step))

    ref = simplenet_reference(params, inputs, time_step, embedding_dim, in_channels)
    assert out.shape == (batch, in_channels), out.shape
    assert jnp.allclose(out, ref, atol=1e-3, rtol=1e-3), "mismatch vs reference"

    print("KERNEL_OK")
</pallas_src>

<mosaic_0001>
module attributes {stable_mosaic.version = 11 : i64} {
  func.func @_mlp_kernel(%arg0: i32, %arg1: memref<8x128xf32, #tpu.memory_space<vmem>>, %arg2: memref<128x1024xbf16, #tpu.memory_space<vmem>>, %arg3: memref<1x1024xf32, #tpu.memory_space<vmem>>, %arg4: memref<1024x512xbf16, #tpu.memory_space<vmem>>, %arg5: memref<1x512xf32, #tpu.memory_space<vmem>>, %arg6: memref<512x256xbf16, #tpu.memory_space<vmem>>, %arg7: memref<1x256xf32, #tpu.memory_space<vmem>>, %arg8: memref<256x512xbf16, #tpu.memory_space<vmem>>, %arg9: memref<1x512xf32, #tpu.memory_space<vmem>>, %arg10: memref<512x1024xbf16, #tpu.memory_space<vmem>>, %arg11: memref<1x1024xf32, #tpu.memory_space<vmem>>, %arg12: memref<1024x128xbf16, #tpu.memory_space<vmem>>, %arg13: memref<1x128xf32, #tpu.memory_space<vmem>>, %arg14: memref<8x128xf32, #tpu.memory_space<vmem>>) attributes {dimension_semantics = [#tpu.dimension_semantics<parallel>], iteration_bounds = array<i64: 1>, scalar_prefetch = 0 : i64, scratch_operands = 0 : i64, tpu.core_type = #tpu.core_type<tc>, window_params = [{transform_indices = @transform_0, window_bounds = array<i64: 8, 128>}, {pipeline_mode = #tpu.pipeline_mode<synchronous>, transform_indices = @transform_1, window_bounds = array<i64: 128, 1024>}, {pipeline_mode = #tpu.pipeline_mode<synchronous>, transform_indices = @transform_2, window_bounds = array<i64: 1, 1024>}, {pipeline_mode = #tpu.pipeline_mode<synchronous>, transform_indices = @transform_3, window_bounds = array<i64: 1024, 512>}, {pipeline_mode = #tpu.pipeline_mode<synchronous>, transform_indices = @transform_4, window_bounds = array<i64: 1, 512>}, {pipeline_mode = #tpu.pipeline_mode<synchronous>, transform_indices = @transform_5, window_bounds = array<i64: 512, 256>}, {pipeline_mode = #tpu.pipeline_mode<synchronous>, transform_indices = @transform_6, window_bounds = array<i64: 1, 256>}, {pipeline_mode = #tpu.pipeline_mode<synchronous>, transform_indices = @transform_7, window_bounds = array<i64: 256, 512>}, {pipeline_mode = #tpu.pipeline_mode<synchronous>, transform_indices = @transform_8, window_bounds = array<i64: 1, 512>}, {pipeline_mode = #tpu.pipeline_mode<synchronous>, transform_indices = @transform_9, window_bounds = array<i64: 512, 1024>}, {pipeline_mode = #tpu.pipeline_mode<synchronous>, transform_indices = @transform_10, window_bounds = array<i64: 1, 1024>}, {pipeline_mode = #tpu.pipeline_mode<synchronous>, transform_indices = @transform_11, window_bounds = array<i64: 1024, 128>}, {pipeline_mode = #tpu.pipeline_mode<synchronous>, transform_indices = @transform_12, window_bounds = array<i64: 1, 128>}, {transform_indices = @transform_13, window_bounds = array<i64: 8, 128>}]} {
    %c0 = arith.constant 0 : index
    %c0_0 = arith.constant 0 : index
    %0 = vector.load %arg1[%c0, %c0_0] : memref<8x128xf32, #tpu.memory_space<vmem>>, vector<8x128xf32>
    %1 = arith.truncf %0 : vector<8x128xf32> to vector<8x128xbf16>
    %c0_1 = arith.constant 0 : index
    %c0_2 = arith.constant 0 : index
    %2 = vector.load %arg2[%c0_1, %c0_2] : memref<128x1024xbf16, #tpu.memory_space<vmem>>, vector<128x1024xbf16>
    %cst = arith.constant dense<0.000000e+00> : vector<8x1024xf32>
    %3 = tpu.matmul %1, %2, %cst {dimension_numbers = #tpu.dot_dimension_numbers<[1], [0], [0], [1], [0, 0, 1, 1], [], []>} : vector<8x128xbf16>, vector<128x1024xbf16>, vector<8x1024xf32> -> vector<8x1024xf32>
    %c0_3 = arith.constant 0 : index
    %c0_4 = arith.constant 0 : index
    %4 = vector.load %arg3[%c0_3, %c0_4] : memref<1x1024xf32, #tpu.memory_space<vmem>>, vector<1x1024xf32>
    %5 = vector.broadcast %4 : vector<1x1024xf32> to vector<8x1024xf32>
    %6 = arith.addf %3, %5 : vector<8x1024xf32>
    %cst_5 = arith.constant 0.000000e+00 : f32
    %7 = vector.broadcast %cst_5 : f32 to vector<8x1024xf32>
    %8 = arith.maximumf %6, %7 : vector<8x1024xf32>
    %9 = arith.truncf %8 : vector<8x1024xf32> to vector<8x1024xbf16>
    %c0_6 = arith.constant 0 : index
    %c0_7 = arith.constant 0 : index
    %10 = vector.load %arg4[%c0_6, %c0_7] : memref<1024x512xbf16, #tpu.memory_space<vmem>>, vector<1024x512xbf16>
    %cst_8 = arith.constant dense<0.000000e+00> : vector<8x512xf32>
    %11 = tpu.matmul %9, %10, %cst_8 {dimension_numbers = #tpu.dot_dimension_numbers<[1], [0], [0], [1], [0, 0, 1, 1], [], []>} : vector<8x1024xbf16>, vector<1024x512xbf16>, vector<8x512xf32> -> vector<8x512xf32>
    %c0_9 = arith.constant 0 : index
    %c0_10 = arith.constant 0 : index
    %12 = vector.load %arg5[%c0_9, %c0_10] : memref<1x512xf32, #tpu.memory_space<vmem>>, vector<1x512xf32>
    %13 = vector.broadcast %12 : vector<1x512xf32> to vector<8x512xf32>
    %14 = arith.addf %11, %13 : vector<8x512xf32>
    %cst_11 = arith.constant 0.000000e+00 : f32
    %15 = vector.broadcast %cst_11 : f32 to vector<8x512xf32>
    %16 = arith.maximumf %14, %15 : vector<8x512xf32>
    %17 = arith.truncf %16 : vector<8x512xf32> to vector<8x512xbf16>
    %c0_12 = arith.constant 0 : index
    %c0_13 = arith.constant 0 : index
    %18 = vector.load %arg6[%c0_12, %c0_13] : memref<512x256xbf16, #tpu.memory_space<vmem>>, vector<512x256xbf16>
    %cst_14 = arith.constant dense<0.000000e+00> : vector<8x256xf32>
    %19 = tpu.matmul %17, %18, %cst_14 {dimension_numbers = #tpu.dot_dimension_numbers<[1], [0], [0], [1], [0, 0, 1, 1], [], []>} : vector<8x512xbf16>, vector<512x256xbf16>, vector<8x256xf32> -> vector<8x256xf32>
    %c0_15 = arith.constant 0 : index
    %c0_16 = arith.constant 0 : index
    %20 = vector.load %arg7[%c0_15, %c0_16] : memref<1x256xf32, #tpu.memory_space<vmem>>, vector<1x256xf32>
    %21 = vector.broadcast %20 : vector<1x256xf32> to vector<8x256xf32>
    %22 = arith.addf %19, %21 : vector<8x256xf32>
    %cst_17 = arith.constant 0.000000e+00 : f32
    %23 = vector.broadcast %cst_17 : f32 to vector<8x256xf32>
    %24 = arith.maximumf %22, %23 : vector<8x256xf32>
    %25 = arith.truncf %24 : vector<8x256xf32> to vector<8x256xbf16>
    %c0_18 = arith.constant 0 : index
    %c0_19 = arith.constant 0 : index
    %26 = vector.load %arg8[%c0_18, %c0_19] : memref<256x512xbf16, #tpu.memory_space<vmem>>, vector<256x512xbf16>
    %cst_20 = arith.constant dense<0.000000e+00> : vector<8x512xf32>
    %27 = tpu.matmul %25, %26, %cst_20 {dimension_numbers = #tpu.dot_dimension_numbers<[1], [0], [0], [1], [0, 0, 1, 1], [], []>} : vector<8x256xbf16>, vector<256x512xbf16>, vector<8x512xf32> -> vector<8x512xf32>
    %c0_21 = arith.constant 0 : index
    %c0_22 = arith.constant 0 : index
    %28 = vector.load %arg9[%c0_21, %c0_22] : memref<1x512xf32, #tpu.memory_space<vmem>>, vector<1x512xf32>
    %29 = vector.broadcast %28 : vector<1x512xf32> to vector<8x512xf32>
    %30 = arith.addf %27, %29 : vector<8x512xf32>
    %cst_23 = arith.constant 0.000000e+00 : f32
    %31 = vector.broadcast %cst_23 : f32 to vector<8x512xf32>
    %32 = arith.maximumf %30, %31 : vector<8x512xf32>
    %33 = arith.truncf %32 : vector<8x512xf32> to vector<8x512xbf16>
    %c0_24 = arith.constant 0 : index
    %c0_25 = arith.constant 0 : index
    %34 = vector.load %arg10[%c0_24, %c0_25] : memref<512x1024xbf16, #tpu.memory_space<vmem>>, vector<512x1024xbf16>
    %cst_26 = arith.constant dense<0.000000e+00> : vector<8x1024xf32>
    %35 = tpu.matmul %33, %34, %cst_26 {dimension_numbers = #tpu.dot_dimension_numbers<[1], [0], [0], [1], [0, 0, 1, 1], [], []>} : vector<8x512xbf16>, vector<512x1024xbf16>, vector<8x1024xf32> -> vector<8x1024xf32>
    %c0_27 = arith.constant 0 : index
    %c0_28 = arith.constant 0 : index
    %36 = vector.load %arg11[%c0_27, %c0_28] : memref<1x1024xf32, #tpu.memory_space<vmem>>, vector<1x1024xf32>
    %37 = vector.broadcast %36 : vector<1x1024xf32> to vector<8x1024xf32>
    %38 = arith.addf %35, %37 : vector<8x1024xf32>
    %cst_29 = arith.constant 0.000000e+00 : f32
    %39 = vector.broadcast %cst_29 : f32 to vector<8x1024xf32>
    %40 = arith.maximumf %38, %39 : vector<8x1024xf32>
    %41 = arith.truncf %40 : vector<8x1024xf32> to vector<8x1024xbf16>
    %c0_30 = arith.constant 0 : index
    %c0_31 = arith.constant 0 : index
    %42 = vector.load %arg12[%c0_30, %c0_31] : memref<1024x128xbf16, #tpu.memory_space<vmem>>, vector<1024x128xbf16>
    %cst_32 = arith.constant dense<0.000000e+00> : vector<8x128xf32>
    %43 = tpu.matmul %41, %42, %cst_32 {dimension_numbers = #tpu.dot_dimension_numbers<[1], [0], [0], [1], [0, 0, 1, 1], [], []>} : vector<8x1024xbf16>, vector<1024x128xbf16>, vector<8x128xf32> -> vector<8x128xf32>
    %c0_33 = arith.constant 0 : index
    %c0_34 = arith.constant 0 : index
    %44 = vector.load %arg13[%c0_33, %c0_34] : memref<1x128xf32, #tpu.memory_space<vmem>>, vector<1x128xf32>
    %45 = vector.broadcast %44 : vector<1x128xf32> to vector<8x128xf32>
    %46 = arith.addf %43, %45 : vector<8x128xf32>
    %c0_35 = arith.constant 0 : index
    %c0_36 = arith.constant 0 : index
    %47 = vector.load %arg14[%c0_35, %c0_36] : memref<8x128xf32, #tpu.memory_space<vmem>>, vector<8x128xf32>
    tpu.vector_store %arg14[%c0_35, %c0_36], %46 {strides = array<i32>} : memref<8x128xf32, #tpu.memory_space<vmem>>, vector<8x128xf32>,
    return
  }
  func.func @transform_0(%arg0: i32) -> (i32, i32) {
    %c0_i32 = arith.constant 0 : i32
    %c0_i32_0 = arith.constant 0 : i32
    return %arg0, %c0_i32 : i32, i32
  }
  func.func @transform_1(%arg0: i32) -> (i32, i32) {
    %c0_i32 = arith.constant 0 : i32
    %c0_i32_0 = arith.constant 0 : i32
    %c0_i32_1 = arith.constant 0 : i32
    return %c0_i32, %c0_i32_0 : i32, i32
  }
  func.func @transform_2(%arg0: i32) -> (i32, i32) {
    %c0_i32 = arith.constant 0 : i32
    %c0_i32_0 = arith.constant 0 : i32
    %c0_i32_1 = arith.constant 0 : i32
    return %c0_i32, %c0_i32_0 : i32, i32
  }
  func.func @transform_3(%arg0: i32) -> (i32, i32) {
    %c0_i32 = arith.constant 0 : i32
    %c0_i32_0 = arith.constant 0 : i32
    %c0_i32_1 = arith.constant 0 : i32
    return %c0_i32, %c0_i32_0 : i32, i32
  }
  func.func @transform_4(%arg0: i32) -> (i32, i32) {
    %c0_i32 = arith.constant 0 : i32
    %c0_i32_0 = arith.constant 0 : i32
    %c0_i32_1 = arith.constant 0 : i32
    return %c0_i32, %c0_i32_0 : i32, i32
  }
  func.func @transform_5(%arg0: i32) -> (i32, i32) {
    %c0_i32 = arith.constant 0 : i32
    %c0_i32_0 = arith.constant 0 : i32
    %c0_i32_1 = arith.constant 0 : i32
    return %c0_i32, %c0_i32_0 : i32, i32
  }
  func.func @transform_6(%arg0: i32) -> (i32, i32) {
    %c0_i32 = arith.constant 0 : i32
    %c0_i32_0 = arith.constant 0 : i32
    %c0_i32_1 = arith.constant 0 : i32
    return %c0_i32, %c0_i32_0 : i32, i32
  }
  func.func @transform_7(%arg0: i32) -> (i32, i32) {
    %c0_i32 = arith.constant 0 : i32
    %c0_i32_0 = arith.constant 0 : i32
    %c0_i32_1 = arith.constant 0 : i32
    return %c0_i32, %c0_i32_0 : i32, i32
  }
  func.func @transform_8(%arg0: i32) -> (i32, i32) {
    %c0_i32 = arith.constant 0 : i32
    %c0_i32_0 = arith.constant 0 : i32
    %c0_i32_1 = arith.constant 0 : i32
    return %c0_i32, %c0_i32_0 : i32, i32
  }
  func.func @transform_9(%arg0: i32) -> (i32, i32) {
    %c0_i32 = arith.constant 0 : i32
    %c0_i32_0 = arith.constant 0 : i32
    %c0_i32_1 = arith.constant 0 : i32
    return %c0_i32, %c0_i32_0 : i32, i32
  }
  func.func @transform_10(%arg0: i32) -> (i32, i32) {
    %c0_i32 = arith.constant 0 : i32
    %c0_i32_0 = arith.constant 0 : i32
    %c0_i32_1 = arith.constant 0 : i32
    return %c0_i32, %c0_i32_0 : i32, i32
  }
  func.func @transform_11(%arg0: i32) -> (i32, i32) {
    %c0_i32 = arith.constant 0 : i32
    %c0_i32_0 = arith.constant 0 : i32
    %c0_i32_1 = arith.constant 0 : i32
    return %c0_i32, %c0_i32_0 : i32, i32
  }
  func.func @transform_12(%arg0: i32) -> (i32, i32) {
    %c0_i32 = arith.constant 0 : i32
    %c0_i32_0 = arith.constant 0 : i32
    %c0_i32_1 = arith.constant 0 : i32
    return %c0_i32, %c0_i32_0 : i32, i32
  }
  func.func @transform_13(%arg0: i32) -> (i32, i32) {
    %c0_i32 = arith.constant 0 : i32
    %c0_i32_0 = arith.constant 0 : i32
    return %arg0, %c0_i32 : i32, i32
  }
}

</mosaic_0001>

<bundles_post_ra>
// kernel: simplenet_forward.1
= control target key start
LH: loop header
LB: loop body
LE: loop exit
PB: predicated region body
PF: predicated region fallthrough
CT: control target
= control target key end

     0   :  { %18 = vsyncpa [#allocation3], 0  ;;  %s10612_s0 = inlined_call_operand.vmem [shape: f32[8,128], index: 0, kind: input, shape index: {}]   ;;  %s10613_s1 = inlined_call_operand.hbm [shape: bf16[128,1024], index: 1, kind: input, shape index: {}]   ;;  %s10614_s2 = inlined_call_operand.vmem [shape: f32[1,1024], index: 2, kind: input, shape index: {}]   ;;  %s10615_s3 = inlined_call_operand.hbm [shape: bf16[1024,512], index: 3, kind: input, shape index: {}]   ;;  %s10616_s4 = inlined_call_operand.vmem [shape: f32[1,512], index: 4, kind: input, shape index: {}]   ;;  %s10617_s5 = inlined_call_operand.hbm [shape: bf16[512,256], index: 5, kind: input, shape index: {}]   ;;  %s10618_s6 = inlined_call_operand.vmem [shape: f32[1,256], index: 6, kind: input, shape index: {}]   ;;  %s10619_s7 = inlined_call_operand.hbm [shape: bf16[256,512], index: 7, kind: input, shape index: {}]   ;;  %s10620_s8 = inlined_call_operand.vmem [shape: f32[1,512], index: 8, kind: input, shape index: {}]   ;;  %s10621_s9 = inlined_call_operand.hbm [shape: bf16[512,1024], index: 9, kind: input, shape index: {}]   ;;  %s10622_s10 = inlined_call_operand.vmem [shape: f32[1,1024], index: 10, kind: input, shape index: {}]   ;;  %s10623_s11 = inlined_call_operand.hbm [shape: bf16[1024,128], index: 11, kind: input, shape index: {}]   ;;  %s10624_s12 = inlined_call_operand.vmem [shape: f32[1,128], index: 12, kind: input, shape index: {}]   ;;  %s10625_s13 = inlined_call_operand.vmem [shape: f32[8,128], index: 13, kind: output, shape index: {}]  }
   0x1   :  { %19 = vsyncpa [#allocation5], 0 }
   0x2   :  { %20 = vsyncpa [#allocation8], 0  ;;  %s43_s27 = sshll.u32 %s10615_s3, 4  ;;  %s44_s27 = int_to_ptr.hbm [resolvable:$true] %s43_s27 }
   0x3   :  { %21 = vsyncpa [#allocation11], 0  ;;  %s10259_s28 = smov [#allocation4]   ;;  %s73_s15 = sshll.u32 %s10619_s7, 4  ;;  %s74_s15 = int_to_ptr.hbm [resolvable:$true] %s73_s15 }
   0x4   :  { %s45_s29 = sshll.u32 %s10259_s28, 4  ;;  %s10260_s16 = smov 256   ;;  %s46_s29 = int_to_ptr.vmem [resolvable:$true] %s45_s29 }
   0x5   :  { %s10261_s17 = smov 16   ;;  %s10262_s18 = smov [#allocation7]  }
   0x6   :  { %51 = dma.hbm_to_vmem [thread:$0]  %s44_s27, 32768, %s46_s29, [#allocation5], %s10260_s16, %s10260_s16, %s10261_s17  }
   0x7   :  { %s75_s19 = sshll.u32 %s10262_s18, 4  ;;  %s28_s22 = sshll.u32 %s10613_s1, 4  ;;  %s76_s19 = int_to_ptr.vmem [resolvable:$true] %s75_s19  ;;  %s29_s22 = int_to_ptr.hbm [resolvable:$true] %s28_s22 }
   0x8   :  { %81 = dma.hbm_to_vmem [thread:$0]  %s74_s15, 8192, %s76_s19, [#allocation8], %s10260_s16, %s10260_s16, %s10261_s17  }
   0x9   :  { %s10263_s3 = smov [#allocation2]   ;;  %s58_s7 = sshll.u32 %s10617_s5, 4  ;;  %s59_s7 = int_to_ptr.hbm [resolvable:$true] %s58_s7 }
   0xa   :  { %s30_s23 = sshll.u32 %s10263_s3, 4  ;;  %s10264_s26 = smov 512   ;;  %s31_s23 = int_to_ptr.vmem [resolvable:$true] %s30_s23 }
   0xb   :  { %s10265_s28 = smov 32   ;;  %s10266_s27 = smov [#allocation6]  }
   0xc   :  { %36 = dma.hbm_to_vmem [thread:$0]  %s29_s22, 8192, %s31_s23, [#allocation3], %s10264_s26, %s10264_s26, %s10265_s28  }
   0xd   :  { %s60_s29 = sshll.u32 %s10266_s27, 4  ;;  %s10267_s30 = smov 128   ;;  %s61_s29 = int_to_ptr.vmem [resolvable:$true] %s60_s29 }
   0xe   :  { %s10268_s14 = smov 8   ;;  %s88_s15 = sshll.u32 %s10621_s9, 4  ;;  %s89_s15 = int_to_ptr.hbm [resolvable:$true] %s88_s15 }
   0xf   :  { %66 = dma.hbm_to_vmem [thread:$0]  %s59_s7, 8192, %s61_s29, [#allocation5], %s10267_s30, %s10267_s30, %s10268_s14  }
  0x10   :  { %s10269_s16 = smov [#allocation9]   ;;  %s103_s20 = sshll.u32 %s10623_s11, 4  ;;  %s104_s20 = int_to_ptr.hbm [resolvable:$true] %s103_s20 }
  0x11   :  { %s90_s17 = sshll.u32 %s10269_s16, 4  ;;  %s10270_s21 = smov [#allocation10]   ;;  %s91_s17 = int_to_ptr.vmem [resolvable:$true] %s90_s17 }
  0x12   :  { %96 = dma.hbm_to_vmem [thread:$0]  %s89_s15, 32768, %s91_s17, [#allocation8], %s10264_s26, %s10264_s26, %s10265_s28  }
  0x13   :  { %s105_s22 = sshll.u32 %s10270_s21, 4  ;;  %s10271_s3 = smov 64   ;;  %s106_s22 = int_to_ptr.vmem [resolvable:$true] %s105_s22 }
  0x14   :  { %s10272_s23 = smov 4  }
  0x15   :  { %111 = dma.hbm_to_vmem [thread:$0]  %s104_s20, 8192, %s106_s22, [#allocation11], %s10271_s3, %s10271_s3, %s10272_s23  }
  0x16   :  { %10251 = dma.done.wait [#allocation3], 8192  }
  0x17   :  { %10252 = vsyncadd [#allocation3], 4294959104 }
  0x18   :  { %10253 = dma.done.wait [#allocation5], 40960  }
  0x19   :  { %10254 = vsyncadd [#allocation5], 4294926336 }
  0x1a   :  { %10255 = dma.done.wait [#allocation8], 40960  }
  0x1b   :  { %10256 = vsyncadd [#allocation8], 4294926336 }
  0x1c   :  { %10257 = dma.done.wait [#allocation11], 8192  }
  0x1d   :  { %10258 = vsyncadd [#allocation11], 4294959104  ;;  %v6477_v0 = vld [vmem:[#allocation2 + $0x1c0] sm:$0xf]  ;;  %v9379_v2 = vld [vmem:[#allocation2 + $0x1c4] sm:$0xf] }
  0x1e   :  { %v9383_v1 = vld [vmem:[#allocation2 + $0x1dc] sm:$0xf0]  ;;  %v6479_v4 = vld [vmem:[#allocation2 + $0x1e0] sm:$0xf0]  ;;  %v6485_v5 = vld [vmem:[#allocation2 + $0x1c8] sm:$0xf] }
  0x1f   :  { %v6478_v3 = vor.u32 %v9383_v1, %v6477_v0  ;;  %v9384_v6 = vld [vmem:[#allocation2 + $0x1e4] sm:$0xf0]  ;;  %v6482_v7 = vor.u32 %v9379_v2, %v6479_v4  ;;  %v9380_v9 = vld [vmem:[#allocation2 + $0x1cc] sm:$0xf]  ;;  %v6445_v11 = vld [vmem:[#allocation2 + $0x180] sm:$0xf] }
  0x20   :  { %v6486_v8 = vor.u32 %v9384_v6, %v6485_v5  ;;  %v6487_v10 = vld [vmem:[#allocation2 + $0x1e8] sm:$0xf0]  ;;  %v9375_v13 = vld [vmem:[#allocation2 + $0x19c] sm:$0xf0]  ;;  %v9371_v14 = vld [vmem:[#allocation2 + $0x184] sm:$0xf] }
  0x21   :  { %542 = vmatpush.bf16.msra.mxu0 %v6478_v3  ;;  %v6490_v12 = vor.u32 %v9380_v9, %v6487_v10  ;;  %v6447_v15 = vld [vmem:[#allocation2 + $0x1a0] sm:$0xf0]  ;;  %555 = vmatpush.bf16.msra.mxu1 %v6482_v7  ;;  %v6446_v16 = vor.u32 %v9375_v13, %v6445_v11  ;;  %v6453_v18 = vld [vmem:[#allocation2 + $0x188] sm:$0xf]  ;;  %v9372_v20 = vld [vmem:[#allocation2 + $0x18c] sm:$0xf] }
  0x22   :  { %568 = vmatpush.bf16.msra.mxu2 %v6486_v8  ;;  %v6450_v17 = vor.u32 %v9371_v14, %v6447_v15  ;;  %v9376_v19 = vld [vmem:[#allocation2 + $0x1a4] sm:$0xf0]  ;;  %v6455_v22 = vld [vmem:[#allocation2 + $0x1a8] sm:$0xf0]  ;;  %v6413_v23 = vld [vmem:[#allocation2 + $0x140] sm:$0xf] }
  0x23   :  { %581 = vmatpush.bf16.msra.mxu3 %v6490_v12  ;;  %v6454_v21 = vor.u32 %v9376_v19, %v6453_v18  ;;  %v9367_v24 = vld [vmem:[#allocation2 + $0x15c] sm:$0xf0]  ;;  %v6458_v25 = vor.u32 %v9372_v20, %v6455_v22  ;;  %v9363_v26 = vld [vmem:[#allocation2 + $0x144] sm:$0xf]  ;;  %v6421_v28 = vld [vmem:[#allocation2 + $0x148] sm:$0xf] }
  0x24   :  { %v6415_v27 = vld [vmem:[#allocation2 + $0x160] sm:$0xf0]  ;;  %v6414_v29 = vor.u32 %v9367_v24, %v6413_v23  ;;  %v9368_v30 = vld [vmem:[#allocation2 + $0x164] sm:$0xf0]  ;;  %v9364_v31 = vld [vmem:[#allocation2 + $0x14c] sm:$0xf] }
  0x25   :  { %543 = vmatpush.bf16.msra.mxu0 %v6446_v16  ;;  %v6423_v32 = vld [vmem:[#allocation2 + $0x168] sm:$0xf0]  ;;  %556 = vmatpush.bf16.msra.mxu1 %v6450_v17  ;;  %v6418_v33 = vor.u32 %v9363_v26, %v6415_v27  ;;  %v6422_v34 = vor.u32 %v9368_v30, %v6421_v28  ;;  %v6381_v35 = vld [vmem:[#allocation2 + $0x100] sm:$0xf]  ;;  %v9355_v37 = vld [vmem:[#allocation2 + $0x104] sm:$0xf] }
  0x26   :  { %569 = vmatpush.bf16.msra.mxu2 %v6454_v21  ;;  %v9359_v36 = vld [vmem:[#allocation2 + $0x11c] sm:$0xf0]  ;;  %v6426_v38 = vor.u32 %v9364_v31, %v6423_v32  ;;  %v6383_v39 = vld [vmem:[#allocation2 + $0x120] sm:$0xf0]  ;;  %v6389_v40 = vld [vmem:[#allocation2 + $0x108] sm:$0xf] }
  0x27   :  { %582 = vmatpush.bf16.msra.mxu3 %v6458_v25  ;;  %v9360_v41 = vld [vmem:[#allocation2 + $0x124] sm:$0xf0]  ;;  %v9356_v42 = vld [vmem:[#allocation2 + $0x10c] sm:$0xf]  ;;  %v6382_v44 = vor.u32 %v9359_v36, %v6381_v35  ;;  %v6386_v45 = vor.u32 %v9355_v37, %v6383_v39  ;;  %v6349_v47 = vld [vmem:[#allocation2 + $0xc0] sm:$0xf] }
  0x28   :  { %v6391_v43 = vld [vmem:[#allocation2 + $0x128] sm:$0xf0]  ;;  %v6390_v46 = vor.u32 %v9360_v41, %v6389_v40  ;;  %v9351_v48 = vld [vmem:[#allocation2 + $0xdc] sm:$0xf0]  ;;  %v9347_v49 = vld [vmem:[#allocation2 + $0xc4] sm:$0xf] }
  0x29   :  { %544 = vmatpush.bf16.msra.mxu0 %v6414_v29  ;;  %557 = vmatpush.bf16.msra.mxu1 %v6418_v33  ;;  %v6394_v50 = vor.u32 %v9356_v42, %v6391_v43  ;;  %v6351_v51 = vld [vmem:[#allocation2 + $0xe0] sm:$0xf0]  ;;  %v6357_v52 = vld [vmem:[#allocation2 + $0xc8] sm:$0xf]  ;;  %v9348_v54 = vld [vmem:[#allocation2 + $0xcc] sm:$0xf]  ;;  %v6350_v56 = vor.u32 %v9351_v48, %v6349_v47 }
  0x2a   :  { %570 = vmatpush.bf16.msra.mxu2 %v6422_v34  ;;  %v9352_v53 = vld [vmem:[#allocation2 + $0xe4] sm:$0xf0]  ;;  %v6359_v55 = vld [vmem:[#allocation2 + $0xe8] sm:$0xf0]  ;;  %v6354_v57 = vor.u32 %v9347_v49, %v6351_v51  ;;  %v6317_v59 = vld [vmem:[#allocation2 + $0x80] sm:$0xf] }
  0x2b   :  { %583 = vmatpush.bf16.msra.mxu3 %v6426_v38  ;;  %v6358_v58 = vor.u32 %v9352_v53, %v6357_v52  ;;  %v9343_v60 = vld [vmem:[#allocation2 + $0x9c] sm:$0xf0]  ;;  %v9339_v61 = vld [vmem:[#allocation2 + $0x84] sm:$0xf]  ;;  %v6362_v62 = vor.u32 %v9348_v54, %v6359_v55  ;;  %v6325_v0 = vld [vmem:[#allocation2 + $0x88] sm:$0xf] }
  0x2c   :  { %v6319_v63 = vld [vmem:[#allocation2 + $0xa0] sm:$0xf0]  ;;  %v9344_v1 = vld [vmem:[#allocation2 + $0xa4] sm:$0xf0]  ;;  %v9340_v2 = vld [vmem:[#allocation2 + $0x8c] sm:$0xf]  ;;  %v6318_v4 = vor.u32 %v9343_v60, %v6317_v59 }
  0x2d   :  { %545 = vmatpush.bf16.msra.mxu0 %v6382_v44  ;;  %558 = vmatpush.bf16.msra.mxu1 %v6386_v45  ;;  %v6327_v3 = vld [vmem:[#allocation2 + $0xa8] sm:$0xf0]  ;;  %v6322_v5 = vor.u32 %v9339_v61, %v6319_v63  ;;  %v6326_v6 = vor.u32 %v9344_v1, %v6325_v0  ;;  %v6285_v7 = vld [vmem:[#allocation2 + $0x40] sm:$0xf]  ;;  %v9331_v9 = vld [vmem:[#allocation2 + $0x44] sm:$0xf] }
  0x2e   :  { %571 = vmatpush.bf16.msra.mxu2 %v6390_v46  ;;  %v9335_v8 = vld [vmem:[#allocation2 + $0x5c] sm:$0xf0]  ;;  %v6330_v10 = vor.u32 %v9340_v2, %v6327_v3  ;;  %v6287_v11 = vld [vmem:[#allocation2 + $0x60] sm:$0xf0]  ;;  %v6293_v12 = vld [vmem:[#allocation2 + $0x48] sm:$0xf] }
  0x2f   :  { %584 = vmatpush.bf16.msra.mxu3 %v6394_v50  ;;  %v9336_v13 = vld [vmem:[#allocation2 + $0x64] sm:$0xf0]  ;;  %v9332_v14 = vld [vmem:[#allocation2 + $0x4c] sm:$0xf]  ;;  %v6286_v16 = vor.u32 %v9335_v8, %v6285_v7  ;;  %v6253_v17 = vld [vmem:[#allocation2] sm:$0xf]  ;;  %v6290_v19 = vor.u32 %v9331_v9, %v6287_v11 }
  0x30   :  { %v6295_v15 = vld [vmem:[#allocation2 + $0x68] sm:$0xf0]  ;;  %v9327_v18 = vld [vmem:[#allocation2 + $0x1c] sm:$0xf0]  ;;  %v6294_v20 = vor.u32 %v9336_v13, %v6293_v12  ;;  %v9323_v21 = vld [vmem:[#allocation2 + $0x4] sm:$0xf] }
  0x31   :  { %546 = vmatpush.bf16.msra.mxu0 %v6350_v56  ;;  %559 = vmatpush.bf16.msra.mxu1 %v6354_v57  ;;  %v6255_v22 = vld [vmem:[#allocation2 + $0x20] sm:$0xf0]  ;;  %v6261_v23 = vld [vmem:[#allocation2 + $0x8] sm:$0xf]  ;;  %v6298_v24 = vor.u32 %v9332_v14, %v6295_v15  ;;  %v9324_v26 = vld [vmem:[#allocation2 + $0xc] sm:$0xf]  ;;  %v6254_v31 = vor.u32 %v9327_v18, %v6253_v17 }
  0x32   :  { %572 = vmatpush.bf16.msra.mxu2 %v6358_v58  ;;  %v9328_v25 = vld [vmem:[#allocation2 + $0x24] sm:$0xf0]  ;;  %v6263_v27 = vld [vmem:[#allocation2 + $0x28] sm:$0xf0]  ;;  %v6493_v28 = vld [vmem:[#allocation2 + $0x1d0] sm:$0xf]  ;;  %v6258_v35 = vor.u32 %v9323_v21, %v6255_v22 }
  0x33   :  { %585 = vmatpush.bf16.msra.mxu3 %v6362_v62  ;;  %v9385_v29 = vld [vmem:[#allocation2 + $0x1ec] sm:$0xf0]  ;;  %v9381_v30 = vld [vmem:[#allocation2 + $0x1d4] sm:$0xf]  ;;  %v6501_v33 = vld [vmem:[#allocation2 + $0x1d8] sm:$0xf]  ;;  %v6262_v36 = vor.u32 %v9328_v25, %v6261_v23  ;;  %v6266_v40 = vor.u32 %v9324_v26, %v6263_v27 }
  0x34   :  { %v6495_v32 = vld [vmem:[#allocation2 + $0x1f0] sm:$0xf0]  ;;  %v9386_v34 = vld [vmem:[#allocation2 + $0x1f4] sm:$0xf0]  ;;  %v9382_v37 = vld [vmem:[#allocation2 + $0x1dc] sm:$0xf]  ;;  %v6494_v41 = vor.u32 %v9385_v29, %v6493_v28 }
  0x35   :  { %547 = vmatpush.bf16.msra.mxu0 %v6318_v4  ;;  %560 = vmatpush.bf16.msra.mxu1 %v6322_v5  ;;  %v6503_v38 = vld [vmem:[#allocation2 + $0x1f8] sm:$0xf0]  ;;  %v138_v39 = vld [vmem:[%s10612_s0] sm:$0xff]  ;;  %v6498_v42 = vor.u32 %v9381_v30, %v6495_v32  ;;  %v6502_v43 = vor.u32 %v9386_v34, %v6501_v33  ;;  %v6461_v44 = vld [vmem:[#allocation2 + $0x190] sm:$0xf] }
  0x36   :  { %573 = vmatpush.bf16.msra.mxu2 %v6326_v6  ;;  %v9377_v45 = vld [vmem:[#allocation2 + $0x1ac] sm:$0xf0]  ;;  %v9373_v46 = vld [vmem:[#allocation2 + $0x194] sm:$0xf]  ;;  %v6506_v47 = vor.u32 %v9382_v37, %v6503_v38  ;;  %v10364_v48 = vpack.c.bf16 %v138_v39, %v138_v39  ;;  %v6469_v50 = vld [vmem:[#allocation2 + $0x198] sm:$0xf] }
  0x37   :  { %586 = vmatpush.bf16.msra.mxu3 %v6330_v10  ;;  %v6463_v49 = vld [vmem:[#allocation2 + $0x1b0] sm:$0xf0]  ;;  %v9378_v51 = vld [vmem:[#allocation2 + $0x1b4] sm:$0xf0]  ;;  %v9374_v52 = vld [vmem:[#allocation2 + $0x19c] sm:$0xf]  ;;  %v6462_v54 = vor.u32 %v9377_v45, %v6461_v44 }
  0x38   :  { %v6471_v53 = vld [vmem:[#allocation2 + $0x1b8] sm:$0xf0]  ;;  %v6466_v55 = vor.u32 %v9373_v46, %v6463_v49  ;;  %v6470_v56 = vor.u32 %v9378_v51, %v6469_v50  ;;  %v6429_v57 = vld [vmem:[#allocation2 + $0x150] sm:$0xf]  ;;  %v9365_v59 = vld [vmem:[#allocation2 + $0x154] sm:$0xf] }
  0x39   :  { %548 = vmatpush.bf16.msra.mxu0 %v6286_v16  ;;  %561 = vmatpush.bf16.msra.mxu1 %v6290_v19  ;;  %v9369_v58 = vld [vmem:[#allocation2 + $0x16c] sm:$0xf0]  ;;  %v6474_v60 = vor.u32 %v9374_v52, %v6471_v53  ;;  %v6431_v61 = vld [vmem:[#allocation2 + $0x170] sm:$0xf0]  ;;  %v6437_v62 = vld [vmem:[#allocation2 + $0x158] sm:$0xf] }
  0x3a   :  { %574 = vmatpush.bf16.msra.mxu2 %v6294_v20  ;;  %v9370_v63 = vld [vmem:[#allocation2 + $0x174] sm:$0xf0]  ;;  %v9366_v0 = vld [vmem:[#allocation2 + $0x15c] sm:$0xf]  ;;  %v6430_v2 = vor.u32 %v9369_v58, %v6429_v57  ;;  %v6434_v3 = vor.u32 %v9365_v59, %v6431_v61  ;;  %v6397_v5 = vld [vmem:[#allocation2 + $0x110] sm:$0xf] }
  0x3b   :  { %587 = vmatpush.bf16.msra.mxu3 %v6298_v24  ;;  %v6439_v1 = vld [vmem:[#allocation2 + $0x178] sm:$0xf0]  ;;  %v6438_v4 = vor.u32 %v9370_v63, %v6437_v62  ;;  %v9361_v6 = vld [vmem:[#allocation2 + $0x12c] sm:$0xf0]  ;;  %v9357_v7 = vld [vmem:[#allocation2 + $0x114] sm:$0xf] }
  0x3c   :  { %v6442_v8 = vor.u32 %v9366_v0, %v6439_v1  ;;  %v6399_v9 = vld [vmem:[#allocation2 + $0x130] sm:$0xf0]  ;;  %v6405_v10 = vld [vmem:[#allocation2 + $0x118] sm:$0xf]  ;;  %v9358_v12 = vld [vmem:[#allocation2 + $0x11c] sm:$0xf]  ;;  %v6398_v14 = vor.u32 %v9361_v6, %v6397_v5 }
  0x3d   :  { %549 = vmatpush.bf16.msra.mxu0 %v6254_v31  ;;  %562 = vmatpush.bf16.msra.mxu1 %v6258_v35  ;;  %v9362_v11 = vld [vmem:[#allocation2 + $0x134] sm:$0xf0]  ;;  %v6407_v13 = vld [vmem:[#allocation2 + $0x138] sm:$0xf0]  ;;  %v6402_v15 = vor.u32 %v9357_v7, %v6399_v9  ;;  %v6365_v17 = vld [vmem:[#allocation2 + $0xd0] sm:$0xf] }
  0x3e   :  { %575 = vmatpush.bf16.msra.mxu2 %v6262_v36  ;;  %v6406_v16 = vor.u32 %v9362_v11, %v6405_v10  ;;  %v9353_v18 = vld [vmem:[#allocation2 + $0xec] sm:$0xf0]  ;;  %v9349_v19 = vld [vmem:[#allocation2 + $0xd4] sm:$0xf]  ;;  %v6410_v20 = vor.u32 %v9358_v12, %v6407_v13  ;;  %v6373_v22 = vld [vmem:[#allocation2 + $0xd8] sm:$0xf] }
  0x3f   :  { %588 = vmatpush.bf16.msra.mxu3 %v6266_v40  ;;  %v6367_v21 = vld [vmem:[#allocation2 + $0xf0] sm:$0xf0]  ;;  %v9354_v23 = vld [vmem:[#allocation2 + $0xf4] sm:$0xf0]  ;;  %v9350_v24 = vld [vmem:[#allocation2 + $0xdc] sm:$0xf]  ;;  %v6366_v26 = vor.u32 %v9353_v18, %v6365_v17 }
  0x40   :  { %550 = vmatmul.bf16.vlgmr.msra.gmra.mxu0 %v10364_v48  ;;  %563 = vmatmul.bf16.vlgmr.msra.gmra.mxu1 %v10364_v48  ;;  %v6375_v25 = vld [vmem:[#allocation2 + $0xf8] sm:$0xf0]  ;;  %v6370_v27 = vor.u32 %v9349_v19, %v6367_v21  ;;  %v6374_v28 = vor.u32 %v9354_v23, %v6373_v22  ;;  %v6333_v29 = vld [vmem:[#allocation2 + $0x90] sm:$0xf]  ;;  %v9341_v31 = vld [vmem:[#allocation2 + $0x94] sm:$0xf] }
  0x41   :  { %594 = vmatpush.bf16.msrb.mxu0 %v6494_v41  ;;  %607 = vmatpush.bf16.msrb.mxu1 %v6498_v42  ;;  %v9345_v30 = vld [vmem:[#allocation2 + $0xac] sm:$0xf0]  ;;  %v6378_v32 = vor.u32 %v9350_v24, %v6375_v25  ;;  %v6335_v33 = vld [vmem:[#allocation2 + $0xb0] sm:$0xf0]  ;;  %v6341_v34 = vld [vmem:[#allocation2 + $0x98] sm:$0xf] }
  0x42   :  { %620 = vmatpush.bf16.msrb.mxu2 %v6502_v43  ;;  %589 = vmatmul.bf16.vlgmr.msra.gmra.mxu3 %v10364_v48  ;;  %v9346_v35 = vld [vmem:[#allocation2 + $0xb4] sm:$0xf0]  ;;  %v9342_v36 = vld [vmem:[#allocation2 + $0x9c] sm:$0xf]  ;;  %v6334_v38 = vor.u32 %v9345_v30, %v6333_v29  ;;  %v6338_v39 = vor.u32 %v9341_v31, %v6335_v33  ;;  %v6301_v41 = vld [vmem:[#allocation2 + $0x50] sm:$0xf] }
  0x43   :  { %633 = vmatpush.bf16.msrb.mxu3 %v6506_v47  ;;  %576 = vmatmul.bf16.vlgmr.msra.gmra.mxu2 %v10364_v48  ;;  %v6343_v37 = vld [vmem:[#allocation2 + $0xb8] sm:$0xf0]  ;;  %v6342_v40 = vor.u32 %v9346_v35, %v6341_v34  ;;  %v9337_v42 = vld [vmem:[#allocation2 + $0x6c] sm:$0xf0]  ;;  %v9333_v43 = vld [vmem:[#allocation2 + $0x54] sm:$0xf] }
  0x44   :  { %v6346_v44 = vor.u32 %v9342_v36, %v6343_v37  ;;  %v6303_v45 = vld [vmem:[#allocation2 + $0x70] sm:$0xf0]  ;;  %v6309_v46 = vld [vmem:[#allocation2 + $0x58] sm:$0xf]  ;;  %v9334_v49 = vld [vmem:[#allocation2 + $0x5c] sm:$0xf]  ;;  %v6302_v51 = vor.u32 %v9337_v42, %v6301_v41 }
  0x45   :  { %595 = vmatpush.bf16.msrb.mxu0 %v6462_v54  ;;  %608 = vmatpush.bf16.msrb.mxu1 %v6466_v55  ;;  %v9338_v47 = vld [vmem:[#allocation2 + $0x74] sm:$0xf0]  ;;  %v6311_v50 = vld [vmem:[#allocation2 + $0x78] sm:$0xf0]  ;;  %v6269_v52 = vld [vmem:[#allocation2 + $0x10] sm:$0xf]  ;;  %v6306_v53 = vor.u32 %v9333_v43, %v6303_v45 }
  0x46   :  { %621 = vmatpush.bf16.msrb.mxu2 %v6470_v56  ;;  %v6310_v54 = vor.u32 %v9338_v47, %v6309_v46  ;;  %v9329_v55 = vld [vmem:[#allocation2 + $0x2c] sm:$0xf0]  ;;  %v9325_v56 = vld [vmem:[#allocation2 + $0x14] sm:$0xf]  ;;  %v6314_v58 = vor.u32 %v9334_v49, %v6311_v50  ;;  %v6277_v59 = vld [vmem:[#allocation2 + $0x18] sm:$0xf] }
  0x47   :  { %634 = vmatpush.bf16.msrb.mxu3 %v6474_v60  ;;  %v6271_v57 = vld [vmem:[#allocation2 + $0x30] sm:$0xf0]  ;;  %v9330_v60 = vld [vmem:[#allocation2 + $0x34] sm:$0xf0]  ;;  %v9326_v61 = vld [vmem:[#allocation2 + $0x1c] sm:$0xf]  ;;  %v6270_v1 = vor.u32 %v9329_v55, %v6269_v52 }
  0x48   :  { %v6279_v62 = vld [vmem:[#allocation2 + $0x38] sm:$0xf0]  ;;  %v6621_v63 = vld [vmem:[#allocation4 + $0xe0] sm:$0xf]  ;;  %v9417_v0 = vld [vmem:[#allocation4 + $0xec] sm:$0xf0]  ;;  %v6278_v5 = vor.u32 %v9330_v60, %v6277_v59 }
  0x49   :  { %596 = vmatpush.bf16.msrb.mxu0 %v6430_v2  ;;  %609 = vmatpush.bf16.msrb.mxu1 %v6434_v3  ;;  %v6749_v2 = vld [vmem:[#allocation4 + $0x1e0] sm:$0xf]  ;;  %v9449_v3 = vld [vmem:[#allocation4 + $0x1ec] sm:$0xf0]  ;;  %v6282_v6 = vor.u32 %v9326_v61, %v6279_v62  ;;  %v6622_v7 = vor.u32 %v9417_v0, %v6621_v63 }
  0x4a   :  { %622 = vmatpush.bf16.msrb.mxu2 %v6438_v4  ;;  %v6274_v4 = vor.u32 %v9325_v56, %v6271_v57  ;;  %v6877_v9 = vld [vmem:[#allocation4 + $0x2e0] sm:$0xf]  ;;  %v9481_v10 = vld [vmem:[#allocation4 + $0x2ec] sm:$0xf0]  ;;  %v6750_v11 = vor.u32 %v9449_v3, %v6749_v2 }
  0x4b   :  { %635 = vmatpush.bf16.msrb.mxu3 %v6442_v8  ;;  %v6605_v8 = vld [vmem:[#allocation4 + $0xc0] sm:$0xf]  ;;  %v9413_v12 = vld [vmem:[#allocation4 + $0xcc] sm:$0xf0]  ;;  %v6878_v17 = vor.u32 %v9481_v10, %v6877_v9 }
  0x4c   :  { %v7005_v13 = vld [vmem:[#allocation4 + $0x3e0] sm:$0xf]  ;;  %v6606_v18 = vor.u32 %v9413_v12, %v6605_v8  ;;  %v9477_v22 = vld [vmem:[#allocation4 + $0x2cc] sm:$0xf0] }
  0x4d   :  { %597 = vmatpush.bf16.msrb.mxu0 %v6398_v14  ;;  %610 = vmatpush.bf16.msrb.mxu1 %v6402_v15  ;;  %v9513_v14 = vld [vmem:[#allocation4 + $0x3ec] sm:$0xf0]  ;;  %v6733_v15 = vld [vmem:[#allocation4 + $0x1c0] sm:$0xf] }
  0x4e   :  { %623 = vmatpush.bf16.msrb.mxu2 %v6406_v16  ;;  %v9445_v16 = vld [vmem:[#allocation4 + $0x1cc] sm:$0xf0]  ;;  %v7006_v19 = vor.u32 %v9513_v14, %v7005_v13  ;;  %v6861_v21 = vld [vmem:[#allocation4 + $0x2c0] sm:$0xf] }
  0x4f   :  { %636 = vmatpush.bf16.msrb.mxu3 %v6410_v20  ;;  %v6589_v20 = vld [vmem:[#allocation4 + $0xa0] sm:$0xf]  ;;  %v6734_v23 = vor.u32 %v9445_v16, %v6733_v15  ;;  %v9409_v24 = vld [vmem:[#allocation4 + $0xac] sm:$0xf0]  ;;  %v6862_v29 = vor.u32 %v9477_v22, %v6861_v21 }
  0x50   :  { %v6989_v25 = vld [vmem:[#allocation4 + $0x3c0] sm:$0xf]  ;;  %v6590_v30 = vor.u32 %v9409_v24, %v6589_v20  ;;  %v9473_v34 = vld [vmem:[#allocation4 + $0x2ac] sm:$0xf0] }
  0x51   :  { %598 = vmatpush.bf16.msrb.mxu0 %v6366_v26  ;;  %611 = vmatpush.bf16.msrb.mxu1 %v6370_v27  ;;  %v9509_v26 = vld [vmem:[#allocation4 + $0x3cc] sm:$0xf0]  ;;  %v6717_v27 = vld [vmem:[#allocation4 + $0x1a0] sm:$0xf] }
  0x52   :  { %624 = vmatpush.bf16.msrb.mxu2 %v6374_v28  ;;  %v9441_v28 = vld [vmem:[#allocation4 + $0x1ac] sm:$0xf0]  ;;  %v6990_v31 = vor.u32 %v9509_v26, %v6989_v25  ;;  %v6845_v33 = vld [vmem:[#allocation4 + $0x2a0] sm:$0xf] }
  0x53   :  { %637 = vmatpush.bf16.msrb.mxu3 %v6378_v32  ;;  %v6573_v32 = vld [vmem:[#allocation4 + $0x80] sm:$0xf]  ;;  %v6718_v35 = vor.u32 %v9441_v28, %v6717_v27  ;;  %v9405_v36 = vld [vmem:[#allocation4 + $0x8c] sm:$0xf0]  ;;  %v6846_v41 = vor.u32 %v9473_v34, %v6845_v33 }
  0x54   :  { %v6973_v37 = vld [vmem:[#allocation4 + $0x3a0] sm:$0xf]  ;;  %v9469_v45 = vld [vmem:[#allocation4 + $0x28c] sm:$0xf0] }
  0x55   :  { %599 = vmatpush.bf16.msrb.mxu0 %v6334_v38  ;;  %612 = vmatpush.bf16.msrb.mxu1 %v6338_v39  ;;  %v9505_v38 = vld [vmem:[#allocation4 + $0x3ac] sm:$0xf0]  ;;  %v6701_v39 = vld [vmem:[#allocation4 + $0x180] sm:$0xf] }
  0x56   :  { %625 = vmatpush.bf16.msrb.mxu2 %v6342_v40  ;;  %v9437_v40 = vld [vmem:[#allocation4 + $0x18c] sm:$0xf0]  ;;  %v6557_v42 = vld [vmem:[#allocation4 + $0x60] sm:$0xf]  ;;  %v6974_v43 = vor.u32 %v9505_v38, %v6973_v37 }
  0x57   :  { %638 = vmatpush.bf16.msrb.mxu3 %v6346_v44  ;;  %v6829_v44 = vld [vmem:[#allocation4 + $0x280] sm:$0xf]  ;;  %v6702_v46 = vor.u32 %v9437_v40, %v6701_v39  ;;  %v9401_v47 = vld [vmem:[#allocation4 + $0x6c] sm:$0xf0] }
  0x58   :  { %v6957_v49 = vld [vmem:[#allocation4 + $0x380] sm:$0xf]  ;;  %v9501_v50 = vld [vmem:[#allocation4 + $0x38c] sm:$0xf0] }
  0x59   :  { %600 = vmatpush.bf16.msrb.mxu0 %v6302_v51  ;;  %613 = vmatpush.bf16.msrb.mxu1 %v6306_v53  ;;  %v6685_v51 = vld [vmem:[#allocation4 + $0x160] sm:$0xf]  ;;  %v9433_v52 = vld [vmem:[#allocation4 + $0x16c] sm:$0xf0]  ;;  %v6830_v53 = vor.u32 %v9469_v45, %v6829_v44  ;;  %v6958_v55 = vor.u32 %v9501_v50, %v6957_v49 }
  0x5a   :  { %626 = vmatpush.bf16.msrb.mxu2 %v6310_v54  ;;  %v6558_v54 = vor.u32 %v9401_v47, %v6557_v42  ;;  %v6541_v56 = vld [vmem:[#allocation4 + $0x40] sm:$0xf]  ;;  %v6686_v59 = vor.u32 %v9433_v52, %v6685_v51  ;;  %v9397_v60 = vld [vmem:[#allocation4 + $0x4c] sm:$0xf0] }
  0x5b   :  { %639 = vmatpush.bf16.msrb.mxu3 %v6314_v58  ;;  %v6813_v57 = vld [vmem:[#allocation4 + $0x260] sm:$0xf]  ;;  %v9465_v58 = vld [vmem:[#allocation4 + $0x26c] sm:$0xf0]  ;;  %v6542_v2 = vor.u32 %v9397_v60, %v6541_v56 }
  0x5c   :  { %v6941_v61 = vld [vmem:[#allocation4 + $0x360] sm:$0xf]  ;;  %v9497_v62 = vld [vmem:[#allocation4 + $0x36c] sm:$0xf0] }
  0x5d   :  { %601 = vmatpush.bf16.msrb.mxu0 %v6270_v1  ;;  %614 = vmatpush.bf16.msrb.mxu1 %v6274_v4  ;;  %v6669_v63 = vld [vmem:[#allocation4 + $0x140] sm:$0xf]  ;;  %v9429_v0 = vld [vmem:[#allocation4 + $0x14c] sm:$0xf0]  ;;  %v6814_v1 = vor.u32 %v9465_v58, %v6813_v57  ;;  %v6942_v3 = vor.u32 %v9497_v62, %v6941_v61 }
  0x5e   :  { %627 = vmatpush.bf16.msrb.mxu2 %v6278_v5  ;;  %v6525_v4 = vld [vmem:[#allocation4 + $0x20] sm:$0xf]  ;;  %v9393_v8 = vld [vmem:[#allocation4 + $0x2c] sm:$0xf0] }
  0x5f   :  { %640 = vmatpush.bf16.msrb.mxu3 %v6282_v6  ;;  %v6797_v5 = vld [vmem:[#allocation4 + $0x240] sm:$0xf]  ;;  %v9461_v6 = vld [vmem:[#allocation4 + $0x24c] sm:$0xf0]  ;;  %v6526_v15 = vor.u32 %v9393_v8, %v6525_v4 }
  0x60   :  { %602 = vmatmul.bf16.vlgmr.msrb.gmra.mxu0 %v10364_v48  ;;  %615 = vmatmul.bf16.vlgmr.msrb.gmra.mxu1 %v10364_v48  ;;  %v6925_v9 = vld [vmem:[#allocation4 + $0x340] sm:$0xf]  ;;  %v9493_v10 = vld [vmem:[#allocation4 + $0x34c] sm:$0xf0]  ;;  %v6798_v13 = vor.u32 %v9461_v6, %v6797_v5 }
  0x61   :  { %2208 = vmatpush.bf16.msra.mxu0 %v6622_v7  ;;  %2221 = vmatpush.bf16.msra.mxu1 %v6750_v11  ;;  %v6670_v7 = vor.u32 %v9429_v0, %v6669_v63  ;;  %v6653_v11 = vld [vmem:[#allocation4 + $0x120] sm:$0xf]  ;;  %v9425_v12 = vld [vmem:[#allocation4 + $0x12c] sm:$0xf0]  ;;  %v6926_v16 = vor.u32 %v9493_v10, %v6925_v9 }
  0x62   :  { %628 = vmatmul.bf16.vlgmr.msrb.gmra.mxu2 %v10364_v48  ;;  %641 = vmatmul.bf16.vlgmr.msrb.gmra.mxu3 %v10364_v48  ;;  %v6574_v48 = vor.u32 %v9405_v36, %v6573_v32  ;;  %v6509_v14 = vld [vmem:[#allocation4] sm:$0xf]  ;;  %v6654_v20 = vor.u32 %v9425_v12, %v6653_v11  ;;  %v9421_v24 = vld [vmem:[#allocation4 + $0x10c] sm:$0xf0] }
  0x63   :  { %2234 = vmatpush.bf16.msra.mxu2 %v6878_v17  ;;  %2247 = vmatpush.bf16.msra.mxu3 %v7006_v19  ;;  %v9389_v17 = vld [vmem:[#allocation4 + $0xc] sm:$0xf0]  ;;  %v6637_v21 = vld [vmem:[#allocation4 + $0x100] sm:$0xf] }
  0x64   :  { %v9457_v19 = vld [vmem:[#allocation4 + $0x22c] sm:$0xf0]  ;;  %v6909_v22 = vld [vmem:[#allocation4 + $0x320] sm:$0xf]  ;;  %v6638_v36 = vor.u32 %v9421_v24, %v6637_v21 }
  0x65   :  { %2209 = vmatpush.bf16.msra.mxu0 %v6606_v18  ;;  %2222 = vmatpush.bf16.msra.mxu1 %v6734_v23  ;;  %v6781_v18 = vld [vmem:[#allocation4 + $0x220] sm:$0xf]  ;;  %v9489_v23 = vld [vmem:[#allocation4 + $0x32c] sm:$0xf0] }
  0x66   :  { %v7133_v25 = vld [vmem:[#allocation4 + $0x4e0] sm:$0xf]  ;;  %v9545_v26 = vld [vmem:[#allocation4 + $0x4ec] sm:$0xf0] }
  0x67   :  { %2235 = vmatpush.bf16.msra.mxu2 %v6862_v29  ;;  %2248 = vmatpush.bf16.msra.mxu3 %v6990_v31  ;;  %v7261_v27 = vld [vmem:[#allocation4 + $0x5e0] sm:$0xf]  ;;  %v9577_v28 = vld [vmem:[#allocation4 + $0x5ec] sm:$0xf0]  ;;  %v6782_v29 = vor.u32 %v9457_v19, %v6781_v18  ;;  %v6910_v31 = vor.u32 %v9489_v23, %v6909_v22  ;;  %v7134_v37 = vor.u32 %v9545_v26, %v7133_v25 }
  0x68   :  { %v7117_v32 = vld [vmem:[#allocation4 + $0x4c0] sm:$0xf]  ;;  %v9453_v34 = vld [vmem:[#allocation4 + $0x20c] sm:$0xf0] }
  0x69   :  { %2210 = vmatpush.bf16.msra.mxu0 %v6590_v30  ;;  %2223 = vmatpush.bf16.msra.mxu1 %v6718_v35  ;;  %v6510_v30 = vor.u32 %v9389_v17, %v6509_v14  ;;  %v6765_v33 = vld [vmem:[#allocation4 + $0x200] sm:$0xf]  ;;  %v9485_v38 = vld [vmem:[#allocation4 + $0x30c] sm:$0xf0] }
  0x6a   :  { %v6893_v35 = vld [vmem:[#allocation4 + $0x300] sm:$0xf]  ;;  %v9609_v40 = vld [vmem:[#allocation4 + $0x6ec] sm:$0xf0] }
  0x6b   :  { %2236 = vmatpush.bf16.msra.mxu2 %v6846_v41  ;;  %2249 = vmatpush.bf16.msra.mxu3 %v6974_v43  ;;  %v7389_v39 = vld [vmem:[#allocation4 + $0x6e0] sm:$0xf]  ;;  %v7262_v41 = vor.u32 %v9577_v28, %v7261_v27  ;;  %v9541_v42 = vld [vmem:[#allocation4 + $0x4cc] sm:$0xf0]  ;;  %v6894_v47 = vor.u32 %v9485_v38, %v6893_v35 }
  0x6c   :  { %v9641_v43 = vld [vmem:[#allocation4 + $0x7ec] sm:$0xf0]  ;;  %v7245_v44 = vld [vmem:[#allocation4 + $0x5c0] sm:$0xf]  ;;  %v7390_v49 = vor.u32 %v9609_v40, %v7389_v39  ;;  %v7118_v50 = vor.u32 %v9541_v42, %v7117_v32 }
  0x6d   :  { %2211 = vmatpush.bf16.msra.mxu0 %v6574_v48  ;;  %2224 = vmatpush.bf16.msra.mxu1 %v6702_v46  ;;  %v7517_v48 = vld [vmem:[#allocation4 + $0x7e0] sm:$0xf]  ;;  %v9573_v45 = vld [vmem:[#allocation4 + $0x5cc] sm:$0xf0]  ;;  %v6766_v46 = vor.u32 %v9453_v34, %v6765_v33 }
  0x6e   :  { %v7518_v51 = vor.u32 %v9641_v43, %v7517_v48  ;;  %v7101_v52 = vld [vmem:[#allocation4 + $0x4a0] sm:$0xf]  ;;  %v9537_v56 = vld [vmem:[#allocation4 + $0x4ac] sm:$0xf0] }
  0x6f   :  { %2237 = vmatpush.bf16.msra.mxu2 %v6830_v53  ;;  %2250 = vmatpush.bf16.msra.mxu3 %v6958_v55  ;;  %v7373_v53 = vld [vmem:[#allocation4 + $0x6c0] sm:$0xf]  ;;  %v7246_v55 = vor.u32 %v9573_v45, %v7245_v44  ;;  %v9637_v58 = vld [vmem:[#allocation4 + $0x7cc] sm:$0xf0]  ;;  %v7102_v62 = vor.u32 %v9537_v56, %v7101_v52 }
  0x70   :  { %v7501_v57 = vld [vmem:[#allocation4 + $0x7c0] sm:$0xf]  ;;  %v9569_v60 = vld [vmem:[#allocation4 + $0x5ac] sm:$0xf0] }
  0x71   :  { %2212 = vmatpush.bf16.msra.mxu0 %v6558_v54  ;;  %2225 = vmatpush.bf16.msra.mxu1 %v6686_v59  ;;  %v9605_v54 = vld [vmem:[#allocation4 + $0x6cc] sm:$0xf0]  ;;  %v7229_v59 = vld [vmem:[#allocation4 + $0x5a0] sm:$0xf]  ;;  %v7502_v63 = vor.u32 %v9637_v58, %v7501_v57 }
  0x72   :  { %v7374_v61 = vor.u32 %v9605_v54, %v7373_v53  ;;  %v7085_v0 = vld [vmem:[#allocation4 + $0x480] sm:$0xf]  ;;  %v9533_v4 = vld [vmem:[#allocation4 + $0x48c] sm:$0xf0] }
  0x73   :  { %2238 = vmatpush.bf16.msra.mxu2 %v6814_v1  ;;  %2251 = vmatpush.bf16.msra.mxu3 %v6942_v3  ;;  %v7357_v1 = vld [vmem:[#allocation4 + $0x6a0] sm:$0xf]  ;;  %v7230_v3 = vor.u32 %v9569_v60, %v7229_v59  ;;  %v9633_v6 = vld [vmem:[#allocation4 + $0x7ac] sm:$0xf0]  ;;  %v7086_v10 = vor.u32 %v9533_v4, %v7085_v0 }
  0x74   :  { %v7485_v5 = vld [vmem:[#allocation4 + $0x7a0] sm:$0xf]  ;;  %v9565_v8 = vld [vmem:[#allocation4 + $0x58c] sm:$0xf0] }
  0x75   :  { %2213 = vmatpush.bf16.msra.mxu0 %v6542_v2  ;;  %2226 = vmatpush.bf16.msra.mxu1 %v6670_v7  ;;  %v9601_v2 = vld [vmem:[#allocation4 + $0x6ac] sm:$0xf0]  ;;  %v7213_v7 = vld [vmem:[#allocation4 + $0x580] sm:$0xf]  ;;  %v7486_v11 = vor.u32 %v9633_v6, %v7485_v5 }
  0x76   :  { %v7358_v9 = vor.u32 %v9601_v2, %v7357_v1  ;;  %v7069_v12 = vld [vmem:[#allocation4 + $0x460] sm:$0xf]  ;;  %v9597_v14 = vld [vmem:[#allocation4 + $0x68c] sm:$0xf0] }
  0x77   :  { %2239 = vmatpush.bf16.msra.mxu2 %v6798_v13  ;;  %2252 = vmatpush.bf16.msra.mxu3 %v6926_v16  ;;  %v7341_v13 = vld [vmem:[#allocation4 + $0x680] sm:$0xf]  ;;  %v9529_v16 = vld [vmem:[#allocation4 + $0x46c] sm:$0xf0] }
  0x78   :  { %v7469_v17 = vld [vmem:[#allocation4 + $0x780] sm:$0xf]  ;;  %v9629_v18 = vld [vmem:[#allocation4 + $0x78c] sm:$0xf0]  ;;  %v7342_v21 = vor.u32 %v9597_v14, %v7341_v13  ;;  %v7070_v22 = vor.u32 %v9529_v16, %v7069_v12  ;;  %v9447_v12 = vld [vmem:[#allocation4 + $0x1e4] sm:$0xf] }
  0x79   :  { %2214 = vmatpush.bf16.msra.mxu0 %v6526_v15  ;;  %2227 = vmatpush.bf16.msra.mxu1 %v6654_v20  ;;  %v7214_v15 = vor.u32 %v9565_v8, %v7213_v7  ;;  %v7197_v19 = vld [vmem:[#allocation4 + $0x560] sm:$0xf]  ;;  %v9561_v20 = vld [vmem:[#allocation4 + $0x56c] sm:$0xf0]  ;;  %v7470_v23 = vor.u32 %v9629_v18, %v7469_v17  ;;  %v6751_v13 = vld [vmem:[#allocation4 + $0x1f0] sm:$0xf0] }
  0x7a   :  { %v7198_v24 = vor.u32 %v9561_v20, %v7197_v19  ;;  %v7053_v25 = vld [vmem:[#allocation4 + $0x440] sm:$0xf]  ;;  %v9525_v26 = vld [vmem:[#allocation4 + $0x44c] sm:$0xf0]  ;;  %v6754_v20 = vor.u32 %v9447_v12, %v6751_v13  ;;  %v9467_v12 = vld [vmem:[#allocation4 + $0x284] sm:$0xf] }
  0x7b   :  { %2240 = vmatpush.bf16.msra.mxu2 %v6782_v29  ;;  %2253 = vmatpush.bf16.msra.mxu3 %v6910_v31  ;;  %v7181_v27 = vld [vmem:[#allocation4 + $0x540] sm:$0xf]  ;;  %v9557_v28 = vld [vmem:[#allocation4 + $0x54c] sm:$0xf0]  ;;  %v7054_v29 = vor.u32 %v9525_v26, %v7053_v25  ;;  %v6735_v25 = vld [vmem:[#allocation4 + $0x1d0] sm:$0xf0] }
  0x7c   :  { %v7325_v31 = vld [vmem:[#allocation4 + $0x660] sm:$0xf]  ;;  %v9593_v32 = vld [vmem:[#allocation4 + $0x66c] sm:$0xf0]  ;;  %v6831_v13 = vld [vmem:[#allocation4 + $0x290] sm:$0xf0] }
  0x7d   :  { %2215 = vmatpush.bf16.msra.mxu0 %v6510_v30  ;;  %2228 = vmatpush.bf16.msra.mxu1 %v6638_v36  ;;  %v7182_v30 = vor.u32 %v9557_v28, %v7181_v27  ;;  %v7453_v33 = vld [vmem:[#allocation4 + $0x760] sm:$0xf]  ;;  %v7326_v34 = vor.u32 %v9593_v32, %v7325_v31  ;;  %v9625_v35 = vld [vmem:[#allocation4 + $0x76c] sm:$0xf0]  ;;  %v9479_v31 = vld [vmem:[#allocation4 + $0x2e4] sm:$0xf] }
  0x7e   :  { %v7454_v36 = vor.u32 %v9625_v35, %v7453_v33  ;;  %v9521_v38 = vld [vmem:[#allocation4 + $0x42c] sm:$0xf0]  ;;  %v7165_v40 = vld [vmem:[#allocation4 + $0x520] sm:$0xf]  ;;  %v6879_v32 = vld [vmem:[#allocation4 + $0x2f0] sm:$0xf0] }
  0x7f   :  { %2241 = vmatpush.bf16.msra.mxu2 %v6766_v46  ;;  %2254 = vmatpush.bf16.msra.mxu3 %v6894_v47  ;;  %v7309_v48 = vld [vmem:[#allocation4 + $0x640] sm:$0xf]  ;;  %v9589_v43 = vld [vmem:[#allocation4 + $0x64c] sm:$0xf0]  ;;  %v9511_v33 = vld [vmem:[#allocation4 + $0x3e4] sm:$0xf] }
  0x80   :  { %v7437_v44 = vld [vmem:[#allocation4 + $0x740] sm:$0xf]  ;;  %v7310_v45 = vor.u32 %v9589_v43, %v7309_v48  ;;  %v9621_v46 = vld [vmem:[#allocation4 + $0x74c] sm:$0xf0]  ;;  %v6882_v43 = vor.u32 %v9479_v31, %v6879_v32  ;;  %v9391_v31 = vld [vmem:[#allocation4 + $0x24] sm:$0xf] }
  0x81   :  { %2260 = vmatpush.bf16.msrb.mxu0 %v7134_v37  ;;  %2273 = vmatpush.bf16.msrb.mxu1 %v7262_v41  ;;  %v7037_v37 = vld [vmem:[#allocation4 + $0x420] sm:$0xf]  ;;  %v9553_v41 = vld [vmem:[#allocation4 + $0x52c] sm:$0xf0]  ;;  %v7438_v47 = vor.u32 %v9621_v46, %v7437_v44  ;;  %v6527_v32 = vld [vmem:[#allocation4 + $0x30] sm:$0xf0] }
  0x82   :  { %v7038_v39 = vor.u32 %v9521_v38, %v7037_v37  ;;  %v7166_v42 = vor.u32 %v9553_v41, %v7165_v40  ;;  %v9549_v53 = vld [vmem:[#allocation4 + $0x50c] sm:$0xf0]  ;;  %v7421_v58 = vld [vmem:[#allocation4 + $0x720] sm:$0xf]  ;;  %v7007_v37 = vld [vmem:[#allocation4 + $0x3f0] sm:$0xf0] }
  0x83   :  { %2286 = vmatpush.bf16.msrb.mxu2 %v7390_v49  ;;  %2299 = vmatpush.bf16.msrb.mxu3 %v7518_v51  ;;  %v7021_v49 = vld [vmem:[#allocation4 + $0x400] sm:$0xf]  ;;  %v9585_v56 = vld [vmem:[#allocation4 + $0x62c] sm:$0xf0]  ;;  %v9407_v38 = vld [vmem:[#allocation4 + $0xa4] sm:$0xf] }
  0x84   :  { %v7149_v51 = vld [vmem:[#allocation4 + $0x500] sm:$0xf]  ;;  %v9617_v59 = vld [vmem:[#allocation4 + $0x72c] sm:$0xf0]  ;;  %v9439_v41 = vld [vmem:[#allocation4 + $0x1a4] sm:$0xf] }
  0x85   :  { %2261 = vmatpush.bf16.msrb.mxu0 %v7118_v50  ;;  %2274 = vmatpush.bf16.msrb.mxu1 %v7246_v55  ;;  %v9517_v50 = vld [vmem:[#allocation4 + $0x40c] sm:$0xf0]  ;;  %v7150_v54 = vor.u32 %v9549_v53, %v7149_v51  ;;  %v7293_v55 = vld [vmem:[#allocation4 + $0x620] sm:$0xf]  ;;  %v7422_v60 = vor.u32 %v9617_v59, %v7421_v58  ;;  %v6991_v53 = vld [vmem:[#allocation4 + $0x3d0] sm:$0xf0] }
  0x86   :  { %v7022_v52 = vor.u32 %v9517_v50, %v7021_v49  ;;  %v7294_v57 = vor.u32 %v9585_v56, %v7293_v55  ;;  %v7405_v0 = vld [vmem:[#allocation4 + $0x700] sm:$0xf]  ;;  %v9613_v1 = vld [vmem:[#allocation4 + $0x70c] sm:$0xf0]  ;;  %v6863_v49 = vld [vmem:[#allocation4 + $0x2d0] sm:$0xf0] }
  0x87   :  { %2287 = vmatpush.bf16.msrb.mxu2 %v7374_v61  ;;  %2300 = vmatpush.bf16.msrb.mxu3 %v7502_v63  ;;  %v7277_v61 = vld [vmem:[#allocation4 + $0x600] sm:$0xf]  ;;  %v7406_v2 = vor.u32 %v9613_v1, %v7405_v0  ;;  %v9507_v50 = vld [vmem:[#allocation4 + $0x3c4] sm:$0xf]  ;;  %v6575_v55 = vld [vmem:[#allocation4 + $0x90] sm:$0xf0] }
  0x88   :  { %v9435_v56 = vld [vmem:[#allocation4 + $0x184] sm:$0xf]  ;;  %v6847_v0 = vld [vmem:[#allocation4 + $0x2b0] sm:$0xf0] }
  0x89   :  { %2262 = vmatpush.bf16.msrb.mxu0 %v7102_v62  ;;  %2275 = vmatpush.bf16.msrb.mxu1 %v7230_v3  ;;  %v9581_v62 = vld [vmem:[#allocation4 + $0x60c] sm:$0xf0]  ;;  %v10377_v3 = vld [vmem:[%s10614_s2] sm:$0xff] }
  0x8a   :  { %v7278_v63 = vor.u32 %v9581_v62, %v7277_v61  ;;  %v206_v4 = vperm.slane %v10377_v3, 0  ;;  %v207_v5 = vperm.slane %v10377_v3, 1  ;;  %v208_v16 = vperm.slane %v10377_v3, 2  ;;  %v9503_v1 = vld [vmem:[#allocation4 + $0x3a4] sm:$0xf] }
  0x8b   :  { %2288 = vmatpush.bf16.msrb.mxu2 %v7358_v9  ;;  %2301 = vmatpush.bf16.msrb.mxu3 %v7486_v11  ;;  %v9415_v9 = vld [vmem:[#allocation4 + $0xe4] sm:$0xf]  ;;  %v209_v19 = vperm.slane %v10377_v3, 3  ;;  %v6994_v61 = vor.u32 %v9507_v50, %v6991_v53  ;;  %v6639_v53 = vld [vmem:[#allocation4 + $0x110] sm:$0xf0] }
  0x8d   :  { %2263 = vmatpush.bf16.msrb.mxu0 %v7086_v10  ;;  %2276 = vmatpush.bf16.msrb.mxu1 %v7214_v15  ;;  %v6623_v10 = vld [vmem:[#allocation4 + $0xf0] sm:$0xf0] }
  0x8e   :  { %v6626_v17 = vor.u32 %v9415_v9, %v6623_v10 }
  0x8f   :  { %2289 = vmatpush.bf16.msrb.mxu2 %v7342_v21  ;;  %2302 = vmatpush.bf16.msrb.mxu3 %v7470_v23  ;;  %v9411_v21 = vld [vmem:[#allocation4 + $0xc4] sm:$0xf] }
  0x91   :  { %2264 = vmatpush.bf16.msrb.mxu0 %v7070_v22  ;;  %2277 = vmatpush.bf16.msrb.mxu1 %v7198_v24  ;;  %v6607_v22 = vld [vmem:[#allocation4 + $0xd0] sm:$0xf0]  ;;  %v9443_v24 = vld [vmem:[#allocation4 + $0x1c4] sm:$0xf] }
  0x93   :  { %2290 = vmatpush.bf16.msrb.mxu2 %v7326_v34  ;;  %2303 = vmatpush.bf16.msrb.mxu3 %v7454_v36  ;;  %v6738_v36 = vor.u32 %v9443_v24, %v6735_v25 }
  0x95   :  { %2265 = vmatpush.bf16.msrb.mxu0 %v7054_v29  ;;  %2278 = vmatpush.bf16.msrb.mxu1 %v7182_v30  ;;  %v6610_v30 = vor.u32 %v9411_v21, %v6607_v22  ;;  %v6671_v21 = vld [vmem:[#allocation4 + $0x150] sm:$0xf0]  ;;  %v6834_v22 = vor.u32 %v9467_v12, %v6831_v13  ;;  %v9539_v13 = vld [vmem:[#allocation4 + $0x4c4] sm:$0xf] }
  0x97   :  { %2291 = vmatpush.bf16.msrb.mxu2 %v7310_v45  ;;  %2304 = vmatpush.bf16.msrb.mxu3 %v7438_v47  ;;  %v7010_v45 = vor.u32 %v9511_v33, %v7007_v37  ;;  %v9475_v47 = vld [vmem:[#allocation4 + $0x2c4] sm:$0xf]  ;;  %v210_v33 = vperm.slane %v10377_v3, 4 }
  0x98   :  { %v6866_v59 = vor.u32 %v9475_v47, %v6863_v49  ;;  %v6511_v47 = vld [vmem:[#allocation4 + $0x10] sm:$0xf0] }
  0x99   :  { %2266 = vmatpush.bf16.msrb.mxu0 %v7038_v39  ;;  %2279 = vmatpush.bf16.msrb.mxu1 %v7166_v42  ;;  %v6591_v39 = vld [vmem:[#allocation4 + $0xb0] sm:$0xf0] }
  0x9a   :  { %v6719_v42 = vld [vmem:[#allocation4 + $0x1b0] sm:$0xf0]  ;;  %v6594_v46 = vor.u32 %v9407_v38, %v6591_v39  ;;  %v6530_v39 = vor.u32 %v9391_v31, %v6527_v32  ;;  %v9639_v32 = vld [vmem:[#allocation4 + $0x7e4] sm:$0xf] }
  0x9b   :  { %2292 = vmatpush.bf16.msrb.mxu2 %v7294_v57  ;;  %2305 = vmatpush.bf16.msrb.mxu3 %v7422_v60  ;;  %v6703_v57 = vld [vmem:[#allocation4 + $0x190] sm:$0xf0] }
  0x9c   :  { %v7391_v31 = vld [vmem:[#allocation4 + $0x6f0] sm:$0xf0] }
  0x9d   :  { %2267 = vmatpush.bf16.msrb.mxu0 %v7022_v52  ;;  %2280 = vmatpush.bf16.msrb.mxu1 %v7150_v54  ;;  %v6722_v52 = vor.u32 %v9439_v41, %v6719_v42  ;;  %v9403_v54 = vld [vmem:[#allocation4 + $0x84] sm:$0xf]  ;;  %v6799_v41 = vld [vmem:[#allocation4 + $0x250] sm:$0xf0] }
  0x9e   :  { %v6578_v62 = vor.u32 %v9403_v54, %v6575_v55  ;;  %v9491_v42 = vld [vmem:[#allocation4 + $0x344] sm:$0xf] }
  0x9f   :  { %2293 = vmatpush.bf16.msrb.mxu2 %v7278_v63  ;;  %2306 = vmatpush.bf16.msrb.mxu3 %v7406_v2  ;;  %v9471_v63 = vld [vmem:[#allocation4 + $0x2a4] sm:$0xf]  ;;  %v6706_v2 = vor.u32 %v9435_v56, %v6703_v57  ;;  %v7135_v57 = vld [vmem:[#allocation4 + $0x4f0] sm:$0xf0] }
  0xa0   :  { %v6850_v9 = vor.u32 %v9471_v63, %v6847_v0  ;;  %v9543_v54 = vld [vmem:[#allocation4 + $0x4e4] sm:$0xf]  ;;  %v6783_v0 = vld [vmem:[#allocation4 + $0x230] sm:$0xf0] }
  0xa1   :  { %v9455_v63 = vld [vmem:[#allocation4 + $0x224] sm:$0xf] }
  0xa2   :  { %v6786_v12 = vor.u32 %v9455_v63, %v6783_v0  ;;  %v9599_v0 = vld [vmem:[#allocation4 + $0x6a4] sm:$0xf] }
  0xbd   :  { %v551_v6 = vpop.f32.mrf.mxu0  ;;  %v564_v8 = vpop.f32.mrf.mxu1 }
  0xbe   :  { %v552_v7 = vadd.f32 %v551_v6, %v206_v4  ;;  %v565_v11 = vadd.f32 %v564_v8, %v207_v5  ;;  %v6975_v4 = vld [vmem:[#allocation4 + $0x3b0] sm:$0xf0]  ;;  %v9399_v5 = vld [vmem:[#allocation4 + $0x64] sm:$0xf] }
  0xbf   :  { %v6559_v6 = vld [vmem:[#allocation4 + $0x70] sm:$0xf0]  ;;  %v6978_v10 = vor.u32 %v9503_v1, %v6975_v4 }
  0xc0   :  { %v646_v14 = vmax.f32 %v552_v7, 0.0  ;;  %v647_v15 = vmax.f32 %v565_v11, 0.0  ;;  %v9431_v7 = vld [vmem:[#allocation4 + $0x164] sm:$0xf]  ;;  %v6687_v8 = vld [vmem:[#allocation4 + $0x170] sm:$0xf0]  ;;  %v6562_v11 = vor.u32 %v9399_v5, %v6559_v6 }
  0xc1   :  { %v9487_v5 = vld [vmem:[#allocation4 + $0x324] sm:$0xf]  ;;  %v6911_v6 = vld [vmem:[#allocation4 + $0x330] sm:$0xf0] }
  0xc2   :  { %v10382_v18 = vpack.c.bf16 %v646_v14, %v646_v14  ;;  %v10385_v23 = vpack.c.bf16 %v647_v15, %v647_v15  ;;  %v9499_v14 = vld [vmem:[#allocation4 + $0x384] sm:$0xf]  ;;  %v6690_v15 = vor.u32 %v9431_v7, %v6687_v8  ;;  %v213_v8 = vperm.slane %v10377_v3, 7 }
  0xc4   :  { %2216 = vmatmul.bf16.vlgmr.msra.gmra.mxu0 %v10382_v18  ;;  %2229 = vmatmul.bf16.vlgmr.msra.gmra.mxu1 %v10385_v23 }
  0xc5   :  { %v590_v28 = vpop.f32.mrf.mxu3  ;;  %2312 = vmatpush.bf16.msra.mxu0 %v6626_v17  ;;  %v553_v29 = vpop.f32.mrf.mxu0  ;;  %2325 = vmatpush.bf16.msra.mxu1 %v6754_v20  ;;  %v9395_v17 = vld [vmem:[#allocation4 + $0x44] sm:$0xf] }
  0xc6   :  { %v577_v26 = vpop.f32.mrf.mxu2  ;;  %v591_v34 = vadd.f32 %v590_v28, %v209_v19  ;;  %v566_v35 = vpop.f32.mrf.mxu1  ;;  %v6543_v19 = vld [vmem:[#allocation4 + $0x50] sm:$0xf0]  ;;  %v9427_v20 = vld [vmem:[#allocation4 + $0x144] sm:$0xf] }
  0xc7   :  { %v578_v27 = vadd.f32 %v577_v26, %v208_v16  ;;  %v6959_v16 = vld [vmem:[#allocation4 + $0x390] sm:$0xf0]  ;;  %v6546_v25 = vor.u32 %v9395_v17, %v6543_v19  ;;  %v9463_v26 = vld [vmem:[#allocation4 + $0x264] sm:$0xf]  ;;  %v6674_v29 = vor.u32 %v9427_v20, %v6671_v21  ;;  %v6914_v17 = vor.u32 %v9487_v5, %v6911_v6 }
  0xc8   :  { %v649_v48 = vmax.f32 %v591_v34, 0.0  ;;  %v6962_v24 = vor.u32 %v9499_v14, %v6959_v16  ;;  %v9495_v28 = vld [vmem:[#allocation4 + $0x364] sm:$0xf]  ;;  %v6655_v35 = vld [vmem:[#allocation4 + $0x130] sm:$0xf0] }
  0xc9   :  { %v648_v40 = vmax.f32 %v578_v27, 0.0  ;;  %2313 = vmatpush.bf16.msra.mxu0 %v6610_v30  ;;  %2326 = vmatpush.bf16.msra.mxu1 %v6738_v36  ;;  %v6815_v27 = vld [vmem:[#allocation4 + $0x270] sm:$0xf0]  ;;  %v9423_v34 = vld [vmem:[#allocation4 + $0x124] sm:$0xf]  ;;  %v211_v36 = vperm.slane %v10377_v3, 5 }
  0xca   :  { %v10391_v51 = vpack.c.bf16 %v649_v48, %v649_v48  ;;  %v6943_v30 = vld [vmem:[#allocation4 + $0x370] sm:$0xf0]  ;;  %v6818_v37 = vor.u32 %v9463_v26, %v6815_v27  ;;  %v9451_v20 = vld [vmem:[#allocation4 + $0x204] sm:$0xf] }
  0xcb   :  { %v10389_v44 = vpack.c.bf16 %v648_v40, %v648_v40  ;;  %v6946_v38 = vor.u32 %v9495_v28, %v6943_v30  ;;  %v9459_v40 = vld [vmem:[#allocation4 + $0x244] sm:$0xf]  ;;  %v7119_v14 = vld [vmem:[#allocation4 + $0x4d0] sm:$0xf0] }
  0xcc   :  { %2255 = vmatmul.bf16.vlgmr.msra.gmra.mxu3 %v10391_v51  ;;  %v6802_v56 = vor.u32 %v9459_v40, %v6799_v41  ;;  %v7247_v19 = vld [vmem:[#allocation4 + $0x5d0] sm:$0xf0]  ;;  %v9607_v27 = vld [vmem:[#allocation4 + $0x6e4] sm:$0xf]  ;;  %v7122_v30 = vor.u32 %v9539_v13, %v7119_v14 }
  0xcd   :  { %2242 = vmatmul.bf16.vlgmr.msra.gmra.mxu2 %v10389_v44  ;;  %2351 = vmatpush.bf16.msra.mxu3 %v7010_v45  ;;  %v592_v60 = vpop.f32.mrf.mxu3  ;;  %v6927_v45 = vld [vmem:[#allocation4 + $0x350] sm:$0xf0]  ;;  %v9567_v41 = vld [vmem:[#allocation4 + $0x5a4] sm:$0xf] }
  0xce   :  { %2338 = vmatpush.bf16.msra.mxu2 %v6882_v43  ;;  %v579_v58 = vpop.f32.mrf.mxu2  ;;  %2314 = vmatpush.bf16.msra.mxu0 %v6594_v46  ;;  %v6658_v43 = vor.u32 %v9423_v34, %v6655_v35  ;;  %v9387_v46 = vld [vmem:[#allocation4 + $0x4] sm:$0xf]  ;;  %v6767_v21 = vld [vmem:[#allocation4 + $0x210] sm:$0xf0] }
  0xcf   :  { %2327 = vmatpush.bf16.msra.mxu1 %v6722_v52  ;;  %v9419_v52 = vld [vmem:[#allocation4 + $0x104] sm:$0xf]  ;;  %v6895_v26 = vld [vmem:[#allocation4 + $0x310] sm:$0xf0] }
  0xd0   :  { %v9575_v58 = vld [vmem:[#allocation4 + $0x5e4] sm:$0xf]  ;;  %v6642_v4 = vor.u32 %v9419_v52, %v6639_v53  ;;  %v7487_v5 = vld [vmem:[#allocation4 + $0x7b0] sm:$0xf0] }
  0xd1   :  { %2352 = vmatpush.bf16.msra.mxu3 %v6994_v61  ;;  %v6930_v61 = vor.u32 %v9491_v42, %v6927_v45  ;;  %v7231_v42 = vld [vmem:[#allocation4 + $0x5b0] sm:$0xf0]  ;;  %v9635_v52 = vld [vmem:[#allocation4 + $0x7c4] sm:$0xf] }
  0xd2   :  { %2339 = vmatpush.bf16.msra.mxu2 %v6866_v59  ;;  %2315 = vmatpush.bf16.msra.mxu0 %v6578_v62  ;;  %v7263_v59 = vld [vmem:[#allocation4 + $0x5f0] sm:$0xf0]  ;;  %v6514_v62 = vor.u32 %v9387_v46, %v6511_v47  ;;  %v7234_v53 = vor.u32 %v9567_v41, %v7231_v42  ;;  %v9527_v6 = vld [vmem:[#allocation4 + $0x464] sm:$0xf] }
  0xd3   :  { %2328 = vmatpush.bf16.msra.mxu1 %v6706_v2  ;;  %v212_v2 = vperm.slane %v10377_v3, 6  ;;  %v9595_v14 = vld [vmem:[#allocation4 + $0x684] sm:$0xf] }
  0xd4   :  { %v9619_v41 = vld [vmem:[#allocation4 + $0x744] sm:$0xf] }
  0xd5   :  { %2353 = vmatpush.bf16.msra.mxu3 %v6978_v10 }
  0xd6   :  { %2340 = vmatpush.bf16.msra.mxu2 %v6850_v9  ;;  %2316 = vmatpush.bf16.msra.mxu0 %v6562_v11  ;;  %v7138_v9 = vor.u32 %v9543_v54, %v7135_v57  ;;  %v7266_v11 = vor.u32 %v9575_v58, %v7263_v59  ;;  %v7503_v54 = vld [vmem:[#allocation4 + $0x7d0] sm:$0xf0]  ;;  %v9563_v58 = vld [vmem:[#allocation4 + $0x584] sm:$0xf] }
  0xd7   :  { %2329 = vmatpush.bf16.msra.mxu1 %v6690_v15  ;;  %v9571_v15 = vld [vmem:[#allocation4 + $0x5c4] sm:$0xf]  ;;  %v7215_v59 = vld [vmem:[#allocation4 + $0x590] sm:$0xf0] }
  0xd8   :  { %v7250_v35 = vor.u32 %v9571_v15, %v7247_v19  ;;  %v7343_v15 = vld [vmem:[#allocation4 + $0x690] sm:$0xf0]  ;;  %v9627_v19 = vld [vmem:[#allocation4 + $0x784] sm:$0xf] }
  0xd9   :  { %2354 = vmatpush.bf16.msra.mxu3 %v6962_v24 }
  0xda   :  { %2341 = vmatpush.bf16.msra.mxu2 %v6834_v22  ;;  %2317 = vmatpush.bf16.msra.mxu0 %v6546_v25  ;;  %v9483_v25 = vld [vmem:[#allocation4 + $0x304] sm:$0xf] }
  0xdb   :  { %2330 = vmatpush.bf16.msra.mxu1 %v6674_v29  ;;  %v6898_v40 = vor.u32 %v9483_v25, %v6895_v26  ;;  %v7346_v25 = vor.u32 %v9595_v14, %v7343_v15  ;;  %v9611_v14 = vld [vmem:[#allocation4 + $0x704] sm:$0xf]  ;;  %v7407_v15 = vld [vmem:[#allocation4 + $0x710] sm:$0xf0] }
  0xdd   :  { %v603_v48 = vpop.f32.mrf.mxu0  ;;  %v616_v50 = vpop.f32.mrf.mxu1  ;;  %2355 = vmatpush.bf16.msra.mxu3 %v6946_v38  ;;  %v7103_v38 = vld [vmem:[#allocation4 + $0x4b0] sm:$0xf0] }
  0xde   :  { %v604_v49 = vadd.f32 %v603_v48, %v210_v33  ;;  %v617_v55 = vadd.f32 %v616_v50, %v211_v36  ;;  %2342 = vmatpush.bf16.msra.mxu2 %v6818_v37  ;;  %2318 = vmatpush.bf16.msra.mxu0 %v6530_v39  ;;  %v7519_v33 = vld [vmem:[#allocation4 + $0x7f0] sm:$0xf0]  ;;  %v6770_v36 = vor.u32 %v9451_v20, %v6767_v21  ;;  %v9535_v37 = vld [vmem:[#allocation4 + $0x4a4] sm:$0xf] }
  0xdf   :  { %2331 = vmatpush.bf16.msra.mxu1 %v6658_v43  ;;  %v7394_v43 = vor.u32 %v9607_v27, %v7391_v31  ;;  %v7522_v46 = vor.u32 %v9639_v32, %v7519_v33  ;;  %v7106_v47 = vor.u32 %v9535_v37, %v7103_v38  ;;  %v7375_v50 = vld [vmem:[#allocation4 + $0x6d0] sm:$0xf0]  ;;  %v9523_v21 = vld [vmem:[#allocation4 + $0x444] sm:$0xf] }
  0xe0   :  { %v650_v60 = vmax.f32 %v604_v49, 0.0  ;;  %v651_v1 = vmax.f32 %v617_v55, 0.0  ;;  %v9603_v49 = vld [vmem:[#allocation4 + $0x6c4] sm:$0xf]  ;;  %v7471_v20 = vld [vmem:[#allocation4 + $0x790] sm:$0xf0] }
  0xe1   :  { %2356 = vmatpush.bf16.msra.mxu3 %v6930_v61  ;;  %v9531_v55 = vld [vmem:[#allocation4 + $0x484] sm:$0xf]  ;;  %v7378_v61 = vor.u32 %v9603_v49, %v7375_v50  ;;  %v7474_v26 = vor.u32 %v9627_v19, %v7471_v20  ;;  %v7455_v32 = vld [vmem:[#allocation4 + $0x770] sm:$0xf0] }
  0xe2   :  { %v10398_v7 = vpack.c.bf16 %v650_v60, %v650_v60  ;;  %v10401_v10 = vpack.c.bf16 %v651_v1, %v651_v1  ;;  %2343 = vmatpush.bf16.msra.mxu2 %v6802_v56  ;;  %2319 = vmatpush.bf16.msra.mxu0 %v6514_v62  ;;  %v7087_v56 = vld [vmem:[#allocation4 + $0x490] sm:$0xf0]  ;;  %v7506_v62 = vor.u32 %v9635_v52, %v7503_v54  ;;  %v9591_v27 = vld [vmem:[#allocation4 + $0x664] sm:$0xf] }
  0xe3   :  { %2332 = vmatpush.bf16.msra.mxu1 %v6642_v4  ;;  %v7090_v63 = vor.u32 %v9531_v55, %v7087_v56  ;;  %v7359_v1 = vld [vmem:[#allocation4 + $0x6b0] sm:$0xf0]  ;;  %v9631_v4 = vld [vmem:[#allocation4 + $0x7a4] sm:$0xf]  ;;  %v9418_v55 = vld [vmem:[#allocation4 + $0xf4] sm:$0xf0] }
  0xe4   :  { %2268 = vmatmul.bf16.vlgmr.msrb.gmra.mxu0 %v10398_v7  ;;  %2281 = vmatmul.bf16.vlgmr.msrb.gmra.mxu1 %v10401_v10  ;;  %v7490_v13 = vor.u32 %v9631_v4, %v7487_v5  ;;  %v9623_v31 = vld [vmem:[#allocation4 + $0x764] sm:$0xf]  ;;  %v7023_v49 = vld [vmem:[#allocation4 + $0x410] sm:$0xf0]  ;;  %v6757_v56 = vld [vmem:[#allocation4 + $0x1e8] sm:$0xf] }
  0xe5   :  { %v629_v16 = vpop.f32.mrf.mxu2  ;;  %v642_v24 = vpop.f32.mrf.mxu3  ;;  %2357 = vmatpush.bf16.msra.mxu3 %v6914_v17  ;;  %v9519_v33 = vld [vmem:[#allocation4 + $0x424] sm:$0xf]  ;;  %v7458_v38 = vor.u32 %v9623_v31, %v7455_v32  ;;  %v7151_v52 = vld [vmem:[#allocation4 + $0x510] sm:$0xf0]  ;;  %v6613_v4 = vld [vmem:[#allocation4 + $0xc8] sm:$0xf] }
  0xe6   :  { %v630_v22 = vadd.f32 %v629_v16, %v212_v2  ;;  %v605_v3 = vpop.f32.mrf.mxu0  ;;  %v643_v28 = vadd.f32 %v642_v24, %v213_v8  ;;  %2364 = vmatpush.bf16.msrb.mxu0 %v7138_v9  ;;  %v618_v29 = vpop.f32.mrf.mxu1  ;;  %2344 = vmatpush.bf16.msra.mxu2 %v6786_v12  ;;  %v7218_v2 = vor.u32 %v9563_v58, %v7215_v59  ;;  %v7071_v8 = vld [vmem:[#allocation4 + $0x470] sm:$0xf0]  ;;  %v9559_v9 = vld [vmem:[#allocation4 + $0x564] sm:$0xf]  ;;  %v6869_v31 = vld [vmem:[#allocation4 + $0x2c8] sm:$0xf] }
  0xe7   :  { %2377 = vmatpush.bf16.msrb.mxu1 %v7266_v11  ;;  %v7199_v11 = vld [vmem:[#allocation4 + $0x570] sm:$0xf0]  ;;  %v7362_v12 = vor.u32 %v9599_v0, %v7359_v1  ;;  %v7074_v16 = vor.u32 %v9527_v6, %v7071_v8  ;;  %v9555_v24 = vld [vmem:[#allocation4 + $0x544] sm:$0xf]  ;;  %v9414_v6 = vld [vmem:[#allocation4 + $0xd4] sm:$0xf0] }
  0xe8   :  { %v652_v34 = vmax.f32 %v630_v22, 0.0  ;;  %v653_v39 = vmax.f32 %v643_v28, 0.0  ;;  %v7202_v17 = vor.u32 %v9559_v9, %v7199_v11  ;;  %v7055_v22 = vld [vmem:[#allocation4 + $0x450] sm:$0xf0]  ;;  %v9547_v50 = vld [vmem:[#allocation4 + $0x504] sm:$0xf]  ;;  %v6614_v19 = vor.u32 %v9414_v6, %v6613_v4 }
  0xe9   :  { %2358 = vmatpush.bf16.msra.mxu3 %v6898_v40  ;;  %v7183_v3 = vld [vmem:[#allocation4 + $0x550] sm:$0xf0]  ;;  %v7058_v29 = vor.u32 %v9523_v21, %v7055_v22  ;;  %v9583_v59 = vld [vmem:[#allocation4 + $0x624] sm:$0xf]  ;;  %v6741_v8 = vld [vmem:[#allocation4 + $0x1c8] sm:$0xf] }
  0xea   :  { %v10405_v48 = vpack.c.bf16 %v652_v34, %v652_v34  ;;  %v10407_v45 = vpack.c.bf16 %v653_v39, %v653_v39  ;;  %2365 = vmatpush.bf16.msrb.mxu0 %v7122_v30  ;;  %2345 = vmatpush.bf16.msra.mxu2 %v6770_v36  ;;  %v7327_v28 = vld [vmem:[#allocation4 + $0x670] sm:$0xf0]  ;;  %v7186_v30 = vor.u32 %v9555_v24, %v7183_v3  ;;  %v9587_v39 = vld [vmem:[#allocation4 + $0x644] sm:$0xf]  ;;  %v9446_v9 = vld [vmem:[#allocation4 + $0x1d4] sm:$0xf0] }
  0xeb   :  { %2378 = vmatpush.bf16.msrb.mxu1 %v7250_v35  ;;  %v7039_v34 = vld [vmem:[#allocation4 + $0x430] sm:$0xf0]  ;;  %v9551_v35 = vld [vmem:[#allocation4 + $0x524] sm:$0xf]  ;;  %v7330_v37 = vor.u32 %v9591_v27, %v7327_v28  ;;  %v6742_v20 = vor.u32 %v9446_v9, %v6741_v8  ;;  %v7013_v21 = vld [vmem:[#allocation4 + $0x3e8] sm:$0xf]  ;;  %v7410_v28 = vor.u32 %v9611_v14, %v7407_v15 }
  0xec   :  { %2294 = vmatmul.bf16.vlgmr.msrb.gmra.mxu2 %v10405_v48  ;;  %2307 = vmatmul.bf16.vlgmr.msrb.gmra.mxu3 %v10407_v45  ;;  %v7167_v36 = vld [vmem:[#allocation4 + $0x530] sm:$0xf0]  ;;  %v7042_v42 = vor.u32 %v9519_v33, %v7039_v34  ;;  %v9514_v22 = vld [vmem:[#allocation4 + $0x3f4] sm:$0xf0]  ;;  %v6597_v24 = vld [vmem:[#allocation4 + $0xa8] sm:$0xf] }
  0xed   :  { %v631_v57 = vpop.f32.mrf.mxu2  ;;  %v644_v60 = vpop.f32.mrf.mxu3  ;;  %2403 = vmatpush.bf16.msrb.mxu3 %v7522_v46  ;;  %v7311_v40 = vld [vmem:[#allocation4 + $0x650] sm:$0xf0]  ;;  %v9442_v27 = vld [vmem:[#allocation4 + $0x1b4] sm:$0xf0]  ;;  %v6677_v4 = vld [vmem:[#allocation4 + $0x148] sm:$0xf] }
  0xee   :  { %2390 = vmatpush.bf16.msrb.mxu2 %v7394_v43  ;;  %2366 = vmatpush.bf16.msrb.mxu0 %v7106_v47  ;;  %v7170_v43 = vor.u32 %v9551_v35, %v7167_v36  ;;  %v7439_v46 = vld [vmem:[#allocation4 + $0x750] sm:$0xf0]  ;;  %v9515_v47 = vld [vmem:[#allocation4 + $0x404] sm:$0xf]  ;;  %v7314_v54 = vor.u32 %v9587_v39, %v7311_v40  ;;  %v9450_v57 = vld [vmem:[#allocation4 + $0x1f4] sm:$0xf0] }
  0xef   :  { %2379 = vmatpush.bf16.msrb.mxu1 %v7234_v53  ;;  %v6629_v53 = vld [vmem:[#allocation4 + $0xe8] sm:$0xf]  ;;  %v7442_v58 = vor.u32 %v9619_v41, %v7439_v46  ;;  %v7295_v60 = vld [vmem:[#allocation4 + $0x630] sm:$0xf0]  ;;  %v9478_v32 = vld [vmem:[#allocation4 + $0x2d4] sm:$0xf0] }
  0xf0   :  { %v7423_v0 = vld [vmem:[#allocation4 + $0x730] sm:$0xf0]  ;;  %v6630_v1 = vor.u32 %v9418_v55, %v6629_v53  ;;  %v7298_v5 = vor.u32 %v9583_v59, %v7295_v60  ;;  %v6997_v35 = vld [vmem:[#allocation4 + $0x3c8] sm:$0xf]  ;;  %v9510_v36 = vld [vmem:[#allocation4 + $0x3d4] sm:$0xf0]  ;;  %v6870_v41 = vor.u32 %v9478_v32, %v6869_v31 }
  0xf1   :  { %2404 = vmatpush.bf16.msrb.mxu3 %v7506_v62  ;;  %v7154_v62 = vor.u32 %v9547_v50, %v7151_v52  ;;  %v6709_v39 = vld [vmem:[#allocation4 + $0x188] sm:$0xf]  ;;  %v9438_v40 = vld [vmem:[#allocation4 + $0x194] sm:$0xf0] }
  0xf2   :  { %2391 = vmatpush.bf16.msrb.mxu2 %v7378_v61  ;;  %2367 = vmatpush.bf16.msrb.mxu0 %v7090_v63  ;;  %v7026_v61 = vor.u32 %v9515_v47, %v7023_v49  ;;  %v9615_v63 = vld [vmem:[#allocation4 + $0x724] sm:$0xf]  ;;  %v9474_v46 = vld [vmem:[#allocation4 + $0x2b4] sm:$0xf0]  ;;  %v6710_v49 = vor.u32 %v9438_v40, %v6709_v39  ;;  %v6981_v50 = vld [vmem:[#allocation4 + $0x3a8] sm:$0xf] }
  0xf3   :  { %2380 = vmatpush.bf16.msrb.mxu1 %v7218_v2  ;;  %v6758_v2 = vor.u32 %v9450_v57, %v6757_v56  ;;  %v7426_v11 = vor.u32 %v9615_v63, %v7423_v0  ;;  %v9506_v52 = vld [vmem:[#allocation4 + $0x3b4] sm:$0xf0]  ;;  %v6565_v53 = vld [vmem:[#allocation4 + $0x68] sm:$0xf] }
  0xf4   :  { %2320 = vmatmul.bf16.vlgmr.msra.gmra.mxu0 %v10382_v18  ;;  %2333 = vmatmul.bf16.vlgmr.msra.gmra.mxu1 %v10385_v23  ;;  %v6693_v55 = vld [vmem:[#allocation4 + $0x168] sm:$0xf]  ;;  %v9434_v56 = vld [vmem:[#allocation4 + $0x174] sm:$0xf0] }
  0xf5   :  { %2405 = vmatpush.bf16.msrb.mxu3 %v7490_v13  ;;  %v7279_v13 = vld [vmem:[#allocation4 + $0x610] sm:$0xf0]  ;;  %v6837_v59 = vld [vmem:[#allocation4 + $0x288] sm:$0xf]  ;;  %v9470_v60 = vld [vmem:[#allocation4 + $0x294] sm:$0xf0] }
  0xf6   :  { %2392 = vmatpush.bf16.msrb.mxu2 %v7362_v12  ;;  %2368 = vmatpush.bf16.msrb.mxu0 %v7074_v16  ;;  %v9579_v12 = vld [vmem:[#allocation4 + $0x604] sm:$0xf]  ;;  %v6885_v16 = vld [vmem:[#allocation4 + $0x2e8] sm:$0xf]  ;;  %v9502_v0 = vld [vmem:[#allocation4 + $0x394] sm:$0xf0]  ;;  %v6838_v6 = vor.u32 %v9470_v60, %v6837_v59 }
  0xf7   :  { %2381 = vmatpush.bf16.msrb.mxu1 %v7202_v17  ;;  %v9482_v17 = vld [vmem:[#allocation4 + $0x2f4] sm:$0xf0]  ;;  %v7282_v3 = vor.u32 %v9579_v12, %v7279_v13  ;;  %v6965_v63 = vld [vmem:[#allocation4 + $0x388] sm:$0xf] }
  0xf8   :  { %v6966_v8 = vor.u32 %v9502_v0, %v6965_v63  ;;  %v6821_v9 = vld [vmem:[#allocation4 + $0x268] sm:$0xf]  ;;  %v9498_v15 = vld [vmem:[#allocation4 + $0x374] sm:$0xf0] }
  0xf9   :  { %2406 = vmatpush.bf16.msrb.mxu3 %v7474_v26  ;;  %v6725_v26 = vld [vmem:[#allocation4 + $0x1a8] sm:$0xf]  ;;  %v9422_v32 = vld [vmem:[#allocation4 + $0x114] sm:$0xf0] }
  0xfa   :  { %2393 = vmatpush.bf16.msrb.mxu2 %v7346_v25  ;;  %2369 = vmatpush.bf16.msrb.mxu0 %v7058_v29  ;;  %v9410_v25 = vld [vmem:[#allocation4 + $0xb4] sm:$0xf0]  ;;  %v6886_v29 = vor.u32 %v9482_v17, %v6885_v16  ;;  %v6726_v34 = vor.u32 %v9442_v27, %v6725_v26  ;;  %v6949_v14 = vld [vmem:[#allocation4 + $0x368] sm:$0xf] }
  0xfb   :  { %2382 = vmatpush.bf16.msrb.mxu1 %v7186_v30  ;;  %v7014_v30 = vor.u32 %v9514_v22, %v7013_v21  ;;  %v6598_v33 = vor.u32 %v9410_v25, %v6597_v24  ;;  %v6533_v16 = vld [vmem:[#allocation4 + $0x28] sm:$0xf]  ;;  %v9394_v17 = vld [vmem:[#allocation4 + $0x34] sm:$0xf0]  ;;  %v6950_v22 = vor.u32 %v9498_v15, %v6949_v14 }
  0xfc   :  { %2346 = vmatmul.bf16.vlgmr.msra.gmra.mxu2 %v10389_v44  ;;  %2359 = vmatmul.bf16.vlgmr.msra.gmra.mxu3 %v10391_v51  ;;  %v6805_v24 = vld [vmem:[#allocation4 + $0x248] sm:$0xf]  ;;  %v6534_v26 = vor.u32 %v9394_v17, %v6533_v16  ;;  %v9458_v40 = vld [vmem:[#allocation4 + $0x234] sm:$0xf0] }
  0xfd   :  { %2407 = vmatpush.bf16.msrb.mxu3 %v7458_v38  ;;  %v9406_v38 = vld [vmem:[#allocation4 + $0x94] sm:$0xf0]  ;;  %v6933_v25 = vld [vmem:[#allocation4 + $0x348] sm:$0xf] }
  0xfe   :  { %2394 = vmatpush.bf16.msrb.mxu2 %v7330_v37  ;;  %2370 = vmatpush.bf16.msrb.mxu0 %v7042_v42  ;;  %v6581_v37 = vld [vmem:[#allocation4 + $0x88] sm:$0xf]  ;;  %v6998_v42 = vor.u32 %v9510_v36, %v6997_v35  ;;  %v9546_v35 = vld [vmem:[#allocation4 + $0x4f4] sm:$0xf0] }
  0xff   :  { %2383 = vmatpush.bf16.msrb.mxu1 %v7170_v43  ;;  %v6853_v43 = vld [vmem:[#allocation4 + $0x2a8] sm:$0xf]  ;;  %v6582_v47 = vor.u32 %v9406_v38, %v6581_v37  ;;  %v9578_v37 = vld [vmem:[#allocation4 + $0x5f4] sm:$0xf0] }
 0x100   :  { %v6854_v57 = vor.u32 %v9474_v46, %v6853_v43  ;;  %v6645_v31 = vld [vmem:[#allocation4 + $0x108] sm:$0xf]  ;;  %v9490_v46 = vld [vmem:[#allocation4 + $0x334] sm:$0xf0] }
 0x101   :  { %2408 = vmatpush.bf16.msrb.mxu3 %v7442_v58  ;;  %v6982_v58 = vor.u32 %v9506_v52, %v6981_v50  ;;  %v7269_v36 = vld [vmem:[#allocation4 + $0x5e8] sm:$0xf]  ;;  %v9486_v60 = vld [vmem:[#allocation4 + $0x314] sm:$0xf0] }
 0x102   :  { %2395 = vmatpush.bf16.msrb.mxu2 %v7314_v54  ;;  %2371 = vmatpush.bf16.msrb.mxu0 %v7026_v61  ;;  %v9402_v54 = vld [vmem:[#allocation4 + $0x74] sm:$0xf0]  ;;  %v6789_v39 = vld [vmem:[#allocation4 + $0x228] sm:$0xf] }
 0x103   :  { %2384 = vmatpush.bf16.msrb.mxu1 %v7154_v62  ;;  %v6566_v61 = vor.u32 %v9402_v54, %v6565_v53  ;;  %v6694_v62 = vor.u32 %v9434_v56, %v6693_v55  ;;  %v6917_v43 = vld [vmem:[#allocation4 + $0x328] sm:$0xf]  ;;  %v6790_v52 = vor.u32 %v9458_v40, %v6789_v39  ;;  %v9542_v53 = vld [vmem:[#allocation4 + $0x4d4] sm:$0xf0] }
 0x104   :  { %v7125_v50 = vld [vmem:[#allocation4 + $0x4c8] sm:$0xf]  ;;  %v9574_v55 = vld [vmem:[#allocation4 + $0x5d4] sm:$0xf0]  ;;  %v6918_v56 = vor.u32 %v9490_v46, %v6917_v43 }
 0x105   :  { %2409 = vmatpush.bf16.msrb.mxu3 %v7426_v11  ;;  %2372 = vmatmul.bf16.vlgmr.msrb.gmra.mxu0 %v10398_v7  ;;  %v9466_v11 = vld [vmem:[#allocation4 + $0x274] sm:$0xf0]  ;;  %v7253_v54 = vld [vmem:[#allocation4 + $0x5c8] sm:$0xf]  ;;  %v7126_v63 = vor.u32 %v9542_v53, %v7125_v50 }
 0x106   :  { %2416 = vmatpush.bf16.msra.mxu0 %v6630_v1  ;;  %2396 = vmatpush.bf16.msrb.mxu2 %v7298_v5  ;;  %v6549_v1 = vld [vmem:[#allocation4 + $0x48] sm:$0xf]  ;;  %v9430_v5 = vld [vmem:[#allocation4 + $0x154] sm:$0xf0]  ;;  %v6822_v21 = vor.u32 %v9466_v11, %v6821_v9  ;;  %v7254_v0 = vor.u32 %v9574_v55, %v7253_v54 }
 0x107   :  { %2429 = vmatpush.bf16.msra.mxu1 %v6758_v2  ;;  %v9398_v2 = vld [vmem:[#allocation4 + $0x54] sm:$0xf0]  ;;  %v6678_v13 = vor.u32 %v9430_v5, %v6677_v4  ;;  %v6901_v59 = vld [vmem:[#allocation4 + $0x308] sm:$0xf] }
 0x108   :  { %2385 = vmatmul.bf16.vlgmr.msrb.gmra.mxu1 %v10401_v10  ;;  %v6550_v12 = vor.u32 %v9398_v2, %v6549_v1  ;;  %v7525_v1 = vld [vmem:[#allocation4 + $0x7e8] sm:$0xf]  ;;  %v9642_v2 = vld [vmem:[#allocation4 + $0x7f4] sm:$0xf0] }
 0x109   :  { %2410 = vmatpush.bf16.msrb.mxu3 %v7410_v28  ;;  %v9494_v28 = vld [vmem:[#allocation4 + $0x354] sm:$0xf0]  ;;  %v7109_v5 = vld [vmem:[#allocation4 + $0x4a8] sm:$0xf] }
 0x10a   :  { %2417 = vmatpush.bf16.msra.mxu0 %v6614_v19  ;;  %2397 = vmatpush.bf16.msrb.mxu2 %v7282_v3  ;;  %v6661_v19 = vld [vmem:[#allocation4 + $0x128] sm:$0xf]  ;;  %v9462_v3 = vld [vmem:[#allocation4 + $0x254] sm:$0xf0]  ;;  %v6934_v38 = vor.u32 %v9494_v28, %v6933_v25 }
 0x10b   :  { %2430 = vmatpush.bf16.msra.mxu1 %v6742_v20  ;;  %v9426_v20 = vld [vmem:[#allocation4 + $0x134] sm:$0xf0]  ;;  %v7237_v11 = vld [vmem:[#allocation4 + $0x5a8] sm:$0xf] }
 0x10c   :  { %2411 = vmatmul.bf16.vlgmr.msrb.gmra.mxu3 %v10407_v45  ;;  %v6662_v27 = vor.u32 %v9426_v20, %v6661_v19  ;;  %v7381_v14 = vld [vmem:[#allocation4 + $0x6c8] sm:$0xf]  ;;  %v9606_v15 = vld [vmem:[#allocation4 + $0x6d4] sm:$0xf0] }
 0x10d   :  { %2455 = vmatpush.bf16.msra.mxu3 %v7014_v30  ;;  %2398 = vmatmul.bf16.vlgmr.msrb.gmra.mxu2 %v10405_v48  ;;  %v9390_v30 = vld [vmem:[#allocation4 + $0x14] sm:$0xf0]  ;;  %v7509_v17 = vld [vmem:[#allocation4 + $0x7c8] sm:$0xf] }
 0x10e   :  { %2442 = vmatpush.bf16.msra.mxu2 %v6886_v29  ;;  %2418 = vmatpush.bf16.msra.mxu0 %v6598_v33  ;;  %v6517_v29 = vld [vmem:[#allocation4 + $0x8] sm:$0xf]  ;;  %v9638_v19 = vld [vmem:[#allocation4 + $0x7d4] sm:$0xf0] }
 0x10f   :  { %2431 = vmatpush.bf16.msra.mxu1 %v6726_v34  ;;  %v7141_v33 = vld [vmem:[#allocation4 + $0x4e8] sm:$0xf]  ;;  %v6806_v34 = vor.u32 %v9462_v3, %v6805_v24  ;;  %v7382_v24 = vor.u32 %v9606_v15, %v7381_v14  ;;  %v9566_v25 = vld [vmem:[#allocation4 + $0x594] sm:$0xf0] }
 0x110   :  { %v7221_v3 = vld [vmem:[#allocation4 + $0x588] sm:$0xf]  ;;  %v9602_v28 = vld [vmem:[#allocation4 + $0x6b4] sm:$0xf0] }
 0x111   :  { %2456 = vmatpush.bf16.msra.mxu3 %v6998_v42  ;;  %v6646_v42 = vor.u32 %v9422_v32, %v6645_v31  ;;  %v9634_v31 = vld [vmem:[#allocation4 + $0x7b4] sm:$0xf0]  ;;  %v7222_v32 = vor.u32 %v9566_v25, %v7221_v3  ;;  %v7349_v39 = vld [vmem:[#allocation4 + $0x688] sm:$0xf] }
 0x112   :  { %2443 = vmatpush.bf16.msra.mxu2 %v6870_v41  ;;  %2419 = vmatpush.bf16.msra.mxu0 %v6582_v47  ;;  %v6518_v41 = vor.u32 %v9390_v30, %v6517_v29  ;;  %v7142_v47 = vor.u32 %v9546_v35, %v7141_v33  ;;  %v7493_v30 = vld [vmem:[#allocation4 + $0x7a8] sm:$0xf]  ;;  %v9598_v40 = vld [vmem:[#allocation4 + $0x694] sm:$0xf0] }
 0x113   :  { %2432 = vmatpush.bf16.msra.mxu1 %v6710_v49  ;;  %v7270_v49 = vor.u32 %v9578_v37, %v7269_v36  ;;  %v7077_v33 = vld [vmem:[#allocation4 + $0x468] sm:$0xf]  ;;  %v9562_v37 = vld [vmem:[#allocation4 + $0x574] sm:$0xf0]  ;;  %v7350_v50 = vor.u32 %v9598_v40, %v7349_v39 }
 0x114   :  { %v7205_v36 = vld [vmem:[#allocation4 + $0x568] sm:$0xf]  ;;  %v9630_v43 = vld [vmem:[#allocation4 + $0x794] sm:$0xf0] }
 0x115   :  { %2457 = vmatpush.bf16.msra.mxu3 %v6982_v58  ;;  %v9454_v58 = vld [vmem:[#allocation4 + $0x214] sm:$0xf0]  ;;  %v7206_v46 = vor.u32 %v9562_v37, %v7205_v36  ;;  %v7333_v55 = vld [vmem:[#allocation4 + $0x668] sm:$0xf] }
 0x116   :  { %2444 = vmatpush.bf16.msra.mxu2 %v6854_v57  ;;  %2420 = vmatpush.bf16.msra.mxu0 %v6566_v61  ;;  %v6773_v57 = vld [vmem:[#allocation4 + $0x208] sm:$0xf]  ;;  %v9558_v53 = vld [vmem:[#allocation4 + $0x554] sm:$0xf0] }
 0x117   :  { %2433 = vmatpush.bf16.msra.mxu1 %v6694_v62  ;;  %v7397_v61 = vld [vmem:[#allocation4 + $0x6e8] sm:$0xf]  ;;  %v9610_v62 = vld [vmem:[#allocation4 + $0x6f4] sm:$0xf0]  ;;  %v6774_v4 = vor.u32 %v9454_v58, %v6773_v57 }
 0x118   :  { %v7398_v9 = vor.u32 %v9610_v62, %v7397_v61  ;;  %v7461_v58 = vld [vmem:[#allocation4 + $0x768] sm:$0xf]  ;;  %v9522_v62 = vld [vmem:[#allocation4 + $0x434] sm:$0xf0] }
 0x119   :  { %2458 = vmatpush.bf16.msra.mxu3 %v6966_v8  ;;  %v6902_v8 = vor.u32 %v9486_v60, %v6901_v59  ;;  %v9626_v59 = vld [vmem:[#allocation4 + $0x774] sm:$0xf0]  ;;  %v7045_v61 = vld [vmem:[#allocation4 + $0x428] sm:$0xf] }
 0x11a   :  { %2445 = vmatpush.bf16.msra.mxu2 %v6838_v6  ;;  %2421 = vmatpush.bf16.msra.mxu0 %v6550_v12  ;;  %v9538_v6 = vld [vmem:[#allocation4 + $0x4b4] sm:$0xf0]  ;;  %v7157_v14 = vld [vmem:[#allocation4 + $0x508] sm:$0xf] }
 0x11b   :  { %2434 = vmatpush.bf16.msra.mxu1 %v6678_v13  ;;  %v9570_v12 = vld [vmem:[#allocation4 + $0x5b4] sm:$0xf0]  ;;  %v7526_v13 = vor.u32 %v9642_v2, %v7525_v1  ;;  %v7110_v16 = vor.u32 %v9538_v6, %v7109_v5  ;;  %v7462_v2 = vor.u32 %v9626_v59, %v7461_v58  ;;  %v7046_v6 = vor.u32 %v9522_v62, %v7045_v61  ;;  %v7285_v37 = vld [vmem:[#allocation4 + $0x608] sm:$0xf]  ;;  %v9476_v59 = vld [vmem:[#allocation4 + $0x2cc] sm:$0xf] }
 0x11c   :  { %v7238_v20 = vor.u32 %v9570_v12, %v7237_v11  ;;  %v9554_v1 = vld [vmem:[#allocation4 + $0x534] sm:$0xf0]  ;;  %v7029_v11 = vld [vmem:[#allocation4 + $0x408] sm:$0xf]  ;;  %v9508_v62 = vld [vmem:[#allocation4 + $0x3cc] sm:$0xf] }
 0x11d   :  { %2459 = vmatpush.bf16.msra.mxu3 %v6950_v22  ;;  %v9534_v22 = vld [vmem:[#allocation4 + $0x494] sm:$0xf0]  ;;  %v7413_v39 = vld [vmem:[#allocation4 + $0x708] sm:$0xf] }
 0x11e   :  { %2446 = vmatpush.bf16.msra.mxu2 %v6822_v21  ;;  %2422 = vmatpush.bf16.msra.mxu0 %v6534_v26  ;;  %v7093_v21 = vld [vmem:[#allocation4 + $0x488] sm:$0xf]  ;;  %v7510_v26 = vor.u32 %v9638_v19, %v7509_v17  ;;  %v9590_v5 = vld [vmem:[#allocation4 + $0x654] sm:$0xf0]  ;;  %v9416_v17 = vld [vmem:[#allocation4 + $0xec] sm:$0xf] }
 0x11f   :  { %2435 = vmatpush.bf16.msra.mxu1 %v6662_v27  ;;  %v7365_v27 = vld [vmem:[#allocation4 + $0x6a8] sm:$0xf]  ;;  %v7094_v29 = vor.u32 %v9534_v22, %v7093_v21  ;;  %v9550_v15 = vld [vmem:[#allocation4 + $0x514] sm:$0xf0]  ;;  %v6631_v19 = vld [vmem:[#allocation4 + $0xf8] sm:$0xf0] }
 0x120   :  { %v7366_v35 = vor.u32 %v9602_v28, %v7365_v27  ;;  %v6759_v22 = vld [vmem:[#allocation4 + $0x1f8] sm:$0xf0]  ;;  %v9586_v3 = vld [vmem:[#allocation4 + $0x634] sm:$0xf0]  ;;  %v7158_v28 = vor.u32 %v9550_v15, %v7157_v14  ;;  %v9504_v15 = vld [vmem:[#allocation4 + $0x3ac] sm:$0xf] }
 0x121   :  { %2460 = vmatpush.bf16.msra.mxu3 %v6934_v38  ;;  %v7494_v38 = vor.u32 %v9634_v31, %v7493_v30  ;;  %v9618_v27 = vld [vmem:[#allocation4 + $0x734] sm:$0xf0]  ;;  %v9412_v30 = vld [vmem:[#allocation4 + $0xcc] sm:$0xf] }
 0x122   :  { %2447 = vmatpush.bf16.msra.mxu2 %v6806_v34  ;;  %2423 = vmatpush.bf16.msra.mxu0 %v6518_v41  ;;  %v9530_v34 = vld [vmem:[#allocation4 + $0x474] sm:$0xf0] }
 0x123   :  { %2436 = vmatpush.bf16.msra.mxu1 %v6646_v42  ;;  %v7078_v41 = vor.u32 %v9530_v34, %v7077_v33  ;;  %v7477_v42 = vld [vmem:[#allocation4 + $0x788] sm:$0xf]  ;;  %v6615_v33 = vld [vmem:[#allocation4 + $0xd8] sm:$0xf0]  ;;  %v9444_v34 = vld [vmem:[#allocation4 + $0x1cc] sm:$0xf] }
 0x124   :  { %v7478_v54 = vor.u32 %v9630_v43, %v7477_v42  ;;  %v9614_v40 = vld [vmem:[#allocation4 + $0x714] sm:$0xf0]  ;;  %v6887_v42 = vld [vmem:[#allocation4 + $0x2f8] sm:$0xf0]  ;;  %v6618_v43 = vor.u32 %v9412_v30, %v6615_v33 }
 0x125   :  { %2461 = vmatpush.bf16.msra.mxu3 %v6918_v56  ;;  %2424 = vmatmul.bf16.vlgmr.msra.gmra.mxu0 %v10382_v18  ;;  %v9594_v56 = vld [vmem:[#allocation4 + $0x674] sm:$0xf0] }
 0x126   :  { %2468 = vmatpush.bf16.msrb.mxu0 %v7142_v47  ;;  %2448 = vmatpush.bf16.msra.mxu2 %v6790_v52  ;;  %v7061_v47 = vld [vmem:[#allocation4 + $0x448] sm:$0xf] }
 0x127   :  { %2481 = vmatpush.bf16.msrb.mxu1 %v7270_v49  ;;  %v9526_v49 = vld [vmem:[#allocation4 + $0x454] sm:$0xf0]  ;;  %v7189_v52 = vld [vmem:[#allocation4 + $0x548] sm:$0xf] }
 0x128   :  { %2437 = vmatmul.bf16.vlgmr.msra.gmra.mxu1 %v10385_v23  ;;  %v7062_v57 = vor.u32 %v9526_v49, %v7061_v47  ;;  %v7190_v60 = vor.u32 %v9558_v53, %v7189_v52  ;;  %v7015_v47 = vld [vmem:[#allocation4 + $0x3f8] sm:$0xf0]  ;;  %v9408_v52 = vld [vmem:[#allocation4 + $0xac] sm:$0xf] }
 0x129   :  { %2462 = vmatpush.bf16.msra.mxu3 %v6902_v8  ;;  %v7445_v8 = vld [vmem:[#allocation4 + $0x748] sm:$0xf]  ;;  %v6599_v53 = vld [vmem:[#allocation4 + $0xb8] sm:$0xf0] }
 0x12a   :  { %2469 = vmatpush.bf16.msrb.mxu0 %v7126_v63  ;;  %2449 = vmatpush.bf16.msra.mxu2 %v6774_v4  ;;  %v7334_v63 = vor.u32 %v9594_v56, %v7333_v55  ;;  %v7317_v4 = vld [vmem:[#allocation4 + $0x648] sm:$0xf]  ;;  %v9440_v56 = vld [vmem:[#allocation4 + $0x1ac] sm:$0xf]  ;;  %v6602_v61 = vor.u32 %v9408_v52, %v6599_v53  ;;  %v6663_v53 = vld [vmem:[#allocation4 + $0x138] sm:$0xf0] }
 0x12b   :  { %2482 = vmatpush.bf16.msrb.mxu1 %v7254_v0  ;;  %v7173_v0 = vld [vmem:[#allocation4 + $0x528] sm:$0xf]  ;;  %v9424_v52 = vld [vmem:[#allocation4 + $0x12c] sm:$0xf] }
 0x12c   :  { %2463 = vmatmul.bf16.vlgmr.msra.gmra.mxu3 %v10391_v51  ;;  %v7174_v12 = vor.u32 %v9554_v1, %v7173_v0  ;;  %v9404_v1 = vld [vmem:[#allocation4 + $0x8c] sm:$0xf] }
 0x12d   :  { %2507 = vmatpush.bf16.msrb.mxu3 %v7526_v13  ;;  %2450 = vmatmul.bf16.vlgmr.msra.gmra.mxu2 %v10389_v44  ;;  %v9518_v13 = vld [vmem:[#allocation4 + $0x414] sm:$0xf0] }
 0x12e   :  { %2494 = vmatpush.bf16.msrb.mxu2 %v7398_v9  ;;  %2470 = vmatpush.bf16.msrb.mxu0 %v7110_v16  ;;  %v9622_v9 = vld [vmem:[#allocation4 + $0x754] sm:$0xf0]  ;;  %v7318_v16 = vor.u32 %v9590_v5, %v7317_v4  ;;  %v7030_v25 = vor.u32 %v9518_v13, %v7029_v11  ;;  %v6855_v13 = vld [vmem:[#allocation4 + $0x2b8] sm:$0xf0] }
 0x12f   :  { %2483 = vmatpush.bf16.msrb.mxu1 %v7238_v20  ;;  %v9448_v20 = vld [vmem:[#allocation4 + $0x1ec] sm:$0xf]  ;;  %v7446_v21 = vor.u32 %v9622_v9, %v7445_v8  ;;  %v6711_v8 = vld [vmem:[#allocation4 + $0x198] sm:$0xf0] }
 0x130   :  { %v6762_v31 = vor.u32 %v9448_v20, %v6759_v22  ;;  %v6567_v20 = vld [vmem:[#allocation4 + $0x78] sm:$0xf0]  ;;  %v9432_v22 = vld [vmem:[#allocation4 + $0x16c] sm:$0xf] }
 0x131   :  { %2508 = vmatpush.bf16.msrb.mxu3 %v7510_v26  ;;  %v7429_v26 = vld [vmem:[#allocation4 + $0x728] sm:$0xf] }
 0x132   :  { %2495 = vmatpush.bf16.msrb.mxu2 %v7382_v24  ;;  %2471 = vmatpush.bf16.msrb.mxu0 %v7094_v29  ;;  %v7301_v24 = vld [vmem:[#allocation4 + $0x628] sm:$0xf]  ;;  %v6634_v29 = vor.u32 %v9416_v17, %v6631_v19  ;;  %v7430_v36 = vor.u32 %v9618_v27, %v7429_v26  ;;  %v9400_v19 = vld [vmem:[#allocation4 + $0x6c] sm:$0xf]  ;;  %v6839_v26 = vld [vmem:[#allocation4 + $0x298] sm:$0xf0] }
 0x133   :  { %2484 = vmatpush.bf16.msrb.mxu1 %v7222_v32  ;;  %v7302_v32 = vor.u32 %v9586_v3, %v7301_v24  ;;  %v6695_v24 = vld [vmem:[#allocation4 + $0x178] sm:$0xf0]  ;;  %v6570_v27 = vor.u32 %v9400_v19, %v6567_v20 }
 0x134   :  { %v6698_v30 = vor.u32 %v9432_v22, %v6695_v24  ;;  %v6919_v19 = vld [vmem:[#allocation4 + $0x338] sm:$0xf0]  ;;  %v9540_v22 = vld [vmem:[#allocation4 + $0x4cc] sm:$0xf] }
 0x135   :  { %2509 = vmatpush.bf16.msrb.mxu3 %v7494_v38  ;;  %v9582_v38 = vld [vmem:[#allocation4 + $0x614] sm:$0xf0] }
 0x136   :  { %2496 = vmatpush.bf16.msrb.mxu2 %v7366_v35  ;;  %2472 = vmatpush.bf16.msrb.mxu0 %v7078_v41  ;;  %v6743_v35 = vld [vmem:[#allocation4 + $0x1d8] sm:$0xf0]  ;;  %v9480_v41 = vld [vmem:[#allocation4 + $0x2ec] sm:$0xf] }
 0x137   :  { %2485 = vmatpush.bf16.msrb.mxu1 %v7206_v46  ;;  %v9512_v46 = vld [vmem:[#allocation4 + $0x3ec] sm:$0xf]  ;;  %v6746_v49 = vor.u32 %v9444_v34, %v6743_v35  ;;  %v6890_v55 = vor.u32 %v9480_v41, %v6887_v42 }
 0x138   :  { %v7018_v58 = vor.u32 %v9512_v46, %v7015_v47  ;;  %v9428_v35 = vld [vmem:[#allocation4 + $0x14c] sm:$0xf] }
 0x139   :  { %2510 = vmatpush.bf16.msrb.mxu3 %v7478_v54  ;;  %v7414_v54 = vor.u32 %v9614_v40, %v7413_v39  ;;  %v9464_v39 = vld [vmem:[#allocation4 + $0x26c] sm:$0xf]  ;;  %v6823_v40 = vld [vmem:[#allocation4 + $0x278] sm:$0xf0] }
 0x13a   :  { %2497 = vmatpush.bf16.msrb.mxu2 %v7350_v50  ;;  %2473 = vmatpush.bf16.msrb.mxu0 %v7062_v57  ;;  %v7286_v50 = vor.u32 %v9582_v38, %v7285_v37  ;;  %v6727_v57 = vld [vmem:[#allocation4 + $0x1b8] sm:$0xf0]  ;;  %v9496_v42 = vld [vmem:[#allocation4 + $0x36c] sm:$0xf] }
 0x13b   :  { %2486 = vmatpush.bf16.msrb.mxu1 %v7190_v60  ;;  %v6871_v60 = vld [vmem:[#allocation4 + $0x2d8] sm:$0xf0]  ;;  %v6730_v0 = vor.u32 %v9440_v56, %v6727_v57  ;;  %v9392_v47 = vld [vmem:[#allocation4 + $0x2c] sm:$0xf] }
 0x13c   :  { %v6874_v5 = vor.u32 %v9476_v59, %v6871_v60  ;;  %v9460_v56 = vld [vmem:[#allocation4 + $0x24c] sm:$0xf]  ;;  %v6807_v57 = vld [vmem:[#allocation4 + $0x258] sm:$0xf0] }
 0x13d   :  { %2511 = vmatpush.bf16.msrb.mxu3 %v7462_v2  ;;  %v6583_v2 = vld [vmem:[#allocation4 + $0x98] sm:$0xf0]  ;;  %v9492_v60 = vld [vmem:[#allocation4 + $0x34c] sm:$0xf] }
 0x13e   :  { %2498 = vmatpush.bf16.msrb.mxu2 %v7334_v63  ;;  %2474 = vmatpush.bf16.msrb.mxu0 %v7046_v6  ;;  %v6999_v63 = vld [vmem:[#allocation4 + $0x3d8] sm:$0xf0]  ;;  %v9436_v6 = vld [vmem:[#allocation4 + $0x18c] sm:$0xf]  ;;  %v6586_v14 = vor.u32 %v9404_v1, %v6583_v2 }
 0x13f   :  { %2487 = vmatpush.bf16.msrb.mxu1 %v7174_v12  ;;  %v7002_v9 = vor.u32 %v9508_v62, %v6999_v63  ;;  %v9472_v12 = vld [vmem:[#allocation4 + $0x2ac] sm:$0xf]  ;;  %v6714_v17 = vor.u32 %v9436_v6, %v6711_v8  ;;  %v6666_v63 = vor.u32 %v9424_v52, %v6663_v53  ;;  %v6647_v2 = vld [vmem:[#allocation4 + $0x118] sm:$0xf0] }
 0x140   :  { %v9388_v62 = vld [vmem:[#allocation4 + $0xc] sm:$0xf]  ;;  %v7143_v8 = vld [vmem:[#allocation4 + $0x4f8] sm:$0xf0] }
 0x141   :  { %2512 = vmatpush.bf16.msrb.mxu3 %v7446_v21  ;;  %v10425_v4 = vpop.f32.mrf.mxu0  ;;  %v10427_v11 = vpop.f32.mrf.mxu1  ;;  %v6858_v21 = vor.u32 %v9472_v12, %v6855_v13  ;;  %v9420_v1 = vld [vmem:[#allocation4 + $0x10c] sm:$0xf]  ;;  %v7271_v13 = vld [vmem:[#allocation4 + $0x5f8] sm:$0xf0] }
 0x142   :  { %2499 = vmatpush.bf16.msrb.mxu2 %v7318_v16  ;;  %2475 = vmatpush.bf16.msrb.mxu0 %v7030_v25  ;;  %v6983_v16 = vld [vmem:[#allocation4 + $0x3b8] sm:$0xf0]  ;;  %v9468_v25 = vld [vmem:[#allocation4 + $0x28c] sm:$0xf]  ;;  %v6650_v20 = vor.u32 %v9420_v1, %v6647_v2 }
 0x143   :  { %2488 = vmatpush.bf16.msrb.mxu1 %v7158_v28  ;;  %v6986_v3 = vor.u32 %v9504_v15, %v6983_v16  ;;  %v9500_v28 = vld [vmem:[#allocation4 + $0x38c] sm:$0xf]  ;;  %v6842_v34 = vor.u32 %v9468_v25, %v6839_v26  ;;  %v6791_v15 = vld [vmem:[#allocation4 + $0x238] sm:$0xf0] }
 0x144   :  { %v9544_v6 = vld [vmem:[#allocation4 + $0x4ec] sm:$0xf]  ;;  %v7127_v25 = vld [vmem:[#allocation4 + $0x4d8] sm:$0xf0] }
 0x145   :  { %2513 = vmatpush.bf16.msrb.mxu3 %v7430_v36  ;;  %2476 = vmatmul.bf16.vlgmr.msrb.gmra.mxu0 %v10398_v7  ;;  %v6679_v36 = vld [vmem:[#allocation4 + $0x158] sm:$0xf0]  ;;  %v9572_v26 = vld [vmem:[#allocation4 + $0x5cc] sm:$0xf] }
 0x146   :  { %2520 = vmatpush.bf16.msra.mxu0 %v6634_v29  ;;  %2500 = vmatpush.bf16.msrb.mxu2 %v7302_v32  ;;  %v6967_v29 = vld [vmem:[#allocation4 + $0x398] sm:$0xf0]  ;;  %v6682_v46 = vor.u32 %v9428_v35, %v6679_v36  ;;  %v9608_v35 = vld [vmem:[#allocation4 + $0x6ec] sm:$0xf] }
 0x147   :  { %2533 = vmatpush.bf16.msra.mxu1 %v6762_v31  ;;  %v9396_v31 = vld [vmem:[#allocation4 + $0x4c] sm:$0xf]  ;;  %v6551_v32 = vld [vmem:[#allocation4 + $0x58] sm:$0xf0]  ;;  %v6970_v37 = vor.u32 %v9500_v28, %v6967_v29 }
 0x148   :  { %2489 = vmatmul.bf16.vlgmr.msrb.gmra.mxu1 %v10401_v10  ;;  %v6554_v41 = vor.u32 %v9396_v31, %v6551_v32  ;;  %v6775_v31 = vld [vmem:[#allocation4 + $0x218] sm:$0xf0]  ;;  %v9484_v32 = vld [vmem:[#allocation4 + $0x30c] sm:$0xf] }
 0x149   :  { %2514 = vmatpush.bf16.msrb.mxu3 %v7414_v54  ;;  %v2219_v33 = vpop.f32.mrf.mxu0  ;;  %v2232_v38 = vpop.f32.mrf.mxu1  ;;  %v7399_v36 = vld [vmem:[#allocation4 + $0x6f8] sm:$0xf0]  ;;  %v9604_v53 = vld [vmem:[#allocation4 + $0x6cc] sm:$0xf] }
 0x14a   :  { %2521 = vmatpush.bf16.msra.mxu0 %v6618_v43  ;;  %2501 = vmatpush.bf16.msrb.mxu2 %v7286_v50  ;;  %v6951_v43 = vld [vmem:[#allocation4 + $0x378] sm:$0xf0]  ;;  %v6826_v50 = vor.u32 %v9464_v39, %v6823_v40  ;;  %v9640_v38 = vld [vmem:[#allocation4 + $0x7ec] sm:$0xf] }
 0x14b   :  { %2534 = vmatpush.bf16.msra.mxu1 %v6746_v49  ;;  %v6535_v49 = vld [vmem:[#allocation4 + $0x38] sm:$0xf0]  ;;  %v9600_v2 = vld [vmem:[#allocation4 + $0x6ac] sm:$0xf] }
 0x14c   :  { %2515 = vmatmul.bf16.vlgmr.msrb.gmra.mxu3 %v10407_v45  ;;  %v6538_v59 = vor.u32 %v9392_v47, %v6535_v49  ;;  %v7527_v39 = vld [vmem:[#allocation4 + $0x7f8] sm:$0xf0]  ;;  %v7402_v47 = vor.u32 %v9608_v35, %v7399_v36  ;;  %v9568_v49 = vld [vmem:[#allocation4 + $0x5ac] sm:$0xf] }
 0x14d   :  { %2559 = vmatpush.bf16.msra.mxu3 %v7018_v58  ;;  %2502 = vmatmul.bf16.vlgmr.msrb.gmra.mxu2 %v10405_v48  ;;  %v7530_v52 = vor.u32 %v9640_v38, %v7527_v39  ;;  %v7463_v38 = vld [vmem:[#allocation4 + $0x778] sm:$0xf0] }
 0x14e   :  { %2546 = vmatpush.bf16.msra.mxu2 %v6890_v55  ;;  %2522 = vmatpush.bf16.msra.mxu0 %v6602_v61  ;;  %v6954_v55 = vor.u32 %v9496_v42, %v6951_v43  ;;  %v6935_v61 = vld [vmem:[#allocation4 + $0x358] sm:$0xf0]  ;;  %v9536_v42 = vld [vmem:[#allocation4 + $0x4ac] sm:$0xf] }
 0x14f   :  { %2535 = vmatpush.bf16.msra.mxu1 %v6730_v0  ;;  %v10433_v58 = vpop.f32.mrf.mxu3  ;;  %v6519_v0 = vld [vmem:[#allocation4 + $0x18] sm:$0xf0]  ;;  %v6938_v12 = vor.u32 %v9492_v60, %v6935_v61  ;;  %v9532_v61 = vld [vmem:[#allocation4 + $0x48c] sm:$0xf] }
 0x150   :  { %v10431_v54 = vpop.f32.mrf.mxu2  ;;  %v6522_v16 = vor.u32 %v9388_v62, %v6519_v0  ;;  %v7111_v43 = vld [vmem:[#allocation4 + $0x4b8] sm:$0xf0] }
 0x151   :  { %2560 = vmatpush.bf16.msra.mxu3 %v7002_v9  ;;  %v9576_v9 = vld [vmem:[#allocation4 + $0x5ec] sm:$0xf]  ;;  %v7095_v62 = vld [vmem:[#allocation4 + $0x498] sm:$0xf0] }
 0x152   :  { %2547 = vmatpush.bf16.msra.mxu2 %v6874_v5  ;;  %2523 = vmatpush.bf16.msra.mxu0 %v6586_v14  ;;  %v6810_v5 = vor.u32 %v9460_v56, %v6807_v57  ;;  %v9456_v14 = vld [vmem:[#allocation4 + $0x22c] sm:$0xf]  ;;  %v7274_v24 = vor.u32 %v9576_v9, %v7271_v13  ;;  %v7114_v56 = vor.u32 %v9536_v42, %v7111_v43  ;;  %v7223_v0 = vld [vmem:[#allocation4 + $0x598] sm:$0xf0] }
 0x153   :  { %2536 = vmatpush.bf16.msra.mxu1 %v6714_v17  ;;  %v9488_v17 = vld [vmem:[#allocation4 + $0x32c] sm:$0xf] }
 0x154   :  { %v6922_v29 = vor.u32 %v9488_v17, %v6919_v19  ;;  %v9636_v57 = vld [vmem:[#allocation4 + $0x7cc] sm:$0xf]  ;;  %v7207_v19 = vld [vmem:[#allocation4 + $0x578] sm:$0xf0] }
 0x155   :  { %2561 = vmatpush.bf16.msra.mxu3 %v6986_v3  ;;  %v6794_v3 = vor.u32 %v9456_v14, %v6791_v15  ;;  %v9632_v9 = vld [vmem:[#allocation4 + $0x7ac] sm:$0xf]  ;;  %v7079_v15 = vld [vmem:[#allocation4 + $0x478] sm:$0xf0] }
 0x156   :  { %2548 = vmatpush.bf16.msra.mxu2 %v6858_v21  ;;  %2524 = vmatpush.bf16.msra.mxu0 %v6570_v27  ;;  %v7146_v21 = vor.u32 %v9544_v6, %v7143_v8  ;;  %v7255_v27 = vld [vmem:[#allocation4 + $0x5d8] sm:$0xf0]  ;;  %v7098_v8 = vor.u32 %v9532_v61, %v7095_v62  ;;  %v9528_v14 = vld [vmem:[#allocation4 + $0x46c] sm:$0xf] }
 0x157   :  { %2537 = vmatpush.bf16.msra.mxu1 %v6698_v30  ;;  %v9452_v30 = vld [vmem:[#allocation4 + $0x20c] sm:$0xf]  ;;  %v2258_v33 = vpop.f32.mrf.mxu3  ;;  %v7258_v40 = vor.u32 %v9572_v26, %v7255_v27  ;;  %v7031_v62 = vld [vmem:[#allocation4 + $0x418] sm:$0xf0] }
 0x158   :  { %v2245_v28 = vpop.f32.mrf.mxu2  ;;  %v9560_v17 = vld [vmem:[#allocation4 + $0x56c] sm:$0xf]  ;;  %v7335_v33 = vld [vmem:[#allocation4 + $0x678] sm:$0xf0] }
 0x159   :  { %2562 = vmatpush.bf16.msra.mxu3 %v6970_v37  ;;  %v7130_v37 = vor.u32 %v9540_v22, %v7127_v25  ;;  %v7082_v22 = vor.u32 %v9528_v14, %v7079_v15  ;;  %v7210_v25 = vor.u32 %v9560_v17, %v7207_v19  ;;  %v9524_v26 = vld [vmem:[#allocation4 + $0x44c] sm:$0xf]  ;;  %v7303_v14 = vld [vmem:[#allocation4 + $0x638] sm:$0xf0] }
 0x15a   :  { %2549 = vmatpush.bf16.msra.mxu2 %v6842_v34  ;;  %2525 = vmatpush.bf16.msra.mxu0 %v6554_v41  ;;  %v6903_v34 = vld [vmem:[#allocation4 + $0x318] sm:$0xf0]  ;;  %v6778_v41 = vor.u32 %v9452_v30, %v6775_v31  ;;  %v9556_v28 = vld [vmem:[#allocation4 + $0x54c] sm:$0xf] }
 0x15b   :  { %2538 = vmatpush.bf16.msra.mxu1 %v6682_v46  ;;  %v6906_v46 = vor.u32 %v9484_v32, %v6903_v34  ;;  %v9592_v32 = vld [vmem:[#allocation4 + $0x66c] sm:$0xf]  ;;  %v10446_v34 = vld [vmem:[%s10616_s4] sm:$0xf]  ;;  %v7431_v19 = vld [vmem:[#allocation4 + $0x738] sm:$0xf0] }
 0x15c   :  { %v7338_v42 = vor.u32 %v9592_v32, %v7335_v33  ;;  %v9552_v43 = vld [vmem:[#allocation4 + $0x52c] sm:$0xf]  ;;  %v7415_v32 = vld [vmem:[#allocation4 + $0x718] sm:$0xf0] }
 0x15d   :  { %2563 = vmatpush.bf16.msra.mxu3 %v6954_v55  ;;  %v7383_v55 = vld [vmem:[#allocation4 + $0x6d8] sm:$0xf0]  ;;  %v9616_v17 = vld [vmem:[#allocation4 + $0x72c] sm:$0xf] }
 0x15e   :  { %2550 = vmatpush.bf16.msra.mxu2 %v6826_v50  ;;  %2526 = vmatpush.bf16.msra.mxu0 %v6538_v59  ;;  %v7239_v50 = vld [vmem:[#allocation4 + $0x5b8] sm:$0xf0] }
 0x15f   :  { %2539 = vmatpush.bf16.msra.mxu1 %v6666_v63  ;;  %v7511_v59 = vld [vmem:[#allocation4 + $0x7d8] sm:$0xf0]  ;;  %v7242_v60 = vor.u32 %v9568_v49, %v7239_v50  ;;  %v9564_v63 = vld [vmem:[#allocation4 + $0x58c] sm:$0xf] }
 0x160   :  { %v7226_v13 = vor.u32 %v9564_v63, %v7223_v0  ;;  %v9588_v50 = vld [vmem:[#allocation4 + $0x64c] sm:$0xf]  ;;  %v7159_v63 = vld [vmem:[#allocation4 + $0x518] sm:$0xf0] }
 0x161   :  { %2564 = vmatpush.bf16.msra.mxu3 %v6938_v12  ;;  %v10437_v1 = vpop.f32.mrf.mxu0  ;;  %v10440_v6 = vpop.f32.mrf.mxu1  ;;  %v7495_v12 = vld [vmem:[#allocation4 + $0x7b8] sm:$0xf0] }
 0x162   :  { %2551 = vmatpush.bf16.msra.mxu2 %v6810_v5  ;;  %2527 = vmatpush.bf16.msra.mxu0 %v6522_v16  ;;  %v7367_v5 = vld [vmem:[#allocation4 + $0x6b8] sm:$0xf0] }
 0x163   :  { %2540 = vmatpush.bf16.msra.mxu1 %v6650_v20  ;;  %v7370_v16 = vor.u32 %v9600_v2, %v7367_v5  ;;  %v7498_v20 = vor.u32 %v9632_v9, %v7495_v12  ;;  %v9658_v2 = vld [vmem:[#allocation6 + $0x74] sm:$0xf0]  ;;  %v7653_v5 = vld [vmem:[#allocation6 + $0xf0] sm:$0xf] }
 0x164   :  { %v9674_v12 = vld [vmem:[#allocation6 + $0xf4] sm:$0xf0] }
 0x165   :  { %2565 = vmatpush.bf16.msra.mxu3 %v6922_v29  ;;  %2528 = vmatmul.bf16.vlgmr.msra.gmra.mxu0 %v10382_v18  ;;  %v7386_v18 = vor.u32 %v9604_v53, %v7383_v55  ;;  %v7191_v29 = vld [vmem:[#allocation4 + $0x558] sm:$0xf0] }
 0x166   :  { %2572 = vmatpush.bf16.msrb.mxu0 %v7146_v21  ;;  %2552 = vmatpush.bf16.msra.mxu2 %v6794_v3  ;;  %v9596_v21 = vld [vmem:[#allocation4 + $0x68c] sm:$0xf]  ;;  %v7479_v3 = vld [vmem:[#allocation4 + $0x798] sm:$0xf0]  ;;  %v7194_v39 = vor.u32 %v9556_v28, %v7191_v29 }
 0x167   :  { %2585 = vmatpush.bf16.msrb.mxu1 %v7274_v24  ;;  %v9628_v24 = vld [vmem:[#allocation4 + $0x78c] sm:$0xf]  ;;  %v7287_v29 = vld [vmem:[#allocation4 + $0x618] sm:$0xf0] }
 0x168   :  { %2541 = vmatmul.bf16.vlgmr.msra.gmra.mxu1 %v10385_v23  ;;  %v7514_v23 = vor.u32 %v9636_v57, %v7511_v59  ;;  %v7482_v31 = vor.u32 %v9628_v24, %v7479_v3  ;;  %v7447_v57 = vld [vmem:[#allocation4 + $0x758] sm:$0xf0]  ;;  %v9516_v59 = vld [vmem:[#allocation4 + $0x40c] sm:$0xf]  ;;  %v7581_v3 = vld [vmem:[#allocation6 + $0x60] sm:$0xf] }
 0x169   :  { %2566 = vmatpush.bf16.msra.mxu3 %v6906_v46  ;;  %v2271_v30 = vpop.f32.mrf.mxu0  ;;  %v2284_v35 = vpop.f32.mrf.mxu1  ;;  %v7175_v46 = vld [vmem:[#allocation4 + $0x538] sm:$0xf0]  ;;  %v9580_v28 = vld [vmem:[#allocation4 + $0x60c] sm:$0xf] }
 0x16a   :  { %2573 = vmatpush.bf16.msrb.mxu0 %v7130_v37  ;;  %2553 = vmatpush.bf16.msra.mxu2 %v6778_v41  ;;  %v9624_v37 = vld [vmem:[#allocation4 + $0x76c] sm:$0xf]  ;;  %v7047_v41 = vld [vmem:[#allocation4 + $0x438] sm:$0xf0]  ;;  %v7178_v61 = vor.u32 %v9552_v43, %v7175_v46  ;;  %v7637_v43 = vld [vmem:[#allocation6 + $0xd0] sm:$0xf] }
 0x16b   :  { %2586 = vmatpush.bf16.msrb.mxu1 %v7258_v40  ;;  %v9520_v40 = vld [vmem:[#allocation4 + $0x42c] sm:$0xf]  ;;  %v7466_v49 = vor.u32 %v9624_v37, %v7463_v38  ;;  %v7290_v38 = vor.u32 %v9580_v28, %v7287_v29  ;;  %v9670_v46 = vld [vmem:[#allocation6 + $0xd4] sm:$0xf0]  ;;  %v7605_v29 = vld [vmem:[#allocation6 + $0x90] sm:$0xf] }
 0x16c   :  { %2567 = vmatmul.bf16.vlgmr.msra.gmra.mxu3 %v10391_v51  ;;  %v7063_v51 = vld [vmem:[#allocation4 + $0x458] sm:$0xf0]  ;;  %v7050_v55 = vor.u32 %v9520_v40, %v7047_v41  ;;  %v9654_v40 = vld [vmem:[#allocation6 + $0x54] sm:$0xf0] }
 0x16d   :  { %2611 = vmatpush.bf16.msrb.mxu3 %v7530_v52  ;;  %2554 = vmatmul.bf16.vlgmr.msra.gmra.mxu2 %v10389_v44  ;;  %v7351_v44 = vld [vmem:[#allocation4 + $0x698] sm:$0xf0]  ;;  %v7066_v36 = vor.u32 %v9524_v26, %v7063_v51  ;;  %v7645_v26 = vld [vmem:[#allocation6 + $0xe0] sm:$0xf]  ;;  %v7434_v51 = vor.u32 %v9616_v17, %v7431_v19 }
 0x16e   :  { %2598 = vmatpush.bf16.msrb.mxu2 %v7402_v47  ;;  %2574 = vmatpush.bf16.msrb.mxu0 %v7114_v56  ;;  %v7354_v27 = vor.u32 %v9596_v21, %v7351_v44  ;;  %v920_v47 = vperm.slane %v10446_v34, 0  ;;  %v7319_v52 = vld [vmem:[#allocation4 + $0x658] sm:$0xf0]  ;;  %v9620_v56 = vld [vmem:[#allocation4 + $0x74c] sm:$0xf] }
 0x16f   :  { %2587 = vmatpush.bf16.msrb.mxu1 %v7242_v60  ;;  %v10449_v53 = vpop.f32.mrf.mxu2  ;;  %v10451_v60 = vpop.f32.mrf.mxu3  ;;  %v7322_v0 = vor.u32 %v9588_v50, %v7319_v52  ;;  %v7450_v9 = vor.u32 %v9620_v56, %v7447_v57  ;;  %v7638_v52 = vor.u32 %v9670_v46, %v7637_v43  ;;  %v9652_v56 = vld [vmem:[#allocation6 + $0x44] sm:$0xf0]  ;;  %v7629_v57 = vld [vmem:[#allocation6 + $0xc0] sm:$0xf]  ;;  %v7591_v43 = vld [vmem:[#allocation6 + $0x78] sm:$0xf0] }
 0x170   :  { %v7613_v19 = vld [vmem:[#allocation6 + $0xa0] sm:$0xf] }
 0x171   :  { %2612 = vmatpush.bf16.msrb.mxu3 %v7514_v23  ;;  %v7589_v23 = vld [vmem:[#allocation6 + $0x70] sm:$0xf]  ;;  %v2334_v15 = vpop.f32.mrf.mxu1 }
 0x172   :  { %2599 = vmatpush.bf16.msrb.mxu2 %v7386_v18  ;;  %2575 = vmatpush.bf16.msrb.mxu0 %v7098_v8  ;;  %v9548_v18 = vld [vmem:[#allocation4 + $0x50c] sm:$0xf]  ;;  %v2321_v8 = vpop.f32.mrf.mxu0  ;;  %v7590_v44 = vor.u32 %v9658_v2, %v7589_v23  ;;  %v7621_v2 = vld [vmem:[#allocation6 + $0xb0] sm:$0xf] }
 0x173   :  { %2588 = vmatpush.bf16.msrb.mxu1 %v7226_v13  ;;  %v9584_v13 = vld [vmem:[#allocation4 + $0x62c] sm:$0xf]  ;;  %v7162_v21 = vor.u32 %v9548_v18, %v7159_v63  ;;  %v7557_v63 = vld [vmem:[#allocation6 + $0x30] sm:$0xf] }
 0x174   :  { %v7306_v24 = vor.u32 %v9584_v13, %v7303_v14  ;;  %v7717_v13 = vld [vmem:[#allocation6 + $0x170] sm:$0xf] }
 0x175   :  { %2613 = vmatpush.bf16.msrb.mxu3 %v7498_v20  ;;  %v2218_v20 = vadd.f32 %v10425_v4, %v920_v47 }
 0x176   :  { %2600 = vmatpush.bf16.msrb.mxu2 %v7370_v16  ;;  %2576 = vmatpush.bf16.msrb.mxu0 %v7082_v22  ;;  %v7034_v16 = vor.u32 %v9516_v59, %v7031_v62  ;;  %v7654_v22 = vor.u32 %v9674_v12, %v7653_v5  ;;  %v9666_v5 = vld [vmem:[#allocation6 + $0xb4] sm:$0xf0] }
 0x177   :  { %2589 = vmatpush.bf16.msrb.mxu1 %v7210_v25  ;;  %v9656_v25 = vld [vmem:[#allocation6 + $0x64] sm:$0xf0]  ;;  %v2297_v30 = vpop.f32.mrf.mxu2  ;;  %v2231_v4 = vadd.f32 %v10427_v11, %v2218_v20  ;;  %v2310_v33 = vpop.f32.mrf.mxu3  ;;  %v7622_v14 = vor.u32 %v9666_v5, %v7621_v2  ;;  %v9682_v2 = vld [vmem:[#allocation6 + $0x134] sm:$0xf0] }
 0x178   :  { %v7582_v35 = vor.u32 %v9656_v25, %v7581_v3  ;;  %v9664_v20 = vld [vmem:[#allocation6 + $0xa4] sm:$0xf0]  ;;  %v7709_v3 = vld [vmem:[#allocation6 + $0x160] sm:$0xf]  ;;  %v9662_v30 = vld [vmem:[#allocation6 + $0x94] sm:$0xf0] }
 0x179   :  { %2614 = vmatpush.bf16.msrb.mxu3 %v7482_v31  ;;  %v9612_v31 = vld [vmem:[#allocation4 + $0x70c] sm:$0xf]  ;;  %v2336_v11 = vpop.f32.mrf.mxu1  ;;  %v2244_v47 = vadd.f32 %v10431_v54, %v2231_v4  ;;  %v9688_v25 = vld [vmem:[#allocation6 + $0x164] sm:$0xf0]  ;;  %v7701_v33 = vld [vmem:[#allocation6 + $0x150] sm:$0xf] }
 0x17a   :  { %2601 = vmatpush.bf16.msrb.mxu2 %v7354_v27  ;;  %2577 = vmatpush.bf16.msrb.mxu0 %v7066_v36  ;;  %v9672_v27 = vld [vmem:[#allocation6 + $0xe4] sm:$0xf0]  ;;  %v921_v36 = vperm.slane %v10446_v34, 1  ;;  %v2323_v41 = vpop.f32.mrf.mxu0  ;;  %v7710_v28 = vor.u32 %v9688_v25, %v7709_v3  ;;  %v9673_v11 = vld [vmem:[#allocation6 + $0xf4] sm:$0xf] }
 0x17b   :  { %2590 = vmatpush.bf16.msrb.mxu1 %v7194_v39  ;;  %v7646_v37 = vor.u32 %v9672_v27, %v7645_v26  ;;  %v7573_v39 = vld [vmem:[#allocation6 + $0x50] sm:$0xf]  ;;  %v7614_v26 = vor.u32 %v9664_v20, %v7613_v19  ;;  %v9646_v27 = vld [vmem:[#allocation6 + $0x14] sm:$0xf0]  ;;  %v9660_v41 = vld [vmem:[#allocation6 + $0x84] sm:$0xf0] }
 0x17c   :  { %v2322_v50 = vadd.f32 %v2321_v8, %v921_v36  ;;  %v7606_v36 = vor.u32 %v9662_v30, %v7605_v29  ;;  %v9667_v3 = vld [vmem:[#allocation6 + $0xc4] sm:$0xf]  ;;  %v7631_v25 = vld [vmem:[#allocation6 + $0xc8] sm:$0xf0]  ;;  %v9649_v30 = vld [vmem:[#allocation6 + $0x34] sm:$0xf] }
 0x17d   :  { %2615 = vmatpush.bf16.msrb.mxu3 %v7466_v49  ;;  %v7574_v49 = vor.u32 %v9654_v40, %v7573_v39  ;;  %v7597_v39 = vld [vmem:[#allocation6 + $0x80] sm:$0xf]  ;;  %v7634_v29 = vor.u32 %v9667_v3, %v7631_v25  ;;  %v9677_v25 = vld [vmem:[#allocation6 + $0x114] sm:$0xf] }
 0x17e   :  { %2602 = vmatpush.bf16.msrb.mxu2 %v7338_v42  ;;  %2578 = vmatpush.bf16.msrb.mxu0 %v7050_v55  ;;  %v7418_v42 = vor.u32 %v9612_v31, %v7415_v32  ;;  %v7565_v55 = vld [vmem:[#allocation6 + $0x40] sm:$0xf]  ;;  %v2335_v54 = vadd.f32 %v2334_v15, %v2322_v50 }
 0x17f   :  { %2591 = vmatpush.bf16.msrb.mxu1 %v7178_v61  ;;  %v2347_v59 = vpop.f32.mrf.mxu2  ;;  %v2257_v61 = vadd.f32 %v10433_v58, %v2244_v47  ;;  %v2360_v62 = vpop.f32.mrf.mxu3  ;;  %v7549_v15 = vld [vmem:[#allocation6 + $0x20] sm:$0xf]  ;;  %v7655_v47 = vld [vmem:[#allocation6 + $0xf8] sm:$0xf0] }
 0x180   :  { %v2348_v8 = vadd.f32 %v2347_v59, %v2335_v54  ;;  %v7583_v54 = vld [vmem:[#allocation6 + $0x68] sm:$0xf0] }
 0x181   :  { %2616 = vmatpush.bf16.msrb.mxu3 %v7450_v9  ;;  %v2270_v23 = vadd.f32 %v10437_v1, %v2257_v61 }
 0x182   :  { %2603 = vmatpush.bf16.msrb.mxu2 %v7322_v0  ;;  %2579 = vmatpush.bf16.msrb.mxu0 %v7034_v16  ;;  %v9650_v0 = vld [vmem:[#allocation6 + $0x34] sm:$0xf0]  ;;  %v2373_v9 = vpop.f32.mrf.mxu0  ;;  %v9648_v16 = vld [vmem:[#allocation6 + $0x24] sm:$0xf0] }
 0x183   :  { %2592 = vmatpush.bf16.msrb.mxu1 %v7162_v21  ;;  %v7558_v58 = vor.u32 %v9650_v0, %v7557_v63  ;;  %v2283_v17 = vadd.f32 %v10440_v6, %v2270_v23  ;;  %v2361_v21 = vadd.f32 %v2360_v62, %v2348_v8  ;;  %v7658_v62 = vor.u32 %v9673_v11, %v7655_v47  ;;  %v9671_v63 = vld [vmem:[#allocation6 + $0xe4] sm:$0xf]  ;;  %v7647_v0 = vld [vmem:[#allocation6 + $0xe8] sm:$0xf0]  ;;  %v7685_v23 = vld [vmem:[#allocation6 + $0x130] sm:$0xf] }
 0x184   :  { %v7615_v11 = vld [vmem:[#allocation6 + $0xa8] sm:$0xf0] }
 0x185   :  { %2617 = vmatpush.bf16.msrb.mxu3 %v7434_v51  ;;  %2580 = vmatmul.bf16.vlgmr.msrb.gmra.mxu0 %v10398_v7  ;;  %v9668_v7 = vld [vmem:[#allocation6 + $0xc4] sm:$0xf0]  ;;  %v2386_v12 = vpop.f32.mrf.mxu1  ;;  %v7541_v51 = vld [vmem:[#allocation6 + $0x10] sm:$0xf]  ;;  %v2374_v6 = vadd.f32 %v2373_v9, %v2361_v21 }
 0x186   :  { %3022 = vmatpush.bf16.msra.mxu0 %v7590_v44  ;;  %2604 = vmatpush.bf16.msrb.mxu2 %v7306_v24  ;;  %v7630_v18 = vor.u32 %v9668_v7, %v7629_v57  ;;  %v2296_v44 = vadd.f32 %v10449_v53, %v2283_v17  ;;  %v7550_v24 = vor.u32 %v9648_v16, %v7549_v15  ;;  %v7575_v15 = vld [vmem:[#allocation6 + $0x58] sm:$0xf0] }
 0x187   :  { %3035 = vmatpush.bf16.msra.mxu1 %v7654_v22  ;;  %v2349_v1 = vpop.f32.mrf.mxu2  ;;  %v2362_v22 = vpop.f32.mrf.mxu3  ;;  %v7542_v53 = vor.u32 %v9646_v27, %v7541_v51  ;;  %v2387_v46 = vadd.f32 %v2386_v12, %v2374_v6  ;;  %v7598_v7 = vor.u32 %v9660_v41, %v7597_v39  ;;  %v7686_v12 = vor.u32 %v9682_v2, %v7685_v23  ;;  %v7639_v17 = vld [vmem:[#allocation6 + $0xd8] sm:$0xf0]  ;;  %v9678_v51 = vld [vmem:[#allocation6 + $0x114] sm:$0xf0]  ;;  %v9647_v41 = vld [vmem:[#allocation6 + $0x24] sm:$0xf] }
 0x188   :  { %2593 = vmatmul.bf16.vlgmr.msrb.gmra.mxu1 %v10401_v10  ;;  %v7566_v10 = vor.u32 %v9652_v56, %v7565_v55  ;;  %v2309_v32 = vadd.f32 %v10451_v60, %v2296_v44  ;;  %v7693_v55 = vld [vmem:[#allocation6 + $0x140] sm:$0xf]  ;;  %v9684_v56 = vld [vmem:[#allocation6 + $0x144] sm:$0xf0]  ;;  %v9651_v22 = vld [vmem:[#allocation6 + $0x44] sm:$0xf] }
 0x189   :  { %2618 = vmatpush.bf16.msrb.mxu3 %v7418_v42  ;;  %v9657_v42 = vld [vmem:[#allocation6 + $0x74] sm:$0xf]  ;;  %v7694_v61 = vor.u32 %v9684_v56, %v7693_v55  ;;  %v7559_v6 = vld [vmem:[#allocation6 + $0x38] sm:$0xf0]  ;;  %v9659_v2 = vld [vmem:[#allocation6 + $0x84] sm:$0xf] }
 0x18a   :  { %3023 = vmatpush.bf16.msra.mxu0 %v7582_v35  ;;  %2605 = vmatpush.bf16.msrb.mxu2 %v7290_v38  ;;  %v2375_v31 = vpop.f32.mrf.mxu0  ;;  %v9686_v35 = vld [vmem:[#allocation6 + $0x154] sm:$0xf0]  ;;  %v9644_v38 = vld [vmem:[#allocation6 + $0x4] sm:$0xf0]  ;;  %v7594_v59 = vor.u32 %v9657_v42, %v7591_v43  ;;  %v7719_v39 = vld [vmem:[#allocation6 + $0x178] sm:$0xf0] }
 0x18b   :  { %3036 = vmatpush.bf16.msra.mxu1 %v7646_v37  ;;  %v7533_v37 = vld [vmem:[#allocation6] sm:$0xf]  ;;  %v7702_v40 = vor.u32 %v9686_v35, %v7701_v33  ;;  %v9665_v31 = vld [vmem:[#allocation6 + $0xb4] sm:$0xf]  ;;  %v9676_v33 = vld [vmem:[#allocation6 + $0x104] sm:$0xf0] }
 0x18c   :  { %2619 = vmatmul.bf16.vlgmr.msrb.gmra.mxu3 %v10407_v45  ;;  %v9689_v35 = vld [vmem:[#allocation6 + $0x174] sm:$0xf]  ;;  %v7551_v42 = vld [vmem:[#allocation6 + $0x28] sm:$0xf0]  ;;  %v7543_v55 = vld [vmem:[#allocation6 + $0x18] sm:$0xf0] }
 0x18d   :  { %2606 = vmatmul.bf16.vlgmr.msrb.gmra.mxu2 %v10405_v48  ;;  %v9690_v48 = vld [vmem:[#allocation6 + $0x174] sm:$0xf0]  ;;  %v2388_v4 = vpop.f32.mrf.mxu1  ;;  %v7722_v43 = vor.u32 %v9689_v35, %v7719_v39  ;;  %v7554_v47 = vor.u32 %v9647_v41, %v7551_v42  ;;  %v9704_v35 = vld [vmem:[#allocation6 + $0x1e4] sm:$0xf0] }
 0x18e   :  { %3024 = vmatpush.bf16.msra.mxu0 %v7574_v49  ;;  %v7718_v45 = vor.u32 %v9690_v48, %v7717_v13  ;;  %v2624_v49 = vmax.f32 %v2309_v32, 0.0  ;;  %v9680_v13 = vld [vmem:[#allocation6 + $0x124] sm:$0xf0]  ;;  %v7650_v48 = vor.u32 %v9671_v63, %v7647_v0  ;;  %v7623_v32 = vld [vmem:[#allocation6 + $0xb8] sm:$0xf0] }
 0x18f   :  { %3037 = vmatpush.bf16.msra.mxu1 %v7638_v52  ;;  %v2412_v50 = vpop.f32.mrf.mxu3  ;;  %v7534_v52 = vor.u32 %v9644_v38, %v7533_v37  ;;  %v7562_v37 = vor.u32 %v9649_v30, %v7559_v6  ;;  %v9643_v63 = vld [vmem:[#allocation6 + $0x4] sm:$0xf]  ;;  %v7535_v0 = vld [vmem:[#allocation6 + $0x8] sm:$0xf0]  ;;  %v7781_v6 = vld [vmem:[#allocation6 + $0x1f0] sm:$0xf] }
 0x190   :  { %3048 = vmatpush.bf16.msra.mxu2 %v7718_v45  ;;  %v2399_v60 = vpop.f32.mrf.mxu2  ;;  %v10466_v5 = vpack.c.bf16 %v2624_v49, %v2624_v49  ;;  %v9669_v45 = vld [vmem:[#allocation6 + $0xd4] sm:$0xf]  ;;  %v9687_v49 = vld [vmem:[#allocation6 + $0x164] sm:$0xf]  ;;  %v7663_v30 = vld [vmem:[#allocation6 + $0x108] sm:$0xf0] }
 0x191   :  { %v2400_v57 = vadd.f32 %v2399_v60, %v2387_v46  ;;  %v7642_v44 = vor.u32 %v9669_v45, %v7639_v17  ;;  %v9663_v46 = vld [vmem:[#allocation6 + $0xa4] sm:$0xf]  ;;  %v7711_v60 = vld [vmem:[#allocation6 + $0x168] sm:$0xf0]  ;;  %v9681_v45 = vld [vmem:[#allocation6 + $0x134] sm:$0xf] }
 0x192   :  { %3025 = vmatpush.bf16.msra.mxu0 %v7566_v10  ;;  %v9655_v10 = vld [vmem:[#allocation6 + $0x64] sm:$0xf]  ;;  %v7714_v56 = vor.u32 %v9687_v49, %v7711_v60  ;;  %v7687_v17 = vld [vmem:[#allocation6 + $0x138] sm:$0xf0]  ;;  %v9702_v41 = vld [vmem:[#allocation6 + $0x1d4] sm:$0xf0] }
 0x193   :  { %3038 = vmatpush.bf16.msra.mxu1 %v7630_v18  ;;  %v2413_v18 = vadd.f32 %v2412_v50, %v2400_v57  ;;  %v7586_v9 = vor.u32 %v9655_v10, %v7583_v54  ;;  %v7618_v50 = vor.u32 %v9663_v46, %v7615_v11  ;;  %v9661_v57 = vld [vmem:[#allocation6 + $0x94] sm:$0xf]  ;;  %v7703_v54 = vld [vmem:[#allocation6 + $0x158] sm:$0xf0]  ;;  %v7757_v11 = vld [vmem:[#allocation6 + $0x1c0] sm:$0xf] }
 0x194   :  { %3049 = vmatpush.bf16.msra.mxu2 %v7710_v28  ;;  %v9685_v10 = vld [vmem:[#allocation6 + $0x154] sm:$0xf] }
 0x195   :  { %v2625_v8 = vmax.f32 %v2413_v18, 0.0  ;;  %v7706_v23 = vor.u32 %v9685_v10, %v7703_v54 }
 0x196   :  { %3026 = vmatpush.bf16.msra.mxu0 %v7558_v58  ;;  %v7677_v58 = vld [vmem:[#allocation6 + $0x120] sm:$0xf] }
 0x197   :  { %3039 = vmatpush.bf16.msra.mxu1 %v7622_v14  ;;  %v9653_v14 = vld [vmem:[#allocation6 + $0x54] sm:$0xf]  ;;  %v10468_v16 = vpack.c.bf16 %v2625_v8, %v2625_v8  ;;  %v7678_v19 = vor.u32 %v9680_v13, %v7677_v58  ;;  %v2414_v21 = vpop.f32.mrf.mxu3  ;;  %v7599_v8 = vld [vmem:[#allocation6 + $0x88] sm:$0xf0]  ;;  %v7538_v58 = vor.u32 %v9643_v63, %v7535_v0  ;;  %v9683_v13 = vld [vmem:[#allocation6 + $0x144] sm:$0xf] }
 0x198   :  { %3050 = vmatpush.bf16.msra.mxu2 %v7702_v40  ;;  %v2401_v20 = vpop.f32.mrf.mxu2  ;;  %v7578_v1 = vor.u32 %v9653_v14, %v7575_v15  ;;  %v7626_v40 = vor.u32 %v9665_v31, %v7623_v32  ;;  %v7602_v14 = vor.u32 %v9659_v2, %v7599_v8  ;;  %v7679_v21 = vld [vmem:[#allocation6 + $0x128] sm:$0xf0]  ;;  %v7733_v63 = vld [vmem:[#allocation6 + $0x190] sm:$0xf]  ;;  %v9694_v0 = vld [vmem:[#allocation6 + $0x194] sm:$0xf0] }
 0x199   :  { %v9679_v20 = vld [vmem:[#allocation6 + $0x124] sm:$0xf]  ;;  %v7725_v8 = vld [vmem:[#allocation6 + $0x180] sm:$0xf] }
 0x19a   :  { %3027 = vmatpush.bf16.msra.mxu0 %v7550_v24  ;;  %v7567_v24 = vld [vmem:[#allocation6 + $0x48] sm:$0xf0] }
 0x19b   :  { %3040 = vmatpush.bf16.msra.mxu1 %v7614_v26  ;;  %v7669_v26 = vld [vmem:[#allocation6 + $0x110] sm:$0xf]  ;;  %v7570_v27 = vor.u32 %v9651_v22, %v7567_v24  ;;  %v7682_v22 = vor.u32 %v9679_v20, %v7679_v21  ;;  %v9701_v21 = vld [vmem:[#allocation6 + $0x1d4] sm:$0xf] }
 0x19c   :  { %3051 = vmatpush.bf16.msra.mxu2 %v7694_v61  ;;  %v7670_v28 = vor.u32 %v9678_v51, %v7669_v26  ;;  %v7671_v26 = vld [vmem:[#allocation6 + $0x118] sm:$0xf0] }
 0x19d   :  { %v7674_v51 = vor.u32 %v9677_v25, %v7671_v26  ;;  %v7759_v25 = vld [vmem:[#allocation6 + $0x1c8] sm:$0xf0] }
 0x19e   :  { %3028 = vmatpush.bf16.msra.mxu0 %v7542_v53  ;;  %v7661_v53 = vld [vmem:[#allocation6 + $0x100] sm:$0xf] }
 0x19f   :  { %3041 = vmatpush.bf16.msra.mxu1 %v7606_v36  ;;  %v7662_v38 = vor.u32 %v9676_v33, %v7661_v53  ;;  %v9706_v53 = vld [vmem:[#allocation6 + $0x1f4] sm:$0xf0] }
 0x1a0   :  { %3052 = vmatpush.bf16.msra.mxu2 %v7686_v12  ;;  %v7782_v33 = vor.u32 %v9706_v53, %v7781_v6  ;;  %v923_v6 = vperm.slane %v10446_v34, 3 }
 0x1a2   :  { %3029 = vmatpush.bf16.msra.mxu0 %v7534_v52  ;;  %v10472_v4 = vpop.f32.mrf.mxu0  ;;  %v9645_v52 = vld [vmem:[#allocation6 + $0x14] sm:$0xf]  ;;  %3061 = vmatpush.bf16.msra.mxu3 %v7782_v33 }
 0x1a3   :  { %3042 = vmatpush.bf16.msra.mxu1 %v7598_v7  ;;  %v7607_v7 = vld [vmem:[#allocation6 + $0x98] sm:$0xf0]  ;;  %v9693_v33 = vld [vmem:[#allocation6 + $0x194] sm:$0xf] }
 0x1a4   :  { %3053 = vmatpush.bf16.msra.mxu2 %v7678_v19  ;;  %v7610_v18 = vor.u32 %v9661_v57, %v7607_v7  ;;  %v7690_v19 = vor.u32 %v9681_v45, %v7687_v17  ;;  %v9698_v57 = vld [vmem:[#allocation6 + $0x1b4] sm:$0xf0]  ;;  %v7775_v45 = vld [vmem:[#allocation6 + $0x1e8] sm:$0xf0] }
 0x1a5   :  { %3030 = vmatmul.bf16.vlgmr.msra.gmra.mxu0 %v10466_v5  ;;  %v10474_v36 = vpop.f32.mrf.mxu1 }
 0x1a6   :  { %3074 = vmatpush.bf16.msrb.mxu0 %v7594_v59  ;;  %3043 = vmatmul.bf16.vlgmr.msra.gmra.mxu1 %v10468_v16 }
 0x1a7   :  { %3087 = vmatpush.bf16.msrb.mxu1 %v7658_v62  ;;  %v7546_v62 = vor.u32 %v9645_v52, %v7543_v55 }
 0x1a8   :  { %3054 = vmatpush.bf16.msra.mxu2 %v7670_v28 }
 0x1aa   :  { %3075 = vmatpush.bf16.msrb.mxu0 %v7586_v9  ;;  %v2427_v59 = vpop.f32.mrf.mxu0 }
 0x1ab   :  { %3088 = vmatpush.bf16.msrb.mxu1 %v7650_v48  ;;  %v7695_v48 = vld [vmem:[#allocation6 + $0x148] sm:$0xf0]  ;;  %v7741_v59 = vld [vmem:[#allocation6 + $0x1a0] sm:$0xf] }
 0x1ac   :  { %3055 = vmatpush.bf16.msra.mxu2 %v7662_v38  ;;  %v7698_v15 = vor.u32 %v9683_v13, %v7695_v48  ;;  %v7783_v48 = vld [vmem:[#allocation6 + $0x1f8] sm:$0xf0] }
 0x1ad   :  { %v2440_v61 = vpop.f32.mrf.mxu1 }
 0x1ae   :  { %3076 = vmatpush.bf16.msrb.mxu0 %v7578_v1  ;;  %v922_v1 = vperm.slane %v10446_v34, 2  ;;  %v9696_v61 = vld [vmem:[#allocation6 + $0x1a4] sm:$0xf0] }
 0x1af   :  { %3089 = vmatpush.bf16.msrb.mxu1 %v7642_v44  ;;  %v2464_v12 = vpop.f32.mrf.mxu3  ;;  %v7742_v54 = vor.u32 %v9696_v61, %v7741_v59 }
 0x1b0   :  { %3100 = vmatpush.bf16.msrb.mxu2 %v7722_v43  ;;  %v2451_v9 = vpop.f32.mrf.mxu2  ;;  %v2426_v3 = vadd.f32 %v10472_v4, %v922_v1  ;;  %v7773_v4 = vld [vmem:[#allocation6 + $0x1e0] sm:$0xf]  ;;  %v7767_v1 = vld [vmem:[#allocation6 + $0x1d8] sm:$0xf0] }
 0x1b2   :  { %3077 = vmatpush.bf16.msrb.mxu0 %v7570_v27  ;;  %v2439_v27 = vadd.f32 %v10474_v36, %v2426_v3  ;;  %v9699_v3 = vld [vmem:[#allocation6 + $0x1c4] sm:$0xf] }
 0x1b3   :  { %3090 = vmatpush.bf16.msrb.mxu1 %v7634_v29  ;;  %v9675_v29 = vld [vmem:[#allocation6 + $0x104] sm:$0xf]  ;;  %v7762_v26 = vor.u32 %v9699_v3, %v7759_v25 }
 0x1b4   :  { %3101 = vmatpush.bf16.msrb.mxu2 %v7714_v56  ;;  %v2452_v31 = vadd.f32 %v2451_v9, %v2439_v27  ;;  %v7666_v32 = vor.u32 %v9675_v29, %v7663_v30  ;;  %v7749_v56 = vld [vmem:[#allocation6 + $0x1b0] sm:$0xf]  ;;  %v9692_v9 = vld [vmem:[#allocation6 + $0x184] sm:$0xf0]  ;;  %v7751_v27 = vld [vmem:[#allocation6 + $0x1b8] sm:$0xf0] }
 0x1b5   :  { %v7750_v7 = vor.u32 %v9698_v57, %v7749_v56  ;;  %v7726_v13 = vor.u32 %v9692_v9, %v7725_v8  ;;  %v9695_v29 = vld [vmem:[#allocation6 + $0x1a4] sm:$0xf]  ;;  %v7743_v30 = vld [vmem:[#allocation6 + $0x1a8] sm:$0xf0] }
 0x1b6   :  { %3078 = vmatpush.bf16.msrb.mxu0 %v7562_v37  ;;  %v7774_v37 = vor.u32 %v9704_v35, %v7773_v4  ;;  %v9727_v25 = vld [vmem:[#allocation7 + $0xa4] sm:$0xf] }
 0x1b7   :  { %3091 = vmatpush.bf16.msrb.mxu1 %v7626_v40  ;;  %v2466_v24 = vpop.f32.mrf.mxu3  ;;  %v7765_v40 = vld [vmem:[#allocation6 + $0x1d0] sm:$0xf] }
 0x1b8   :  { %3102 = vmatpush.bf16.msrb.mxu2 %v7706_v23  ;;  %v2453_v44 = vpop.f32.mrf.mxu2  ;;  %3062 = vmatpush.bf16.msra.mxu3 %v7774_v37  ;;  %v7766_v42 = vor.u32 %v9702_v41, %v7765_v40  ;;  %v7734_v23 = vor.u32 %v9694_v0, %v7733_v63 }
 0x1b9   :  { %v7770_v44 = vor.u32 %v9701_v21, %v7767_v1  ;;  %v9731_v21 = vld [vmem:[#allocation7 + $0xc4] sm:$0xf] }
 0x1ba   :  { %3079 = vmatpush.bf16.msrb.mxu0 %v7554_v47  ;;  %v9700_v47 = vld [vmem:[#allocation6 + $0x1c4] sm:$0xf0] }
 0x1bb   :  { %3092 = vmatpush.bf16.msrb.mxu1 %v7618_v50  ;;  %v7758_v50 = vor.u32 %v9700_v47, %v7757_v11 }
 0x1bc   :  { %3103 = vmatpush.bf16.msrb.mxu2 %v7698_v15  ;;  %3063 = vmatpush.bf16.msra.mxu3 %v7766_v42  ;;  %v9703_v15 = vld [vmem:[#allocation6 + $0x1e4] sm:$0xf] }
 0x1bd   :  { %v7778_v17 = vor.u32 %v9703_v15, %v7775_v45  ;;  %v7903_v45 = vld [vmem:[#allocation7 + $0xf0] sm:$0xf0] }
 0x1be   :  { %3080 = vmatpush.bf16.msrb.mxu0 %v7546_v62 }
 0x1bf   :  { %3093 = vmatpush.bf16.msrb.mxu1 %v7610_v18 }
 0x1c0   :  { %3104 = vmatpush.bf16.msrb.mxu2 %v7690_v19  ;;  %3064 = vmatpush.bf16.msra.mxu3 %v7758_v50 }
 0x1c2   :  { %3081 = vmatpush.bf16.msrb.mxu0 %v7538_v58  ;;  %v2477_v28 = vpop.f32.mrf.mxu0 }
 0x1c3   :  { %3094 = vmatpush.bf16.msrb.mxu1 %v7602_v14 }
 0x1c4   :  { %3105 = vmatpush.bf16.msrb.mxu2 %v7682_v22  ;;  %3065 = vmatpush.bf16.msra.mxu3 %v7750_v7  ;;  %v2696_v7 = vld [vmem:[%s10618_s6] sm:$0x3] }
 0x1c5   :  { %3082 = vmatmul.bf16.vlgmr.msrb.gmra.mxu0 %v10466_v5  ;;  %v2490_v5 = vpop.f32.mrf.mxu1  ;;  %v2698_v59 = vperm.slane %v2696_v7, 0  ;;  %v2699_v0 = vperm.slane %v2696_v7, 1  ;;  %v9715_v7 = vld [vmem:[#allocation7 + $0x44] sm:$0xf] }
 0x1c6   :  { %3095 = vmatmul.bf16.vlgmr.msrb.gmra.mxu1 %v10468_v16  ;;  %v2465_v16 = vadd.f32 %v2464_v12, %v2452_v31  ;;  %v9705_v12 = vld [vmem:[#allocation6 + $0x1f4] sm:$0xf] }
 0x1c7   :  { %v7786_v14 = vor.u32 %v9705_v12, %v7783_v48  ;;  %v9737_v48 = vld [vmem:[#allocation7 + $0xec] sm:$0xf0] }
 0x1c8   :  { %3106 = vmatpush.bf16.msrb.mxu2 %v7674_v51  ;;  %v2478_v38 = vadd.f32 %v2477_v28, %v2465_v16  ;;  %3066 = vmatpush.bf16.msra.mxu3 %v7742_v54  ;;  %v9697_v51 = vld [vmem:[#allocation6 + $0x1b4] sm:$0xf]  ;;  %v7735_v16 = vld [vmem:[#allocation6 + $0x198] sm:$0xf0] }
 0x1c9   :  { %v7754_v28 = vor.u32 %v9697_v51, %v7751_v27  ;;  %v7738_v4 = vor.u32 %v9693_v33, %v7735_v16  ;;  %v8031_v33 = vld [vmem:[#allocation7 + $0x1f0] sm:$0xf0] }
 0x1ca   :  { %v2479_v39 = vpop.f32.mrf.mxu0  ;;  %v2491_v43 = vadd.f32 %v2490_v5, %v2478_v38  ;;  %v7746_v5 = vor.u32 %v9695_v29, %v7743_v30  ;;  %v9691_v38 = vld [vmem:[#allocation6 + $0x184] sm:$0xf]  ;;  %v9725_v29 = vld [vmem:[#allocation7 + $0x8c] sm:$0xf0]  ;;  %v8029_v30 = vld [vmem:[#allocation7 + $0x1e0] sm:$0xf] }
 0x1cb   :  { %v7727_v39 = vld [vmem:[#allocation6 + $0x188] sm:$0xf0] }
 0x1cc   :  { %3107 = vmatpush.bf16.msrb.mxu2 %v7666_v32  ;;  %3067 = vmatpush.bf16.msra.mxu3 %v7734_v23  ;;  %v7730_v41 = vor.u32 %v9691_v38, %v7727_v39  ;;  %v7837_v39 = vld [vmem:[#allocation7 + $0x60] sm:$0xf] }
 0x1cd   :  { %v2492_v36 = vpop.f32.mrf.mxu1 }
 0x1cf   :  { %v2516_v60 = vpop.f32.mrf.mxu3 }
 0x1d0   :  { %v2503_v46 = vpop.f32.mrf.mxu2  ;;  %3068 = vmatpush.bf16.msra.mxu3 %v7726_v13  ;;  %v7901_v13 = vld [vmem:[#allocation7 + $0xe0] sm:$0xf] }
 0x1d1   :  { %v2504_v49 = vadd.f32 %v2503_v46, %v2491_v43  ;;  %v7902_v15 = vor.u32 %v9737_v48, %v7901_v13 }
 0x1d3   :  { %v2517_v52 = vadd.f32 %v2516_v60, %v2504_v49  ;;  %3524 = vmatpush.bf16.msra.mxu0 %v7902_v15 }
 0x1d4   :  { %3113 = vmatpush.bf16.msrb.mxu3 %v7786_v14  ;;  %v9735_v14 = vld [vmem:[#allocation7 + $0xe4] sm:$0xf] }
 0x1d5   :  { %v2626_v55 = vmax.f32 %v2517_v52, 0.0 }
 0x1d7   :  { %v2630_v62 = vpack.c.bf16 %v2626_v55, %v2626_v55  ;;  %v2518_v18 = vpop.f32.mrf.mxu3 }
 0x1d8   :  { %v2505_v10 = vpop.f32.mrf.mxu2  ;;  %3114 = vmatpush.bf16.msrb.mxu3 %v7778_v17  ;;  %v7906_v17 = vor.u32 %v9735_v14, %v7903_v45  ;;  %v7807_v14 = vld [vmem:[#allocation7 + $0x30] sm:$0xf0]  ;;  %v7965_v45 = vld [vmem:[#allocation7 + $0x160] sm:$0xf] }
 0x1d9   :  { %3056 = vmatmul.bf16.vlgmr.msra.gmra.mxu2 %v2630_v62 }
 0x1da   :  { %3550 = vmatpush.bf16.msra.mxu2 %v7906_v17  ;;  %v9753_v17 = vld [vmem:[#allocation7 + $0x16c] sm:$0xf0] }
 0x1dc   :  { %3115 = vmatpush.bf16.msrb.mxu3 %v7770_v44  ;;  %v7887_v44 = vld [vmem:[#allocation7 + $0xd0] sm:$0xf0] }
 0x1dd   :  { %v7890_v3 = vor.u32 %v9731_v21, %v7887_v44 }
 0x1df   :  { %3551 = vmatpush.bf16.msra.mxu2 %v7890_v3  ;;  %v7791_v3 = vld [vmem:[#allocation7 + $0x10] sm:$0xf0] }
 0x1e0   :  { %3116 = vmatpush.bf16.msrb.mxu3 %v7762_v26  ;;  %v7871_v26 = vld [vmem:[#allocation7 + $0xb0] sm:$0xf0] }
 0x1e1   :  { %v7874_v27 = vor.u32 %v9727_v25, %v7871_v26  ;;  %v7966_v25 = vor.u32 %v9753_v17, %v7965_v45  ;;  %v7909_v26 = vld [vmem:[#allocation7 + $0xe8] sm:$0xf]  ;;  %v9770_v17 = vld [vmem:[#allocation7 + $0x1f4] sm:$0xf0] }
 0x1e2   :  { %v2529_v2 = vpop.f32.mrf.mxu0  ;;  %v8037_v45 = vld [vmem:[#allocation7 + $0x1e8] sm:$0xf] }
 0x1e3   :  { %v2530_v53 = vadd.f32 %v2529_v2, %v923_v6  ;;  %v9723_v6 = vld [vmem:[#allocation7 + $0x84] sm:$0xf]  ;;  %3552 = vmatpush.bf16.msra.mxu2 %v7874_v27  ;;  %v9736_v27 = vld [vmem:[#allocation7 + $0xec] sm:$0xf] }
 0x1e4   :  { %3117 = vmatpush.bf16.msrb.mxu3 %v7754_v28  ;;  %v7853_v28 = vld [vmem:[#allocation7 + $0x80] sm:$0xf] }
 0x1e5   :  { %v2542_v58 = vpop.f32.mrf.mxu1  ;;  %v7854_v16 = vor.u32 %v9725_v29, %v7853_v28  ;;  %v7911_v29 = vld [vmem:[#allocation7 + $0xf8] sm:$0xf0] }
 0x1e6   :  { %v2543_v35 = vadd.f32 %v2542_v58, %v2530_v53  ;;  %v9767_v53 = vld [vmem:[#allocation7 + $0x1e4] sm:$0xf] }
 0x1e8   :  { %3118 = vmatpush.bf16.msrb.mxu3 %v7746_v5  ;;  %v9769_v5 = vld [vmem:[#allocation7 + $0x1ec] sm:$0xf0] }
 0x1e9   :  { %3108 = vmatmul.bf16.vlgmr.msrb.gmra.mxu2 %v2630_v62 }
 0x1ea   :  { %v2531_v19 = vpop.f32.mrf.mxu0 }
 0x1eb   :  { %v7885_v19 = vld [vmem:[#allocation7 + $0xc0] sm:$0xf] }
 0x1ec   :  { %3119 = vmatpush.bf16.msrb.mxu3 %v7738_v4  ;;  %v8034_v4 = vor.u32 %v9767_v53, %v8031_v33 }
 0x1ed   :  { %v2544_v20 = vpop.f32.mrf.mxu1 }
 0x1ee   :  { %v9733_v20 = vld [vmem:[#allocation7 + $0xcc] sm:$0xf0] }
 0x1ef   :  { %v2568_v24 = vpop.f32.mrf.mxu3  ;;  %v7886_v1 = vor.u32 %v9733_v20, %v7885_v19  ;;  %v9751_v19 = vld [vmem:[#allocation7 + $0x164] sm:$0xf]  ;;  %v7967_v20 = vld [vmem:[#allocation7 + $0x170] sm:$0xf0] }
 0x1f0   :  { %v2555_v22 = vpop.f32.mrf.mxu2  ;;  %3120 = vmatpush.bf16.msrb.mxu3 %v7730_v41  ;;  %v9763_v41 = vld [vmem:[#allocation7 + $0x1c4] sm:$0xf]  ;;  %v7970_v28 = vor.u32 %v9751_v19, %v7967_v20  ;;  %v9720_v19 = vld [vmem:[#allocation7 + $0x6c] sm:$0xf]  ;;  %v8038_v20 = vor.u32 %v9770_v17, %v8037_v45  ;;  %v7943_v45 = vld [vmem:[#allocation7 + $0x138] sm:$0xf0] }
 0x1f1   :  { %v2556_v36 = vadd.f32 %v2555_v22, %v2543_v35  ;;  %v7869_v22 = vld [vmem:[#allocation7 + $0xa0] sm:$0xf]  ;;  %3525 = vmatpush.bf16.msra.mxu0 %v7886_v1 }
 0x1f2   :  { %v8013_v35 = vld [vmem:[#allocation7 + $0x1c0] sm:$0xf] }
 0x1f3   :  { %v2569_v42 = vadd.f32 %v2568_v24, %v2556_v36  ;;  %v9729_v24 = vld [vmem:[#allocation7 + $0xac] sm:$0xf0]  ;;  %v7789_v1 = vld [vmem:[#allocation7] sm:$0xf] }
 0x1f4   :  { %v7870_v51 = vor.u32 %v9729_v24, %v7869_v22  ;;  %v9721_v36 = vld [vmem:[#allocation7 + $0x6c] sm:$0xf0]  ;;  %v9707_v24 = vld [vmem:[#allocation7 + $0x4] sm:$0xf] }
 0x1f5   :  { %v9709_v22 = vld [vmem:[#allocation7 + $0xc] sm:$0xf0]  ;;  %v7794_v53 = vor.u32 %v9707_v24, %v7791_v3  ;;  %v7829_v3 = vld [vmem:[#allocation7 + $0x48] sm:$0xf] }
 0x1f6   :  { %3526 = vmatpush.bf16.msra.mxu0 %v7870_v51  ;;  %v9738_v51 = vld [vmem:[#allocation7 + $0xf4] sm:$0xf0] }
 0x1f7   :  { %v2570_v32 = vpop.f32.mrf.mxu3  ;;  %v7910_v33 = vor.u32 %v9738_v51, %v7909_v26  ;;  %v8021_v26 = vld [vmem:[#allocation7 + $0x1c8] sm:$0xf] }
 0x1f8   :  { %v2557_v31 = vpop.f32.mrf.mxu2  ;;  %v8030_v32 = vor.u32 %v9769_v5, %v8029_v30  ;;  %v7949_v30 = vld [vmem:[#allocation7 + $0x140] sm:$0xf]  ;;  %v9747_v5 = vld [vmem:[#allocation7 + $0x144] sm:$0xf] }
 0x1f9   :  { %v7855_v31 = vld [vmem:[#allocation7 + $0x90] sm:$0xf0] }
 0x1fa   :  { %v7858_v38 = vor.u32 %v9723_v6, %v7855_v31  ;;  %3537 = vmatpush.bf16.msra.mxu1 %v8030_v32  ;;  %3527 = vmatpush.bf16.msra.mxu0 %v7854_v16  ;;  %v9749_v6 = vld [vmem:[#allocation7 + $0x14c] sm:$0xf0]  ;;  %v7790_v31 = vor.u32 %v9709_v22, %v7789_v1  ;;  %v7951_v32 = vld [vmem:[#allocation7 + $0x150] sm:$0xf0]  ;;  %v9768_v1 = vld [vmem:[#allocation7 + $0x1ec] sm:$0xf] }
 0x1fc   :  { %3553 = vmatpush.bf16.msra.mxu2 %v7858_v38  ;;  %v7950_v38 = vor.u32 %v9749_v6, %v7949_v30 }
 0x202   :  { %v2581_v37 = vpop.f32.mrf.mxu0 }
 0x203   :  { %v2582_v34 = vadd.f32 %v2581_v37, %v2569_v42  ;;  %v9765_v37 = vld [vmem:[#allocation7 + $0x1cc] sm:$0xf0] }
 0x205   :  { %v2594_v40 = vpop.f32.mrf.mxu1 }
 0x206   :  { %v2595_v11 = vadd.f32 %v2594_v40, %v2582_v34  ;;  %v8014_v40 = vor.u32 %v9765_v37, %v8013_v35  ;;  %v9719_v34 = vld [vmem:[#allocation7 + $0x64] sm:$0xf]  ;;  %v7893_v35 = vld [vmem:[#allocation7 + $0xc8] sm:$0xf]  ;;  %v9734_v37 = vld [vmem:[#allocation7 + $0xd4] sm:$0xf0] }
 0x208   :  { %3538 = vmatpush.bf16.msra.mxu1 %v8014_v40  ;;  %v7954_v40 = vor.u32 %v9747_v5, %v7951_v32  ;;  %v8023_v5 = vld [vmem:[#allocation7 + $0x1d8] sm:$0xf0] }
 0x20a   :  { %v2583_v43 = vpop.f32.mrf.mxu0 }
 0x20b   :  { %v7839_v43 = vld [vmem:[#allocation7 + $0x70] sm:$0xf0] }
 0x20d   :  { %v2596_v46 = vpop.f32.mrf.mxu1 }
 0x20e   :  { %v8015_v46 = vld [vmem:[#allocation7 + $0x1d0] sm:$0xf0] }
 0x20f   :  { %v2620_v60 = vpop.f32.mrf.mxu3 }
 0x210   :  { %v2607_v47 = vpop.f32.mrf.mxu2 }
 0x211   :  { %v2608_v49 = vadd.f32 %v2607_v47, %v2595_v11  ;;  %v8018_v11 = vor.u32 %v9763_v41, %v8015_v46  ;;  %v7997_v47 = vld [vmem:[#allocation7 + $0x1a0] sm:$0xf]  ;;  %v7894_v41 = vor.u32 %v9734_v37, %v7893_v35  ;;  %v7877_v46 = vld [vmem:[#allocation7 + $0xa8] sm:$0xf]  ;;  %v9762_v37 = vld [vmem:[#allocation7 + $0x1b4] sm:$0xf0] }
 0x213   :  { %v2621_v50 = vadd.f32 %v2620_v60, %v2608_v49  ;;  %v9761_v49 = vld [vmem:[#allocation7 + $0x1ac] sm:$0xf0]  ;;  %v7838_v60 = vor.u32 %v9721_v36, %v7837_v39  ;;  %v9732_v39 = vld [vmem:[#allocation7 + $0xcc] sm:$0xf]  ;;  %v7895_v36 = vld [vmem:[#allocation7 + $0xd8] sm:$0xf0] }
 0x215   :  { %v2627_v52 = vmax.f32 %v2621_v50, 0.0  ;;  %v9759_v50 = vld [vmem:[#allocation7 + $0x1a4] sm:$0xf]  ;;  %3528 = vmatpush.bf16.msra.mxu0 %v7838_v60  ;;  %v7879_v60 = vld [vmem:[#allocation7 + $0xb8] sm:$0xf0] }
 0x217   :  { %v2631_v55 = vpack.c.bf16 %v2627_v52, %v2627_v52  ;;  %v2622_v57 = vpop.f32.mrf.mxu3  ;;  %v7999_v52 = vld [vmem:[#allocation7 + $0x1b0] sm:$0xf0] }
 0x218   :  { %v2609_v56 = vpop.f32.mrf.mxu2  ;;  %v9717_v57 = vld [vmem:[#allocation7 + $0x4c] sm:$0xf0] }
 0x219   :  { %3069 = vmatmul.bf16.vlgmr.msra.gmra.mxu3 %v2631_v55  ;;  %v7821_v56 = vld [vmem:[#allocation7 + $0x40] sm:$0xf] }
 0x21a   :  { %3563 = vmatpush.bf16.msra.mxu3 %v8034_v4  ;;  %v7914_v4 = vor.u32 %v9736_v27, %v7911_v29  ;;  %v9766_v27 = vld [vmem:[#allocation7 + $0x1d4] sm:$0xf0]  ;;  %v7831_v29 = vld [vmem:[#allocation7 + $0x58] sm:$0xf0] }
 0x21b   :  { %v8022_v30 = vor.u32 %v9766_v27, %v8021_v26 }
 0x21e   :  { %3564 = vmatpush.bf16.msra.mxu3 %v8018_v11  ;;  %v9730_v11 = vld [vmem:[#allocation7 + $0xb4] sm:$0xf0] }
 0x222   :  { %v3031_v61 = vpop.f32.mrf.mxu0 }
 0x223   :  { %v3032_v62 = vadd.f32 %v3031_v61, %v2698_v59  ;;  %v3044_v10 = vpop.f32.mrf.mxu1  ;;  %v7998_v59 = vor.u32 %v9761_v49, %v7997_v47  ;;  %v7823_v61 = vld [vmem:[#allocation7 + $0x50] sm:$0xf0]  ;;  %v9728_v47 = vld [vmem:[#allocation7 + $0xac] sm:$0xf]  ;;  %v7878_v49 = vor.u32 %v9730_v11, %v7877_v46  ;;  %v7797_v46 = vld [vmem:[#allocation7 + $0x8] sm:$0xf] }
 0x224   :  { %v9710_v11 = vld [vmem:[#allocation7 + $0x14] sm:$0xf0] }
 0x225   :  { %v10485_v54 = vadd.f32 %v3044_v10, %v3032_v62  ;;  %v8002_v62 = vor.u32 %v9759_v50, %v7999_v52  ;;  %v7981_v10 = vld [vmem:[#allocation7 + $0x180] sm:$0xf]  ;;  %3539 = vmatpush.bf16.msra.mxu1 %v7998_v59  ;;  %v7882_v50 = vor.u32 %v9728_v47, %v7879_v60  ;;  %v7861_v59 = vld [vmem:[#allocation7 + $0x88] sm:$0xf]  ;;  %v9758_v60 = vld [vmem:[#allocation7 + $0x194] sm:$0xf0] }
 0x226   :  { %v7933_v52 = vld [vmem:[#allocation7 + $0x120] sm:$0xf]  ;;  %v7989_v47 = vld [vmem:[#allocation7 + $0x188] sm:$0xf] }
 0x227   :  { %3565 = vmatpush.bf16.msra.mxu3 %v8002_v62 }
 0x229   :  { %3121 = vmatmul.bf16.vlgmr.msrb.gmra.mxu3 %v2631_v55  ;;  %v7842_v55 = vor.u32 %v9719_v34, %v7839_v43  ;;  %v7898_v34 = vor.u32 %v9732_v39, %v7895_v36  ;;  %v7815_v39 = vld [vmem:[#allocation7 + $0x38] sm:$0xf0] }
 0x22a   :  { %v3033_v18 = vpop.f32.mrf.mxu0 }
 0x22b   :  { %v3046_v63 = vpop.f32.mrf.mxu1  ;;  %v9757_v18 = vld [vmem:[#allocation7 + $0x18c] sm:$0xf0]  ;;  %3554 = vmatpush.bf16.msra.mxu2 %v7842_v55 }
 0x22c   :  { %v9755_v63 = vld [vmem:[#allocation7 + $0x184] sm:$0xf]  ;;  %v7982_v13 = vor.u32 %v9757_v18, %v7981_v10  ;;  %v9745_v55 = vld [vmem:[#allocation7 + $0x12c] sm:$0xf0]  ;;  %v9724_v18 = vld [vmem:[#allocation7 + $0x8c] sm:$0xf] }
 0x22e   :  { %3540 = vmatpush.bf16.msra.mxu1 %v7982_v13  ;;  %v7845_v13 = vld [vmem:[#allocation7 + $0x68] sm:$0xf] }
 0x232   :  { %3541 = vmatpush.bf16.msra.mxu1 %v7966_v25  ;;  %v9718_v25 = vld [vmem:[#allocation7 + $0x54] sm:$0xf0] }
 0x233   :  { %v7830_v51 = vor.u32 %v9718_v25, %v7829_v3  ;;  %v7927_v3 = vld [vmem:[#allocation7 + $0x118] sm:$0xf0] }
 0x236   :  { %3542 = vmatpush.bf16.msra.mxu1 %v7950_v38  ;;  %v9712_v38 = vld [vmem:[#allocation7 + $0x2c] sm:$0xf] }
 0x242   :  { %v3083_v23 = vpop.f32.mrf.mxu0 }
 0x243   :  { %v3084_v2 = vadd.f32 %v3083_v23, %v2699_v0  ;;  %v3096_v8 = vpop.f32.mrf.mxu1  ;;  %v7983_v0 = vld [vmem:[#allocation7 + $0x190] sm:$0xf0]  ;;  %v7822_v23 = vor.u32 %v9717_v57, %v7821_v56  ;;  %v9743_v56 = vld [vmem:[#allocation7 + $0x124] sm:$0xf]  ;;  %v7934_v57 = vor.u32 %v9745_v55, %v7933_v52  ;;  %v7799_v52 = vld [vmem:[#allocation7 + $0x18] sm:$0xf0]  ;;  %v7990_v55 = vor.u32 %v9758_v60, %v7989_v47 }
 0x244   :  { %v7986_v15 = vor.u32 %v9755_v63, %v7983_v0  ;;  %v7863_v63 = vld [vmem:[#allocation7 + $0x98] sm:$0xf0]  ;;  %v8141_v47 = vld [vmem:[#allocation9 + $0xc0] sm:$0xf] }
 0x245   :  { %v10487_v9 = vadd.f32 %v3096_v8, %v3084_v2  ;;  %v7826_v2 = vor.u32 %v9715_v7, %v7823_v61  ;;  %v7805_v8 = vld [vmem:[#allocation7 + $0x20] sm:$0xf]  ;;  %3529 = vmatpush.bf16.msra.mxu0 %v7822_v23  ;;  %v7935_v7 = vld [vmem:[#allocation7 + $0x130] sm:$0xf0]  ;;  %v9726_v61 = vld [vmem:[#allocation7 + $0x94] sm:$0xf0]  ;;  %3543 = vmatpush.bf16.msra.mxu1 %v7934_v57  ;;  %v7866_v0 = vor.u32 %v9724_v18, %v7863_v63 }
 0x246   :  { %3566 = vmatpush.bf16.msra.mxu3 %v7986_v15  ;;  %v7938_v62 = vor.u32 %v9743_v56, %v7935_v7  ;;  %v7862_v10 = vor.u32 %v9726_v61, %v7861_v59  ;;  %v7917_v23 = vld [vmem:[#allocation7 + $0x100] sm:$0xf]  ;;  %v9756_v57 = vld [vmem:[#allocation7 + $0x18c] sm:$0xf]  ;;  %v7991_v7 = vld [vmem:[#allocation7 + $0x198] sm:$0xf0] }
 0x247   :  { %3555 = vmatpush.bf16.msra.mxu2 %v7826_v2  ;;  %v9741_v2 = vld [vmem:[#allocation7 + $0x10c] sm:$0xf0]  ;;  %v7994_v59 = vor.u32 %v9756_v57, %v7991_v7  ;;  %v7973_v61 = vld [vmem:[#allocation7 + $0x168] sm:$0xf]  ;;  %v7975_v63 = vld [vmem:[#allocation7 + $0x178] sm:$0xf0] }
 0x248   :  { %v9799_v60 = vld [vmem:[#allocation9 + $0xdc] sm:$0xf0] }
 0x249   :  { %v9943_v57 = vld [vmem:[#allocation9 + $0x55c] sm:$0xf0] }
 0x24a   :  { %v3085_v12 = vpop.f32.mrf.mxu0  ;;  %3567 = vmatpush.bf16.msra.mxu3 %v7970_v28  ;;  %v9716_v28 = vld [vmem:[#allocation7 + $0x4c] sm:$0xf] }
 0x24b   :  { %v3098_v58 = vpop.f32.mrf.mxu1  ;;  %v9713_v12 = vld [vmem:[#allocation7 + $0x2c] sm:$0xf0]  ;;  %v7834_v6 = vor.u32 %v9716_v28, %v7831_v29  ;;  %v8269_v28 = vld [vmem:[#allocation9 + $0x1c0] sm:$0xf] }
 0x24c   :  { %v9711_v58 = vld [vmem:[#allocation7 + $0x24] sm:$0xf]  ;;  %v7806_v21 = vor.u32 %v9713_v12, %v7805_v8  ;;  %v7918_v12 = vor.u32 %v9741_v2, %v7917_v23  ;;  %v7957_v23 = vld [vmem:[#allocation7 + $0x148] sm:$0xf]  ;;  %v9750_v2 = vld [vmem:[#allocation7 + $0x154] sm:$0xf0] }
 0x24d   :  { %v7810_v44 = vor.u32 %v9711_v58, %v7807_v14  ;;  %v9739_v8 = vld [vmem:[#allocation7 + $0x104] sm:$0xf]  ;;  %v7919_v58 = vld [vmem:[#allocation7 + $0x110] sm:$0xf0]  ;;  %v9831_v29 = vld [vmem:[#allocation9 + $0x1dc] sm:$0xf0] }
 0x24e   :  { %3530 = vmatpush.bf16.msra.mxu0 %v7806_v21  ;;  %3568 = vmatpush.bf16.msra.mxu3 %v7954_v40  ;;  %v7922_v14 = vor.u32 %v9739_v8, %v7919_v58  ;;  %v7847_v21 = vld [vmem:[#allocation7 + $0x78] sm:$0xf0]  ;;  %v7818_v40 = vor.u32 %v9712_v38, %v7815_v39  ;;  %v9748_v8 = vld [vmem:[#allocation7 + $0x14c] sm:$0xf]  ;;  %v7958_v58 = vor.u32 %v9750_v2, %v7957_v23  ;;  %v9951_v38 = vld [vmem:[#allocation9 + $0x59c] sm:$0xf0] }
 0x24f   :  { %3556 = vmatpush.bf16.msra.mxu2 %v7810_v44  ;;  %3544 = vmatpush.bf16.msra.mxu1 %v7918_v12  ;;  %v8039_v44 = vld [vmem:[#allocation7 + $0x1f8] sm:$0xf0]  ;;  %v7850_v22 = vor.u32 %v9720_v19, %v7847_v21  ;;  %v7925_v21 = vld [vmem:[#allocation7 + $0x108] sm:$0xf]  ;;  %v9791_v23 = vld [vmem:[#allocation9 + $0x9c] sm:$0xf0] }
 0x250   :  { %v8042_v24 = vor.u32 %v9768_v1, %v8039_v44  ;;  %v7959_v12 = vld [vmem:[#allocation7 + $0x158] sm:$0xf0]  ;;  %v9742_v1 = vld [vmem:[#allocation7 + $0x114] sm:$0xf0]  ;;  %v8685_v2 = vld [vmem:[#allocation9 + $0x500] sm:$0xf] }
 0x251   :  { %v7926_v25 = vor.u32 %v9742_v1, %v7925_v21  ;;  %v9783_v21 = vld [vmem:[#allocation9 + $0x5c] sm:$0xf0] }
 0x252   :  { %3531 = vmatpush.bf16.msra.mxu0 %v7790_v31  ;;  %3569 = vmatpush.bf16.msra.mxu3 %v7938_v62  ;;  %v9764_v31 = vld [vmem:[#allocation7 + $0x1cc] sm:$0xf]  ;;  %v9754_v62 = vld [vmem:[#allocation7 + $0x174] sm:$0xf0]  ;;  %v8653_v1 = vld [vmem:[#allocation9 + $0x4c0] sm:$0xf] }
 0x253   :  { %3557 = vmatpush.bf16.msra.mxu2 %v7794_v53  ;;  %3589 = vmatpush.bf16.msrb.mxu1 %v8038_v20  ;;  %v8026_v32 = vor.u32 %v9764_v31, %v8023_v5  ;;  %v7813_v53 = vld [vmem:[#allocation7 + $0x28] sm:$0xf]  ;;  %v7974_v18 = vor.u32 %v9754_v62, %v7973_v61  ;;  %v8205_v5 = vld [vmem:[#allocation9 + $0x140] sm:$0xf]  ;;  %v8142_v62 = vor.u32 %v9799_v60, %v8141_v47  ;;  %v8527_v60 = vld [vmem:[#allocation9 + $0x3e0] sm:$0xf0] }
 0x256   :  { %3576 = vmatpush.bf16.msrb.mxu0 %v7910_v33  ;;  %3570 = vmatpush.bf16.msra.mxu3 %v7922_v14  ;;  %v9714_v33 = vld [vmem:[#allocation7 + $0x34] sm:$0xf0] }
 0x257   :  { %3602 = vmatpush.bf16.msrb.mxu2 %v7914_v4  ;;  %3590 = vmatpush.bf16.msrb.mxu1 %v8022_v30  ;;  %v8005_v4 = vld [vmem:[#allocation7 + $0x1a8] sm:$0xf]  ;;  %v7814_v35 = vor.u32 %v9714_v33, %v7813_v53  ;;  %v9746_v14 = vld [vmem:[#allocation7 + $0x134] sm:$0xf0]  ;;  %v8270_v30 = vor.u32 %v9831_v29, %v8269_v28  ;;  %v8781_v53 = vld [vmem:[#allocation9 + $0x5c0] sm:$0xf] }
 0x258   :  { %v8006_v36 = vor.u32 %v9762_v37, %v8005_v4  ;;  %v9959_v33 = vld [vmem:[#allocation9 + $0x5dc] sm:$0xf0] }
 0x259   :  { %v8782_v4 = vor.u32 %v9959_v33, %v8781_v53  ;;  %v8749_v37 = vld [vmem:[#allocation9 + $0x580] sm:$0xf] }
 0x25a   :  { %3577 = vmatpush.bf16.msrb.mxu0 %v7894_v41  ;;  %3615 = vmatpush.bf16.msrb.mxu3 %v8042_v24  ;;  %v9760_v41 = vld [vmem:[#allocation7 + $0x1ac] sm:$0xf]  ;;  %v9999_v28 = vld [vmem:[#allocation9 + $0x71c] sm:$0xf0] }
 0x25b   :  { %3603 = vmatpush.bf16.msrb.mxu2 %v7898_v34  ;;  %v8007_v34 = vld [vmem:[#allocation7 + $0x1b8] sm:$0xf0]  ;;  %3591 = vmatpush.bf16.msrb.mxu1 %v8006_v36  ;;  %v9740_v24 = vld [vmem:[#allocation7 + $0x10c] sm:$0xf]  ;;  %v8173_v36 = vld [vmem:[#allocation9 + $0x100] sm:$0xf] }
 0x25c   :  { %v10489_v42 = vpop.f32.mrf.mxu2  ;;  %v8045_v29 = vld [vmem:[#allocation9] sm:$0xf] }
 0x25d   :  { %v3058_v19 = vadd.f32 %v10489_v42, %v10485_v54  ;;  %v8237_v54 = vld [vmem:[#allocation9 + $0x180] sm:$0xf] }
 0x25e   :  { %3578 = vmatpush.bf16.msrb.mxu0 %v7878_v49  ;;  %3616 = vmatpush.bf16.msrb.mxu3 %v8026_v32  ;;  %v7798_v49 = vor.u32 %v9710_v11, %v7797_v46  ;;  %v9815_v32 = vld [vmem:[#allocation9 + $0x15c] sm:$0xf0] }
 0x25f   :  { %3604 = vmatpush.bf16.msrb.mxu2 %v7882_v50  ;;  %v9708_v50 = vld [vmem:[#allocation7 + $0xc] sm:$0xf]  ;;  %3592 = vmatpush.bf16.msrb.mxu1 %v7990_v55  ;;  %v8525_v46 = vld [vmem:[#allocation9 + $0x3c0] sm:$0xf] }
 0x260   :  { %v7802_v56 = vor.u32 %v9708_v50, %v7799_v52  ;;  %v9895_v11 = vld [vmem:[#allocation9 + $0x3dc] sm:$0xf0] }
 0x261   :  { %v9037_v50 = vld [vmem:[#allocation9 + $0x7c0] sm:$0xf] }
 0x262   :  { %3579 = vmatpush.bf16.msrb.mxu0 %v7862_v10  ;;  %v9752_v10 = vld [vmem:[#allocation7 + $0x16c] sm:$0xf]  ;;  %v10023_v52 = vld [vmem:[#allocation9 + $0x7dc] sm:$0xf0] }
 0x263   :  { %3605 = vmatpush.bf16.msrb.mxu2 %v7866_v0  ;;  %v7978_v0 = vor.u32 %v9752_v10, %v7975_v63  ;;  %3593 = vmatpush.bf16.msrb.mxu1 %v7974_v18  ;;  %v9038_v61 = vor.u32 %v10023_v52, %v9037_v50  ;;  %v8109_v10 = vld [vmem:[#allocation9 + $0x80] sm:$0xf] }
 0x264   :  { %v3059_v48 = vpop.f32.mrf.mxu2  ;;  %v9005_v63 = vld [vmem:[#allocation9 + $0x780] sm:$0xf] }
 0x265   :  { %v9722_v48 = vld [vmem:[#allocation7 + $0x74] sm:$0xf0]  ;;  %v8621_v52 = vld [vmem:[#allocation9 + $0x480] sm:$0xf] }
 0x266   :  { %v7846_v15 = vor.u32 %v9722_v48, %v7845_v13  ;;  %v7962_v13 = vor.u32 %v9748_v8, %v7959_v12  ;;  %v7941_v48 = vld [vmem:[#allocation7 + $0x128] sm:$0xf]  ;;  %v9935_v8 = vld [vmem:[#allocation9 + $0x51c] sm:$0xf0] }
 0x267   :  { %3606 = vmatpush.bf16.msrb.mxu2 %v7850_v22  ;;  %3594 = vmatpush.bf16.msrb.mxu1 %v7958_v58  ;;  %v7942_v17 = vor.u32 %v9746_v14, %v7941_v48  ;;  %v9879_v48 = vld [vmem:[#allocation9 + $0x35c] sm:$0xf0] }
 0x268   :  { %3580 = vmatpush.bf16.msrb.mxu0 %v7846_v15  ;;  %v9744_v15 = vld [vmem:[#allocation7 + $0x12c] sm:$0xf] }
 0x269   :  { %v7946_v20 = vor.u32 %v9744_v15, %v7943_v45  ;;  %v8110_v15 = vor.u32 %v9791_v23, %v8109_v10  ;;  %v8077_v45 = vld [vmem:[#allocation9 + $0x40] sm:$0xf]  ;;  %v8495_v10 = vld [vmem:[#allocation9 + $0x3a0] sm:$0xf0] }
 0x26b   :  { %3607 = vmatpush.bf16.msrb.mxu2 %v7834_v6  ;;  %3595 = vmatpush.bf16.msrb.mxu1 %v7942_v17  ;;  %v9823_v6 = vld [vmem:[#allocation9 + $0x19c] sm:$0xf0]  ;;  %v8686_v17 = vor.u32 %v9935_v8, %v8685_v2  ;;  %v9803_v2 = vld [vmem:[#allocation9 + $0x104] sm:$0xf] }
 0x26c   :  { %v10491_v16 = vpop.f32.mrf.mxu2  ;;  %3581 = vmatpush.bf16.msrb.mxu0 %v7830_v51  ;;  %v7930_v51 = vor.u32 %v9740_v24, %v7927_v3  ;;  %v8238_v31 = vor.u32 %v9823_v6, %v8237_v54  ;;  %v8429_v24 = vld [vmem:[#allocation9 + $0x300] sm:$0xf]  ;;  %v8271_v6 = vld [vmem:[#allocation9 + $0x1e0] sm:$0xf0] }
 0x26d   :  { %v3110_v39 = vadd.f32 %v10491_v16, %v10487_v9  ;;  %v8526_v9 = vor.u32 %v9895_v11, %v8525_v46  ;;  %v8493_v16 = vld [vmem:[#allocation9 + $0x380] sm:$0xf]  ;;  %v8175_v8 = vld [vmem:[#allocation9 + $0x120] sm:$0xf0] }
 0x26e   :  { %v9775_v54 = vld [vmem:[#allocation9 + $0x1c] sm:$0xf0] }
 0x26f   :  { %3608 = vmatpush.bf16.msrb.mxu2 %v7818_v40  ;;  %3596 = vmatpush.bf16.msrb.mxu1 %v7926_v25  ;;  %v9807_v40 = vld [vmem:[#allocation9 + $0x11c] sm:$0xf0]  ;;  %v8046_v53 = vor.u32 %v9775_v54, %v8045_v29  ;;  %v9787_v54 = vld [vmem:[#allocation9 + $0x84] sm:$0xf] }
 0x270   :  { %3582 = vmatpush.bf16.msrb.mxu0 %v7814_v35  ;;  %v8206_v35 = vor.u32 %v9815_v32, %v8205_v5  ;;  %v9871_v25 = vld [vmem:[#allocation9 + $0x31c] sm:$0xf0] }
 0x271   :  { %v8397_v5 = vld [vmem:[#allocation9 + $0x2c0] sm:$0xf] }
 0x272   :  { %v9863_v32 = vld [vmem:[#allocation9 + $0x2dc] sm:$0xf0] }
 0x273   :  { %3609 = vmatpush.bf16.msrb.mxu2 %v7802_v56  ;;  %v8717_v56 = vld [vmem:[#allocation9 + $0x540] sm:$0xf] }
 0x274   :  { %v3111_v43 = vpop.f32.mrf.mxu2  ;;  %3583 = vmatpush.bf16.msrb.mxu0 %v7798_v49  ;;  %v8174_v49 = vor.u32 %v9807_v40, %v8173_v36  ;;  %v8718_v18 = vor.u32 %v9943_v57, %v8717_v56  ;;  %v8301_v46 = vld [vmem:[#allocation9 + $0x200] sm:$0xf]  ;;  %v9811_v57 = vld [vmem:[#allocation9 + $0x144] sm:$0xf] }
 0x275   :  { %v8010_v43 = vor.u32 %v9760_v41, %v8007_v34  ;;  %v8750_v41 = vor.u32 %v9951_v38, %v8749_v37  ;;  %v8239_v37 = vld [vmem:[#allocation9 + $0x1a0] sm:$0xf0]  ;;  %v8365_v38 = vld [vmem:[#allocation9 + $0x280] sm:$0xf] }
 0x276   :  { %v9839_v11 = vld [vmem:[#allocation9 + $0x21c] sm:$0xf0] }
 0x277   :  { %3617 = vmatpush.bf16.msrb.mxu3 %v8010_v43  ;;  %v8302_v47 = vor.u32 %v9839_v11, %v8301_v46  ;;  %v8719_v46 = vld [vmem:[#allocation9 + $0x560] sm:$0xf0] }
 0x27b   :  { %3618 = vmatpush.bf16.msrb.mxu3 %v7994_v59  ;;  %v9887_v59 = vld [vmem:[#allocation9 + $0x39c] sm:$0xf0] }
 0x27c   :  { %v8494_v58 = vor.u32 %v9887_v59, %v8493_v16  ;;  %v8909_v16 = vld [vmem:[#allocation9 + $0x6c0] sm:$0xf] }
 0x27d   :  { %v9991_v59 = vld [vmem:[#allocation9 + $0x6dc] sm:$0xf0] }
 0x27f   :  { %3619 = vmatpush.bf16.msrb.mxu3 %v7978_v0  ;;  %v10015_v0 = vld [vmem:[#allocation9 + $0x79c] sm:$0xf0] }
 0x280   :  { %v9006_v14 = vor.u32 %v10015_v0, %v9005_v63  ;;  %v9911_v63 = vld [vmem:[#allocation9 + $0x45c] sm:$0xf0] }
 0x283   :  { %3620 = vmatpush.bf16.msrb.mxu3 %v7962_v13  ;;  %v8461_v13 = vld [vmem:[#allocation9 + $0x340] sm:$0xf] }
 0x287   :  { %3621 = vmatpush.bf16.msrb.mxu3 %v7946_v20  ;;  %v10007_v20 = vld [vmem:[#allocation9 + $0x75c] sm:$0xf0] }
 0x28b   :  { %3622 = vmatpush.bf16.msrb.mxu3 %v7930_v51 }
 0x29c   :  { %v3070_v44 = vpop.f32.mrf.mxu3 }
 0x29d   :  { %v3071_v22 = vadd.f32 %v3070_v44, %v3058_v19  ;;  %v8973_v19 = vld [vmem:[#allocation9 + $0x740] sm:$0xf] }
 0x29e   :  { %v9927_v44 = vld [vmem:[#allocation9 + $0x4dc] sm:$0xf0]  ;;  %v8974_v3 = vor.u32 %v10007_v20, %v8973_v19 }
 0x29f   :  { %v3126_v26 = vmax.f32 %v3071_v22, 0.0  ;;  %v8462_v22 = vor.u32 %v9879_v48, %v8461_v13  ;;  %v8654_v51 = vor.u32 %v9927_v44, %v8653_v1  ;;  %v9983_v13 = vld [vmem:[#allocation9 + $0x69c] sm:$0xf0]  ;;  %v8143_v1 = vld [vmem:[#allocation9 + $0xe0] sm:$0xf0] }
 0x2a0   :  { %v9903_v19 = vld [vmem:[#allocation9 + $0x41c] sm:$0xf0]  ;;  %v9955_v44 = vld [vmem:[#allocation9 + $0x5c4] sm:$0xf] }
 0x2a1   :  { %v3128_v27 = vpack.c.bf16 %v3126_v26, %v3126_v26  ;;  %v8078_v26 = vor.u32 %v9783_v21, %v8077_v45  ;;  %v9795_v21 = vld [vmem:[#allocation9 + $0xc4] sm:$0xf] }
 0x2a3   :  { %3532 = vmatmul.bf16.vlgmr.msra.gmra.mxu0 %v3128_v27  ;;  %3558 = vmatmul.bf16.vlgmr.msra.gmra.mxu2 %v3128_v27 }
 0x2a4   :  { %v3072_v42 = vpop.f32.mrf.mxu3  ;;  %5190 = vmatpush.bf16.msra.mxu0 %v8270_v30  ;;  %5216 = vmatpush.bf16.msra.mxu2 %v8782_v4  ;;  %v9827_v30 = vld [vmem:[#allocation9 + $0x1c4] sm:$0xf]  ;;  %v8398_v4 = vor.u32 %v9863_v32, %v8397_v5  ;;  %v8813_v5 = vld [vmem:[#allocation9 + $0x600] sm:$0xf] }
 0x2a5   :  { %v8430_v42 = vor.u32 %v9871_v25, %v8429_v24  ;;  %v8274_v33 = vor.u32 %v9827_v30, %v8271_v6  ;;  %v8783_v24 = vld [vmem:[#allocation9 + $0x5e0] sm:$0xf0]  ;;  %v9975_v25 = vld [vmem:[#allocation9 + $0x65c] sm:$0xf0] }
 0x2a6   :  { %v9947_v30 = vld [vmem:[#allocation9 + $0x584] sm:$0xf]  ;;  %v9967_v32 = vld [vmem:[#allocation9 + $0x61c] sm:$0xf0] }
 0x2a8   :  { %5191 = vmatpush.bf16.msra.mxu0 %v8238_v31  ;;  %5217 = vmatpush.bf16.msra.mxu2 %v8750_v41  ;;  %v8333_v41 = vld [vmem:[#allocation9 + $0x240] sm:$0xf] }
 0x2ac   :  { %v3122_v34 = vpop.f32.mrf.mxu3  ;;  %5192 = vmatpush.bf16.msra.mxu0 %v8206_v35  ;;  %5218 = vmatpush.bf16.msra.mxu2 %v8718_v18  ;;  %v9819_v35 = vld [vmem:[#allocation9 + $0x184] sm:$0xf]  ;;  %v8589_v18 = vld [vmem:[#allocation9 + $0x440] sm:$0xf] }
 0x2ad   :  { %v3123_v43 = vadd.f32 %v3122_v34, %v3110_v39  ;;  %v9855_v39 = vld [vmem:[#allocation9 + $0x29c] sm:$0xf0]  ;;  %v8242_v36 = vor.u32 %v9819_v35, %v8239_v37  ;;  %v8590_v23 = vor.u32 %v9911_v63, %v8589_v18  ;;  %v8399_v35 = vld [vmem:[#allocation9 + $0x2e0] sm:$0xf0] }
 0x2ae   :  { %v8366_v40 = vor.u32 %v9855_v39, %v8365_v38  ;;  %v9847_v34 = vld [vmem:[#allocation9 + $0x25c] sm:$0xf0]  ;;  %v10019_v37 = vld [vmem:[#allocation9 + $0x7c4] sm:$0xf] }
 0x2af   :  { %v3127_v55 = vmax.f32 %v3123_v43, 0.0  ;;  %v8334_v43 = vor.u32 %v9847_v34, %v8333_v41  ;;  %v9039_v39 = vld [vmem:[#allocation9 + $0x7e0] sm:$0xf0] }
 0x2b0   :  { %5193 = vmatpush.bf16.msra.mxu0 %v8174_v49  ;;  %5219 = vmatpush.bf16.msra.mxu2 %v8686_v17  ;;  %v9891_v49 = vld [vmem:[#allocation9 + $0x3c4] sm:$0xf]  ;;  %v8557_v17 = vld [vmem:[#allocation9 + $0x400] sm:$0xf] }
 0x2b1   :  { %v10497_v7 = vpack.c.bf16 %v3127_v55, %v3127_v55  ;;  %v8530_v50 = vor.u32 %v9891_v49, %v8527_v60  ;;  %v9919_v55 = vld [vmem:[#allocation9 + $0x49c] sm:$0xf0]  ;;  %v8558_v20 = vor.u32 %v9903_v19, %v8557_v17  ;;  %v8079_v41 = vld [vmem:[#allocation9 + $0x60] sm:$0xf0] }
 0x2b2   :  { %v8622_v56 = vor.u32 %v9919_v55, %v8621_v52  ;;  %v8367_v49 = vld [vmem:[#allocation9 + $0x2a0] sm:$0xf0] }
 0x2b3   :  { %3545 = vmatmul.bf16.vlgmr.msra.gmra.mxu1 %v10497_v7  ;;  %3571 = vmatmul.bf16.vlgmr.msra.gmra.mxu3 %v10497_v7  ;;  %v10011_v60 = vld [vmem:[#allocation9 + $0x784] sm:$0xf] }
 0x2b4   :  { %3584 = vmatmul.bf16.vlgmr.msrb.gmra.mxu0 %v3128_v27  ;;  %3610 = vmatmul.bf16.vlgmr.msrb.gmra.mxu2 %v3128_v27  ;;  %v3124_v12 = vpop.f32.mrf.mxu3  ;;  %v8941_v27 = vld [vmem:[#allocation9 + $0x700] sm:$0xf]  ;;  %v9007_v52 = vld [vmem:[#allocation9 + $0x7a0] sm:$0xf0] }
 0x2b5   :  { %5203 = vmatpush.bf16.msra.mxu1 %v8526_v9  ;;  %5229 = vmatpush.bf16.msra.mxu3 %v9038_v61  ;;  %v8942_v31 = vor.u32 %v9999_v28, %v8941_v27  ;;  %v9883_v61 = vld [vmem:[#allocation9 + $0x384] sm:$0xf]  ;;  %v8178_v12 = vor.u32 %v9803_v2, %v8175_v8  ;;  %v9010_v55 = vor.u32 %v10011_v60, %v9007_v52  ;;  %v9824_v60 = vld [vmem:[#allocation9 + $0x1a4] sm:$0xf0] }
 0x2b6   :  { %5194 = vmatpush.bf16.msra.mxu0 %v8142_v62  ;;  %5220 = vmatpush.bf16.msra.mxu2 %v8654_v51  ;;  %v8910_v62 = vor.u32 %v9991_v59, %v8909_v16  ;;  %v8498_v0 = vor.u32 %v9883_v61, %v8495_v10  ;;  %v9867_v27 = vld [vmem:[#allocation9 + $0x304] sm:$0xf] }
 0x2b7   :  { %v8431_v28 = vld [vmem:[#allocation9 + $0x320] sm:$0xf0] }
 0x2b8   :  { %v8434_v29 = vor.u32 %v9867_v27, %v8431_v28  ;;  %v8687_v16 = vld [vmem:[#allocation9 + $0x520] sm:$0xf0] }
 0x2b9   :  { %5204 = vmatpush.bf16.msra.mxu1 %v8494_v58  ;;  %5230 = vmatpush.bf16.msra.mxu3 %v9006_v14  ;;  %v8877_v58 = vld [vmem:[#allocation9 + $0x680] sm:$0xf]  ;;  %v9875_v14 = vld [vmem:[#allocation9 + $0x344] sm:$0xf] }
 0x2ba   :  { %5195 = vmatpush.bf16.msra.mxu0 %v8110_v15  ;;  %5221 = vmatpush.bf16.msra.mxu2 %v8622_v56  ;;  %v8878_v48 = vor.u32 %v9983_v13, %v8877_v58  ;;  %v8463_v15 = vld [vmem:[#allocation9 + $0x360] sm:$0xf0] }
 0x2bb   :  { %v8466_v45 = vor.u32 %v9875_v14, %v8463_v15  ;;  %v9771_v56 = vld [vmem:[#allocation9 + $0x4] sm:$0xf] }
 0x2bc   :  { %v9843_v61 = vld [vmem:[#allocation9 + $0x244] sm:$0xf] }
 0x2bd   :  { %5205 = vmatpush.bf16.msra.mxu1 %v8462_v22  ;;  %5231 = vmatpush.bf16.msra.mxu3 %v8974_v3  ;;  %v8146_v22 = vor.u32 %v9795_v21, %v8143_v1  ;;  %v8845_v3 = vld [vmem:[#allocation9 + $0x640] sm:$0xf]  ;;  %v10003_v18 = vld [vmem:[#allocation9 + $0x744] sm:$0xf] }
 0x2be   :  { %5196 = vmatpush.bf16.msra.mxu0 %v8078_v26  ;;  %5222 = vmatpush.bf16.msra.mxu2 %v8590_v23  ;;  %v8786_v26 = vor.u32 %v9955_v44, %v8783_v24  ;;  %v8846_v51 = vor.u32 %v9975_v25, %v8845_v3  ;;  %v8975_v63 = vld [vmem:[#allocation9 + $0x760] sm:$0xf0] }
 0x2bf   :  { %v9923_v23 = vld [vmem:[#allocation9 + $0x4c4] sm:$0xf] }
 0x2c0   :  { %v8655_v2 = vld [vmem:[#allocation9 + $0x4e0] sm:$0xf0] }
 0x2c1   :  { %5206 = vmatpush.bf16.msra.mxu1 %v8430_v42  ;;  %5232 = vmatpush.bf16.msra.mxu3 %v8942_v31  ;;  %v8111_v42 = vld [vmem:[#allocation9 + $0xa0] sm:$0xf0]  ;;  %v8658_v8 = vor.u32 %v9923_v23, %v8655_v2  ;;  %v9888_v23 = vld [vmem:[#allocation9 + $0x3a4] sm:$0xf0] }
 0x2c2   :  { %5197 = vmatpush.bf16.msra.mxu0 %v8046_v53  ;;  %5223 = vmatpush.bf16.msra.mxu2 %v8558_v20  ;;  %v8114_v6 = vor.u32 %v9787_v54, %v8111_v42  ;;  %v8751_v31 = vld [vmem:[#allocation9 + $0x5a0] sm:$0xf0] }
 0x2c3   :  { %3597 = vmatmul.bf16.vlgmr.msrb.gmra.mxu1 %v10497_v7  ;;  %3623 = vmatmul.bf16.vlgmr.msrb.gmra.mxu3 %v10497_v7  ;;  %v8207_v7 = vld [vmem:[#allocation9 + $0x160] sm:$0xf0]  ;;  %v8754_v53 = vor.u32 %v9947_v30, %v8751_v31  ;;  %v10506_v31 = vld [vmem:[%s10620_s8] sm:$0xf] }
 0x2c4   :  { %v8210_v9 = vor.u32 %v9811_v57, %v8207_v7  ;;  %v8047_v57 = vld [vmem:[#allocation9 + $0x20] sm:$0xf0] }
 0x2c5   :  { %5207 = vmatpush.bf16.msra.mxu1 %v8398_v4  ;;  %5233 = vmatpush.bf16.msra.mxu3 %v8910_v62  ;;  %v9859_v4 = vld [vmem:[#allocation9 + $0x2c4] sm:$0xf] }
 0x2c6   :  { %5242 = vmatpush.bf16.msrb.mxu0 %v8274_v33  ;;  %5268 = vmatpush.bf16.msrb.mxu2 %v8786_v26  ;;  %v8814_v33 = vor.u32 %v9967_v32, %v8813_v5  ;;  %v8402_v38 = vor.u32 %v9859_v4, %v8399_v35  ;;  %v9931_v7 = vld [vmem:[#allocation9 + $0x504] sm:$0xf] }
 0x2c7   :  { %v8690_v59 = vor.u32 %v9931_v7, %v8687_v16  ;;  %v8335_v62 = vld [vmem:[#allocation9 + $0x260] sm:$0xf0] }
 0x2c8   :  { %v8338_v10 = vor.u32 %v9843_v61, %v8335_v62  ;;  %v8303_v58 = vld [vmem:[#allocation9 + $0x220] sm:$0xf0]  ;;  %v8213_v61 = vld [vmem:[#allocation9 + $0x148] sm:$0xf] }
 0x2c9   :  { %5208 = vmatpush.bf16.msra.mxu1 %v8366_v40  ;;  %5234 = vmatpush.bf16.msra.mxu3 %v8878_v48  ;;  %v9779_v40 = vld [vmem:[#allocation9 + $0x44] sm:$0xf]  ;;  %v9816_v62 = vld [vmem:[#allocation9 + $0x164] sm:$0xf0] }
 0x2ca   :  { %5243 = vmatpush.bf16.msrb.mxu0 %v8242_v36  ;;  %5269 = vmatpush.bf16.msrb.mxu2 %v8754_v53  ;;  %v9042_v36 = vor.u32 %v10019_v37, %v9039_v39  ;;  %v8082_v34 = vor.u32 %v9779_v40, %v8079_v41  ;;  %v9995_v13 = vld [vmem:[#allocation9 + $0x704] sm:$0xf]  ;;  %v3197_v39 = vperm.slane %v10506_v31, 1  ;;  %v8277_v41 = vld [vmem:[#allocation9 + $0x1c8] sm:$0xf]  ;;  %v8214_v2 = vor.u32 %v9816_v62, %v8213_v61 }
 0x2cb   :  { %v8943_v14 = vld [vmem:[#allocation9 + $0x720] sm:$0xf0]  ;;  %v9936_v61 = vld [vmem:[#allocation9 + $0x524] sm:$0xf0] }
 0x2cc   :  { %v8946_v15 = vor.u32 %v9995_v13, %v8943_v14  ;;  %v8623_v17 = vld [vmem:[#allocation9 + $0x4a0] sm:$0xf0] }
 0x2cd   :  { %5209 = vmatpush.bf16.msra.mxu1 %v8334_v43  ;;  %5235 = vmatpush.bf16.msra.mxu3 %v8846_v51  ;;  %v9939_v43 = vld [vmem:[#allocation9 + $0x544] sm:$0xf] }
 0x2ce   :  { %5244 = vmatpush.bf16.msrb.mxu0 %v8210_v9  ;;  %v8722_v11 = vor.u32 %v9939_v43, %v8719_v46  ;;  %v8050_v9 = vor.u32 %v9771_v56, %v8047_v57  ;;  %v9987_v20 = vld [vmem:[#allocation9 + $0x6c4] sm:$0xf]  ;;  %v8533_v56 = vld [vmem:[#allocation9 + $0x3c8] sm:$0xf] }
 0x2cf   :  { %v8911_v21 = vld [vmem:[#allocation9 + $0x6e0] sm:$0xf0]  ;;  %v9896_v57 = vld [vmem:[#allocation9 + $0x3e4] sm:$0xf0] }
 0x2d0   :  { %5270 = vmatpush.bf16.msrb.mxu2 %v8722_v11  ;;  %v8914_v1 = vor.u32 %v9987_v20, %v8911_v21  ;;  %v8591_v24 = vld [vmem:[#allocation9 + $0x460] sm:$0xf0]  ;;  %v8149_v21 = vld [vmem:[#allocation9 + $0xc8] sm:$0xf] }
 0x2d1   :  { %5210 = vmatpush.bf16.msra.mxu1 %v8302_v47  ;;  %5236 = vmatpush.bf16.msra.mxu3 %v8814_v33  ;;  %v9851_v47 = vld [vmem:[#allocation9 + $0x284] sm:$0xf]  ;;  %v3196_v33 = vperm.slane %v10506_v31, 0 }
 0x2d2   :  { %5245 = vmatpush.bf16.msrb.mxu0 %v8178_v12  ;;  %v9835_v12 = vld [vmem:[#allocation9 + $0x204] sm:$0xf] }
 0x2d3   :  { %v8306_v48 = vor.u32 %v9835_v12, %v8303_v58  ;;  %v9979_v25 = vld [vmem:[#allocation9 + $0x684] sm:$0xf]  ;;  %v9808_v12 = vld [vmem:[#allocation9 + $0x124] sm:$0xf0] }
 0x2d4   :  { %5271 = vmatpush.bf16.msrb.mxu2 %v8690_v59  ;;  %v8879_v26 = vld [vmem:[#allocation9 + $0x6a0] sm:$0xf0] }
 0x2d5   :  { %5255 = vmatpush.bf16.msrb.mxu1 %v8530_v50  ;;  %5281 = vmatpush.bf16.msrb.mxu3 %v9042_v36  ;;  %v8370_v50 = vor.u32 %v9851_v47, %v8367_v49  ;;  %v8882_v51 = vor.u32 %v9979_v25, %v8879_v26  ;;  %v9899_v27 = vld [vmem:[#allocation9 + $0x404] sm:$0xf]  ;;  %v8245_v49 = vld [vmem:[#allocation9 + $0x188] sm:$0xf] }
 0x2d6   :  { %5246 = vmatpush.bf16.msrb.mxu0 %v8146_v22  ;;  %v9907_v22 = vld [vmem:[#allocation9 + $0x444] sm:$0xf]  ;;  %v8437_v26 = vld [vmem:[#allocation9 + $0x308] sm:$0xf] }
 0x2d7   :  { %v8594_v3 = vor.u32 %v9907_v22, %v8591_v24  ;;  %v8559_v28 = vld [vmem:[#allocation9 + $0x420] sm:$0xf0]  ;;  %v8789_v22 = vld [vmem:[#allocation9 + $0x5c8] sm:$0xf] }
 0x2d8   :  { %5272 = vmatpush.bf16.msrb.mxu2 %v8658_v8  ;;  %v9971_v42 = vld [vmem:[#allocation9 + $0x644] sm:$0xf]  ;;  %v8181_v8 = vld [vmem:[#allocation9 + $0x108] sm:$0xf] }
 0x2d9   :  { %5256 = vmatpush.bf16.msrb.mxu1 %v8498_v0  ;;  %5282 = vmatpush.bf16.msrb.mxu3 %v9010_v55  ;;  %v8978_v0 = vor.u32 %v10003_v18, %v8975_v63  ;;  %v8847_v30 = vld [vmem:[#allocation9 + $0x660] sm:$0xf0]  ;;  %v3198_v18 = vperm.slane %v10506_v31, 2  ;;  %v8182_v20 = vor.u32 %v9808_v12, %v8181_v8  ;;  %v9960_v24 = vld [vmem:[#allocation9 + $0x5e4] sm:$0xf0] }
 0x2da   :  { %5247 = vmatpush.bf16.msrb.mxu0 %v8114_v6  ;;  %v8850_v6 = vor.u32 %v9971_v42, %v8847_v30  ;;  %v9963_v32 = vld [vmem:[#allocation9 + $0x604] sm:$0xf]  ;;  %v9792_v30 = vld [vmem:[#allocation9 + $0xa4] sm:$0xf0] }
 0x2db   :  { %v8815_v53 = vld [vmem:[#allocation9 + $0x620] sm:$0xf0]  ;;  %v9848_v8 = vld [vmem:[#allocation9 + $0x264] sm:$0xf0] }
 0x2dc   :  { %v8818_v4 = vor.u32 %v9963_v32, %v8815_v53  ;;  %v8405_v53 = vld [vmem:[#allocation9 + $0x2c8] sm:$0xf] }
 0x2dd   :  { %5257 = vmatpush.bf16.msrb.mxu1 %v8466_v45  ;;  %5283 = vmatpush.bf16.msrb.mxu3 %v8978_v0  ;;  %v9915_v45 = vld [vmem:[#allocation9 + $0x484] sm:$0xf]  ;;  %v8501_v0 = vld [vmem:[#allocation9 + $0x388] sm:$0xf] }
 0x2de   :  { %5248 = vmatpush.bf16.msrb.mxu0 %v8082_v34  ;;  %v8626_v19 = vor.u32 %v9915_v45, %v8623_v17  ;;  %v9832_v34 = vld [vmem:[#allocation9 + $0x1e4] sm:$0xf0]  ;;  %v8502_v13 = vor.u32 %v9888_v23, %v8501_v0  ;;  %v3199_v17 = vperm.slane %v10506_v31, 3  ;;  %v9828_v0 = vld [vmem:[#allocation9 + $0x1cc] sm:$0xf] }
 0x2df   :  { %v8278_v46 = vor.u32 %v9832_v34, %v8277_v41  ;;  %v9880_v45 = vld [vmem:[#allocation9 + $0x364] sm:$0xf0]  ;;  %v8279_v23 = vld [vmem:[#allocation9 + $0x1e8] sm:$0xf0] }
 0x2e0   :  { %5273 = vmatpush.bf16.msrb.mxu2 %v8626_v19  ;;  %v9952_v31 = vld [vmem:[#allocation9 + $0x5a4] sm:$0xf0] }
 0x2e1   :  { %5258 = vmatpush.bf16.msrb.mxu1 %v8434_v29  ;;  %5284 = vmatpush.bf16.msrb.mxu3 %v8946_v15  ;;  %v8562_v29 = vor.u32 %v9899_v27, %v8559_v28  ;;  %v8469_v15 = vld [vmem:[#allocation9 + $0x348] sm:$0xf]  ;;  %v8790_v28 = vor.u32 %v9960_v24, %v8789_v22 }
 0x2e2   :  { %5249 = vmatpush.bf16.msrb.mxu0 %v8050_v9  ;;  %v8246_v9 = vor.u32 %v9824_v60, %v8245_v49  ;;  %v9784_v41 = vld [vmem:[#allocation9 + $0x64] sm:$0xf0] }
 0x2e3   :  { %v8373_v60 = vld [vmem:[#allocation9 + $0x288] sm:$0xf] }
 0x2e4   :  { %5274 = vmatpush.bf16.msrb.mxu2 %v8594_v3  ;;  %v8470_v3 = vor.u32 %v9880_v45, %v8469_v15  ;;  %v8981_v12 = vld [vmem:[#allocation9 + $0x748] sm:$0xf] }
 0x2e5   :  { %5259 = vmatpush.bf16.msrb.mxu1 %v8402_v38  ;;  %5285 = vmatpush.bf16.msrb.mxu3 %v8914_v1  ;;  %v8661_v15 = vld [vmem:[#allocation9 + $0x4c8] sm:$0xf] }
 0x2e6   :  { %v9928_v45 = vld [vmem:[#allocation9 + $0x4e4] sm:$0xf0] }
 0x2e7   :  { %v8949_v22 = vld [vmem:[#allocation9 + $0x708] sm:$0xf] }
 0x2e8   :  { %5275 = vmatpush.bf16.msrb.mxu2 %v8562_v29  ;;  %v8117_v29 = vld [vmem:[#allocation9 + $0x88] sm:$0xf] }
 0x2e9   :  { %5260 = vmatpush.bf16.msrb.mxu1 %v8370_v50  ;;  %5286 = vmatpush.bf16.msrb.mxu3 %v8882_v51  ;;  %v9872_v51 = vld [vmem:[#allocation9 + $0x324] sm:$0xf0] }
 0x2ea   :  { %v8438_v32 = vor.u32 %v9872_v51, %v8437_v26  ;;  %v10000_v24 = vld [vmem:[#allocation9 + $0x724] sm:$0xf0]  ;;  %v8535_v26 = vld [vmem:[#allocation9 + $0x3e8] sm:$0xf0] }
 0x2ed   :  { %5261 = vmatpush.bf16.msrb.mxu1 %v8338_v10  ;;  %5287 = vmatpush.bf16.msrb.mxu3 %v8850_v6  ;;  %v8534_v10 = vor.u32 %v9896_v57, %v8533_v56  ;;  %v8757_v6 = vld [vmem:[#allocation9 + $0x588] sm:$0xf] }
 0x2ee   :  { %v10016_v56 = vld [vmem:[#allocation9 + $0x7a4] sm:$0xf0] }
 0x2f1   :  { %5262 = vmatpush.bf16.msrb.mxu1 %v8306_v48  ;;  %5288 = vmatpush.bf16.msrb.mxu3 %v8818_v4  ;;  %v9864_v4 = vld [vmem:[#allocation9 + $0x2e4] sm:$0xf0] }
 0x320   :  { %v3533_v44 = vpop.f32.mrf.mxu0 }
 0x321   :  { %v3534_v37 = vadd.f32 %v3533_v44, %v3196_v33  ;;  %v9800_v44 = vld [vmem:[#allocation9 + $0xe4] sm:$0xf0] }
 0x322   :  { %v8150_v27 = vor.u32 %v9800_v44, %v8149_v21  ;;  %v8247_v21 = vld [vmem:[#allocation9 + $0x1a8] sm:$0xf0]  ;;  %v9840_v44 = vld [vmem:[#allocation9 + $0x224] sm:$0xf0] }
 0x326   :  { %v3559_v54 = vpop.f32.mrf.mxu2 }
 0x327   :  { %v3560_v11 = vadd.f32 %v3559_v54, %v3197_v39  ;;  %v8118_v39 = vor.u32 %v9792_v30, %v8117_v29  ;;  %v9812_v30 = vld [vmem:[#allocation9 + $0x14c] sm:$0xf] }
 0x328   :  { %v3535_v5 = vpop.f32.mrf.mxu0 }
 0x32e   :  { %v3561_v35 = vpop.f32.mrf.mxu2 }
 0x32f   :  { %v9045_v35 = vld [vmem:[#allocation9 + $0x7c8] sm:$0xf] }
 0x330   :  { %v3546_v38 = vpop.f32.mrf.mxu1 }
 0x331   :  { %v3547_v36 = vadd.f32 %v3546_v38, %v3534_v37  ;;  %v3585_v40 = vpop.f32.mrf.mxu0  ;;  %v10024_v37 = vld [vmem:[#allocation9 + $0x7e4] sm:$0xf0] }
 0x332   :  { %v3586_v48 = vadd.f32 %v3585_v40, %v3198_v18  ;;  %v8085_v40 = vld [vmem:[#allocation9 + $0x48] sm:$0xf]  ;;  %v9046_v49 = vor.u32 %v10024_v37, %v9045_v35 }
 0x333   :  { %v3628_v43 = vmax.f32 %v3547_v36, 0.0  ;;  %v8758_v36 = vor.u32 %v9952_v31, %v8757_v6  ;;  %v8086_v57 = vor.u32 %v9784_v41, %v8085_v40  ;;  %v8215_v6 = vld [vmem:[#allocation9 + $0x168] sm:$0xf0]  ;;  %v8597_v37 = vld [vmem:[#allocation9 + $0x448] sm:$0xf] }
 0x334   :  { %v8218_v35 = vor.u32 %v9812_v30, %v8215_v6  ;;  %v8183_v40 = vld [vmem:[#allocation9 + $0x128] sm:$0xf0] }
 0x335   :  { %v10510_v47 = vpack.c.bf16 %v3628_v43, %v3628_v43  ;;  %v8725_v43 = vld [vmem:[#allocation9 + $0x548] sm:$0xf]  ;;  %v9015_v30 = vld [vmem:[#allocation9 + $0x7a8] sm:$0xf0] }
 0x336   :  { %v3572_v50 = vpop.f32.mrf.mxu3 }
 0x337   :  { %v3573_v52 = vadd.f32 %v3572_v50, %v3560_v11  ;;  %v3611_v55 = vpop.f32.mrf.mxu2  ;;  %5198 = vmatmul.bf16.vlgmr.msra.gmra.mxu0 %v10510_v47  ;;  %v8406_v11 = vor.u32 %v9864_v4, %v8405_v53  ;;  %v8503_v4 = vld [vmem:[#allocation9 + $0x3a8] sm:$0xf0] }
 0x338   :  { %5294 = vmatpush.bf16.msra.mxu0 %v8278_v46  ;;  %v3548_v7 = vpop.f32.mrf.mxu1  ;;  %v3612_v54 = vadd.f32 %v3611_v55, %v3199_v17  ;;  %v9944_v46 = vld [vmem:[#allocation9 + $0x564] sm:$0xf0] }
 0x339   :  { %v3629_v16 = vmax.f32 %v3573_v52, 0.0  ;;  %v3587_v59 = vpop.f32.mrf.mxu0  ;;  %v9856_v52 = vld [vmem:[#allocation9 + $0x2a4] sm:$0xf0]  ;;  %v8726_v7 = vor.u32 %v9944_v46, %v8725_v43 }
 0x33a   :  { %v9013_v55 = vld [vmem:[#allocation9 + $0x788] sm:$0xf] }
 0x33b   :  { %v10514_v63 = vpack.c.bf16 %v3629_v16, %v3629_v16  ;;  %v9776_v16 = vld [vmem:[#allocation9 + $0x24] sm:$0xf0]  ;;  %v9014_v18 = vor.u32 %v10016_v56, %v9013_v55  ;;  %v9796_v56 = vld [vmem:[#allocation9 + $0xcc] sm:$0xf] }
 0x33c   :  { %5295 = vmatpush.bf16.msra.mxu0 %v8246_v9  ;;  %v8053_v9 = vld [vmem:[#allocation9 + $0x8] sm:$0xf] }
 0x33d   :  { %5211 = vmatmul.bf16.vlgmr.msra.gmra.mxu1 %v10514_v63  ;;  %v8693_v59 = vld [vmem:[#allocation9 + $0x508] sm:$0xf] }
 0x33e   :  { %5307 = vmatpush.bf16.msra.mxu1 %v8534_v10  ;;  %v3574_v58 = vpop.f32.mrf.mxu3  ;;  %v8374_v10 = vor.u32 %v9856_v52, %v8373_v60  ;;  %v9984_v43 = vld [vmem:[#allocation9 + $0x6a4] sm:$0xf0] }
 0x33f   :  { %v3613_v14 = vpop.f32.mrf.mxu2  ;;  %v10008_v58 = vld [vmem:[#allocation9 + $0x764] sm:$0xf0] }
 0x340   :  { %5296 = vmatpush.bf16.msra.mxu0 %v8214_v2  ;;  %v3598_v19 = vpop.f32.mrf.mxu1  ;;  %v8341_v2 = vld [vmem:[#allocation9 + $0x248] sm:$0xf]  ;;  %v8282_v14 = vor.u32 %v9828_v0, %v8279_v23  ;;  %v8439_v0 = vld [vmem:[#allocation9 + $0x328] sm:$0xf0] }
 0x341   :  { %v3599_v1 = vadd.f32 %v3598_v19, %v3586_v48  ;;  %v8694_v48 = vor.u32 %v9936_v61, %v8693_v59  ;;  %v8342_v17 = vor.u32 %v9848_v8, %v8341_v2  ;;  %v8982_v19 = vor.u32 %v10008_v58, %v8981_v12  ;;  %v8565_v52 = vld [vmem:[#allocation9 + $0x408] sm:$0xf]  ;;  %v9788_v8 = vld [vmem:[#allocation9 + $0x8c] sm:$0xf] }
 0x342   :  { %5308 = vmatpush.bf16.msra.mxu1 %v8502_v13  ;;  %v8054_v13 = vor.u32 %v9776_v16, %v8053_v9  ;;  %v9904_v55 = vld [vmem:[#allocation9 + $0x424] sm:$0xf0]  ;;  %v9956_v9 = vld [vmem:[#allocation9 + $0x5cc] sm:$0xf] }
 0x343   :  { %v3630_v25 = vmax.f32 %v3599_v1, 0.0  ;;  %v8309_v1 = vld [vmem:[#allocation9 + $0x208] sm:$0xf]  ;;  %v8791_v16 = vld [vmem:[#allocation9 + $0x5e8] sm:$0xf0] }
 0x344   :  { %5297 = vmatpush.bf16.msra.mxu0 %v8182_v20  ;;  %v9820_v20 = vld [vmem:[#allocation9 + $0x18c] sm:$0xf]  ;;  %v8310_v29 = vor.u32 %v9840_v44, %v8309_v1  ;;  %v8853_v61 = vld [vmem:[#allocation9 + $0x648] sm:$0xf]  ;;  %v8794_v2 = vor.u32 %v9956_v9, %v8791_v16 }
 0x345   :  { %v10518_v42 = vpack.c.bf16 %v3630_v25, %v3630_v25  ;;  %v9892_v25 = vld [vmem:[#allocation9 + $0x3cc] sm:$0xf]  ;;  %v8250_v51 = vor.u32 %v9820_v20, %v8247_v21 }
 0x346   :  { %5309 = vmatpush.bf16.msra.mxu1 %v8470_v3  ;;  %v3624_v5 = vpop.f32.mrf.mxu3  ;;  %v8662_v3 = vor.u32 %v9928_v45, %v8661_v15  ;;  %v8538_v31 = vor.u32 %v9892_v25, %v8535_v26  ;;  %v8119_v58 = vld [vmem:[#allocation9 + $0xa8] sm:$0xf0]  ;;  %v8821_v15 = vld [vmem:[#allocation9 + $0x608] sm:$0xf] }
 0x347   :  { %v3625_v33 = vadd.f32 %v3624_v5, %v3612_v54  ;;  %5224 = vmatmul.bf16.vlgmr.msra.gmra.mxu2 %v10518_v42  ;;  %5250 = vmatmul.bf16.vlgmr.msrb.gmra.mxu0 %v10510_v47  ;;  %v8950_v54 = vor.u32 %v10000_v24, %v8949_v22  ;;  %v8917_v5 = vld [vmem:[#allocation9 + $0x6c8] sm:$0xf]  ;;  %v10020_v20 = vld [vmem:[#allocation9 + $0x7cc] sm:$0xf]  ;;  %v8122_v1 = vor.u32 %v9788_v8, %v8119_v58  ;;  %v8221_v8 = vld [vmem:[#allocation9 + $0x150] sm:$0xf] }
 0x348   :  { %5298 = vmatpush.bf16.msra.mxu0 %v8150_v27  ;;  %5320 = vmatpush.bf16.msra.mxu2 %v8790_v28  ;;  %v3600_v38 = vpop.f32.mrf.mxu1  ;;  %v8629_v27 = vld [vmem:[#allocation9 + $0x488] sm:$0xf]  ;;  %v9047_v21 = vld [vmem:[#allocation9 + $0x7e8] sm:$0xf0] }
 0x349   :  { %v3631_v34 = vmax.f32 %v3625_v33, 0.0  ;;  %v9920_v28 = vld [vmem:[#allocation9 + $0x4a4] sm:$0xf0]  ;;  %v9884_v33 = vld [vmem:[#allocation9 + $0x38c] sm:$0xf] }
 0x34a   :  { %5310 = vmatpush.bf16.msra.mxu1 %v8438_v32  ;;  %v9992_v32 = vld [vmem:[#allocation9 + $0x6e4] sm:$0xf0]  ;;  %v8630_v53 = vor.u32 %v9920_v28, %v8629_v27  ;;  %v8506_v41 = vor.u32 %v9884_v33, %v8503_v4  ;;  %v9780_v22 = vld [vmem:[#allocation9 + $0x4c] sm:$0xf]  ;;  %v9050_v27 = vor.u32 %v10020_v20, %v9047_v21 }
 0x34b   :  { %v10522_v50 = vpack.c.bf16 %v3631_v34, %v3631_v34  ;;  %v9912_v38 = vld [vmem:[#allocation9 + $0x464] sm:$0xf0]  ;;  %v9940_v25 = vld [vmem:[#allocation9 + $0x54c] sm:$0xf] }
 0x34c   :  { %5299 = vmatpush.bf16.msra.mxu0 %v8118_v39  ;;  %5321 = vmatpush.bf16.msra.mxu2 %v8758_v36  ;;  %v8918_v39 = vor.u32 %v9992_v32, %v8917_v5  ;;  %v9804_v36 = vld [vmem:[#allocation9 + $0x10c] sm:$0xf]  ;;  %v8885_v34 = vld [vmem:[#allocation9 + $0x688] sm:$0xf]  ;;  %v8598_v46 = vor.u32 %v9912_v38, %v8597_v37  ;;  %v8285_v37 = vld [vmem:[#allocation9 + $0x1d0] sm:$0xf] }
 0x34d   :  { %5237 = vmatmul.bf16.vlgmr.msra.gmra.mxu3 %v10522_v50  ;;  %5263 = vmatmul.bf16.vlgmr.msrb.gmra.mxu1 %v10514_v63  ;;  %v8186_v60 = vor.u32 %v9804_v36, %v8183_v40  ;;  %v9968_v45 = vld [vmem:[#allocation9 + $0x624] sm:$0xf0]  ;;  %v8727_v26 = vld [vmem:[#allocation9 + $0x568] sm:$0xf0]  ;;  %v9833_v38 = vld [vmem:[#allocation9 + $0x1ec] sm:$0xf0] }
 0x34e   :  { %5311 = vmatpush.bf16.msra.mxu1 %v8406_v11  ;;  %5333 = vmatpush.bf16.msra.mxu3 %v9046_v49  ;;  %v3626_v62 = vpop.f32.mrf.mxu3  ;;  %v9876_v11 = vld [vmem:[#allocation9 + $0x34c] sm:$0xf]  ;;  %v8822_v24 = vor.u32 %v9968_v45, %v8821_v15  ;;  %v8509_v15 = vld [vmem:[#allocation9 + $0x390] sm:$0xf] }
 0x34f   :  { %v8471_v49 = vld [vmem:[#allocation9 + $0x368] sm:$0xf0]  ;;  %v9976_v62 = vld [vmem:[#allocation9 + $0x664] sm:$0xf0]  ;;  %v9889_v45 = vld [vmem:[#allocation9 + $0x3ac] sm:$0xf0] }
 0x350   :  { %5300 = vmatpush.bf16.msra.mxu0 %v8086_v57  ;;  %5322 = vmatpush.bf16.msra.mxu2 %v8726_v7  ;;  %v8886_v57 = vor.u32 %v9984_v43, %v8885_v34  ;;  %v8151_v7 = vld [vmem:[#allocation9 + $0xe8] sm:$0xf0]  ;;  %v8474_v59 = vor.u32 %v9876_v11, %v8471_v49  ;;  %v8854_v12 = vor.u32 %v9976_v62, %v8853_v61  ;;  %v8541_v61 = vld [vmem:[#allocation9 + $0x3d0] sm:$0xf] }
 0x351   :  { %v8154_v23 = vor.u32 %v9796_v56, %v8151_v7  ;;  %v9852_v28 = vld [vmem:[#allocation9 + $0x28c] sm:$0xf]  ;;  %v9825_v56 = vld [vmem:[#allocation9 + $0x1ac] sm:$0xf0] }
 0x352   :  { %5312 = vmatpush.bf16.msra.mxu1 %v8374_v10  ;;  %5334 = vmatpush.bf16.msra.mxu3 %v9014_v18  ;;  %v8566_v10 = vor.u32 %v9904_v55, %v8565_v52  ;;  %v9868_v18 = vld [vmem:[#allocation9 + $0x30c] sm:$0xf]  ;;  %v8253_v55 = vld [vmem:[#allocation9 + $0x190] sm:$0xf] }
 0x353   :  { %v9772_v5 = vld [vmem:[#allocation9 + $0xc] sm:$0xf]  ;;  %v9897_v62 = vld [vmem:[#allocation9 + $0x3ec] sm:$0xf0] }
 0x354   :  { %5301 = vmatpush.bf16.msra.mxu0 %v8054_v13  ;;  %5323 = vmatpush.bf16.msra.mxu2 %v8694_v48  ;;  %v9948_v13 = vld [vmem:[#allocation9 + $0x58c] sm:$0xf]  ;;  %v8542_v58 = vor.u32 %v9897_v62, %v8541_v61 }
 0x355   :  { %v8759_v48 = vld [vmem:[#allocation9 + $0x5a8] sm:$0xf0] }
 0x356   :  { %5313 = vmatpush.bf16.msra.mxu1 %v8342_v17  ;;  %5335 = vmatpush.bf16.msra.mxu3 %v8982_v19  ;;  %v9860_v17 = vld [vmem:[#allocation9 + $0x2cc] sm:$0xf]  ;;  %v8762_v44 = vor.u32 %v9948_v13, %v8759_v48 }
 0x357   :  { %5276 = vmatmul.bf16.vlgmr.msrb.gmra.mxu2 %v10518_v42  ;;  %5302 = vmatmul.bf16.vlgmr.msra.gmra.mxu0 %v10510_v47  ;;  %v8407_v19 = vld [vmem:[#allocation9 + $0x2e8] sm:$0xf0] }
 0x358   :  { %5346 = vmatpush.bf16.msrb.mxu0 %v8282_v14  ;;  %5324 = vmatpush.bf16.msra.mxu2 %v8662_v3  ;;  %v8442_v14 = vor.u32 %v9868_v18, %v8439_v0  ;;  %v8087_v3 = vld [vmem:[#allocation9 + $0x68] sm:$0xf0] }
 0x359   :  { %v8090_v6 = vor.u32 %v9780_v22, %v8087_v3  ;;  %v8055_v32 = vld [vmem:[#allocation9 + $0x28] sm:$0xf0]  ;;  %v8510_v22 = vor.u32 %v9889_v45, %v8509_v15  ;;  %v9937_v15 = vld [vmem:[#allocation9 + $0x52c] sm:$0xf0] }
 0x35a   :  { %5314 = vmatpush.bf16.msra.mxu1 %v8310_v29  ;;  %5336 = vmatpush.bf16.msra.mxu3 %v8950_v54  ;;  %v8375_v29 = vld [vmem:[#allocation9 + $0x2a8] sm:$0xf0]  ;;  %v8058_v34 = vor.u32 %v9772_v5, %v8055_v32  ;;  %v9961_v5 = vld [vmem:[#allocation9 + $0x5ec] sm:$0xf0] }
 0x35b   :  { %v10012_v54 = vld [vmem:[#allocation9 + $0x78c] sm:$0xf]  ;;  %v8378_v4 = vor.u32 %v9852_v28, %v8375_v29 }
 0x35c   :  { %5347 = vmatpush.bf16.msrb.mxu0 %v8250_v51  ;;  %5325 = vmatpush.bf16.msra.mxu2 %v8630_v53  ;;  %v8410_v51 = vor.u32 %v9860_v17, %v8407_v19  ;;  %v9932_v53 = vld [vmem:[#allocation9 + $0x50c] sm:$0xf] }
 0x35d   :  { %5289 = vmatmul.bf16.vlgmr.msrb.gmra.mxu3 %v10522_v50  ;;  %5315 = vmatmul.bf16.vlgmr.msra.gmra.mxu1 %v10514_v63  ;;  %v8695_v33 = vld [vmem:[#allocation9 + $0x528] sm:$0xf0] }
 0x35e   :  { %5359 = vmatpush.bf16.msrb.mxu1 %v8538_v31  ;;  %5337 = vmatpush.bf16.msra.mxu3 %v8918_v39  ;;  %v8730_v31 = vor.u32 %v9940_v25, %v8727_v26  ;;  %v9844_v39 = vld [vmem:[#allocation9 + $0x24c] sm:$0xf]  ;;  %v8698_v43 = vor.u32 %v9932_v53, %v8695_v33  ;;  %v8477_v26 = vld [vmem:[#allocation9 + $0x350] sm:$0xf] }
 0x35f   :  { %v8343_v36 = vld [vmem:[#allocation9 + $0x268] sm:$0xf0] }
 0x360   :  { %5348 = vmatpush.bf16.msrb.mxu0 %v8218_v35  ;;  %5326 = vmatpush.bf16.msra.mxu2 %v8598_v46  ;;  %v9018_v35 = vor.u32 %v10012_v54, %v9015_v30  ;;  %v10004_v40 = vld [vmem:[#allocation9 + $0x74c] sm:$0xf]  ;;  %v8286_v46 = vor.u32 %v9833_v38, %v8285_v37  ;;  %v8157_v54 = vld [vmem:[#allocation9 + $0xd0] sm:$0xf] }
 0x361   :  { %v9924_v11 = vld [vmem:[#allocation9 + $0x4cc] sm:$0xf]  ;;  %v9873_v37 = vld [vmem:[#allocation9 + $0x32c] sm:$0xf0] }
 0x362   :  { %5360 = vmatpush.bf16.msrb.mxu1 %v8506_v41  ;;  %5338 = vmatpush.bf16.msra.mxu3 %v8886_v57  ;;  %v8983_v41 = vld [vmem:[#allocation9 + $0x768] sm:$0xf0] }
 0x363   :  { %v8663_v49 = vld [vmem:[#allocation9 + $0x4e8] sm:$0xf0]  ;;  %v8986_v52 = vor.u32 %v10004_v40, %v8983_v41  ;;  %v9793_v41 = vld [vmem:[#allocation9 + $0xac] sm:$0xf0] }
 0x364   :  { %5349 = vmatpush.bf16.msrb.mxu0 %v8186_v60  ;;  %5327 = vmatpush.bf16.msra.mxu2 %v8566_v10  ;;  %v8346_v60 = vor.u32 %v9844_v39, %v8343_v36  ;;  %v9836_v57 = vld [vmem:[#allocation9 + $0x20c] sm:$0xf]  ;;  %v8254_v10 = vor.u32 %v9825_v56, %v8253_v55  ;;  %v8125_v36 = vld [vmem:[#allocation9 + $0x90] sm:$0xf] }
 0x365   :  { %v8311_v7 = vld [vmem:[#allocation9 + $0x228] sm:$0xf0]  ;;  %v9053_v55 = vld [vmem:[#allocation9 + $0x7d0] sm:$0xf] }
 0x366   :  { %5361 = vmatpush.bf16.msrb.mxu1 %v8474_v59  ;;  %5339 = vmatpush.bf16.msra.mxu3 %v8854_v12  ;;  %v9996_v9 = vld [vmem:[#allocation9 + $0x70c] sm:$0xf]  ;;  %v8666_v59 = vor.u32 %v9924_v11, %v8663_v49  ;;  %v9817_v12 = vld [vmem:[#allocation9 + $0x16c] sm:$0xf0] }
 0x367   :  { %5328 = vmatmul.bf16.vlgmr.msra.gmra.mxu2 %v10518_v42  ;;  %v8951_v16 = vld [vmem:[#allocation9 + $0x728] sm:$0xf0]  ;;  %v8222_v17 = vor.u32 %v9817_v12, %v8221_v8  ;;  %v10025_v56 = vld [vmem:[#allocation9 + $0x7ec] sm:$0xf0] }
 0x368   :  { %5350 = vmatpush.bf16.msrb.mxu0 %v8154_v23  ;;  %5372 = vmatpush.bf16.msrb.mxu2 %v8794_v2  ;;  %v9916_v18 = vld [vmem:[#allocation9 + $0x48c] sm:$0xf]  ;;  %v8314_v23 = vor.u32 %v9836_v57, %v8311_v7  ;;  %v8954_v2 = vor.u32 %v9996_v9, %v8951_v16  ;;  %v8126_v57 = vor.u32 %v9793_v41, %v8125_v36  ;;  %v8093_v16 = vld [vmem:[#allocation9 + $0x50] sm:$0xf]  ;;  %v9813_v36 = vld [vmem:[#allocation9 + $0x154] sm:$0xf] }
 0x369   :  { %v8631_v0 = vld [vmem:[#allocation9 + $0x4a8] sm:$0xf0]  ;;  %v9054_v62 = vor.u32 %v10025_v56, %v9053_v55  ;;  %v10017_v8 = vld [vmem:[#allocation9 + $0x7ac] sm:$0xf0]  ;;  %v8223_v41 = vld [vmem:[#allocation9 + $0x170] sm:$0xf0] }
 0x36a   :  { %5362 = vmatpush.bf16.msrb.mxu1 %v8442_v14  ;;  %5340 = vmatpush.bf16.msra.mxu3 %v8822_v24  ;;  %v9988_v13 = vld [vmem:[#allocation9 + $0x6cc] sm:$0xf]  ;;  %v8634_v14 = vor.u32 %v9916_v18, %v8631_v0  ;;  %v9945_v18 = vld [vmem:[#allocation9 + $0x56c] sm:$0xf0] }
 0x36b   :  { %v8919_v48 = vld [vmem:[#allocation9 + $0x6e8] sm:$0xf0]  ;;  %v8381_v0 = vld [vmem:[#allocation9 + $0x290] sm:$0xf] }
 0x36c   :  { %5351 = vmatpush.bf16.msrb.mxu0 %v8122_v1  ;;  %5373 = vmatpush.bf16.msrb.mxu2 %v8762_v44  ;;  %v9908_v19 = vld [vmem:[#allocation9 + $0x44c] sm:$0xf]  ;;  %v8922_v21 = vor.u32 %v9988_v13, %v8919_v48  ;;  %v8189_v1 = vld [vmem:[#allocation9 + $0x110] sm:$0xf] }
 0x36d   :  { %5341 = vmatmul.bf16.vlgmr.msra.gmra.mxu3 %v10522_v50  ;;  %v8599_v20 = vld [vmem:[#allocation9 + $0x468] sm:$0xf0]  ;;  %v9809_v44 = vld [vmem:[#allocation9 + $0x12c] sm:$0xf0] }
 0x36e   :  { %5363 = vmatpush.bf16.msrb.mxu1 %v8410_v51  ;;  %5385 = vmatpush.bf16.msrb.mxu3 %v9050_v27  ;;  %v9980_v24 = vld [vmem:[#allocation9 + $0x68c] sm:$0xf]  ;;  %v8602_v25 = vor.u32 %v9908_v19, %v8599_v20  ;;  %v9881_v51 = vld [vmem:[#allocation9 + $0x36c] sm:$0xf0]  ;;  %v8190_v27 = vor.u32 %v9809_v44, %v8189_v1  ;;  %v9829_v19 = vld [vmem:[#allocation9 + $0x1d4] sm:$0xf] }
 0x36f   :  { %v8887_v3 = vld [vmem:[#allocation9 + $0x6a8] sm:$0xf0]  ;;  %v8478_v32 = vor.u32 %v9881_v51, %v8477_v26  ;;  %v9777_v48 = vld [vmem:[#allocation9 + $0x2c] sm:$0xf0]  ;;  %v8287_v20 = vld [vmem:[#allocation9 + $0x1f0] sm:$0xf0] }
 0x370   :  { %5352 = vmatpush.bf16.msrb.mxu0 %v8090_v6  ;;  %5374 = vmatpush.bf16.msrb.mxu2 %v8730_v31  ;;  %v9900_v28 = vld [vmem:[#allocation9 + $0x40c] sm:$0xf]  ;;  %v8890_v30 = vor.u32 %v9980_v24, %v8887_v3  ;;  %v9801_v6 = vld [vmem:[#allocation9 + $0xec] sm:$0xf0] }
 0x371   :  { %v8567_v29 = vld [vmem:[#allocation9 + $0x428] sm:$0xf0]  ;;  %v8797_v31 = vld [vmem:[#allocation9 + $0x5d0] sm:$0xf]  ;;  %v8158_v38 = vor.u32 %v9801_v6, %v8157_v54  ;;  %v8255_v54 = vld [vmem:[#allocation9 + $0x1b0] sm:$0xf0] }
 0x372   :  { %5364 = vmatpush.bf16.msrb.mxu1 %v8378_v4  ;;  %5386 = vmatpush.bf16.msrb.mxu3 %v9018_v35  ;;  %v9972_v53 = vld [vmem:[#allocation9 + $0x64c] sm:$0xf]  ;;  %v8570_v4 = vor.u32 %v9900_v28, %v8567_v29  ;;  %v8445_v35 = vld [vmem:[#allocation9 + $0x310] sm:$0xf]  ;;  %v8798_v39 = vor.u32 %v9961_v5, %v8797_v31  ;;  %v9821_v29 = vld [vmem:[#allocation9 + $0x194] sm:$0xf] }
 0x373   :  { %v8855_v33 = vld [vmem:[#allocation9 + $0x668] sm:$0xf0]  ;;  %v9849_v1 = vld [vmem:[#allocation9 + $0x26c] sm:$0xf0] }
 0x374   :  { %5353 = vmatpush.bf16.msrb.mxu0 %v8058_v34  ;;  %5375 = vmatpush.bf16.msrb.mxu2 %v8698_v43  ;;  %v8858_v40 = vor.u32 %v9972_v53, %v8855_v33  ;;  %v8765_v34 = vld [vmem:[#allocation9 + $0x590] sm:$0xf]  ;;  %v9964_v11 = vld [vmem:[#allocation9 + $0x60c] sm:$0xf]  ;;  %v8543_v53 = vld [vmem:[#allocation9 + $0x3f0] sm:$0xf0] }
 0x375   :  { %v9953_v43 = vld [vmem:[#allocation9 + $0x5ac] sm:$0xf0]  ;;  %v8823_v49 = vld [vmem:[#allocation9 + $0x628] sm:$0xf0] }
 0x376   :  { %5365 = vmatpush.bf16.msrb.mxu1 %v8346_v60  ;;  %5387 = vmatpush.bf16.msrb.mxu3 %v8986_v52  ;;  %v8413_v60 = vld [vmem:[#allocation9 + $0x2d0] sm:$0xf]  ;;  %v8766_v7 = vor.u32 %v9953_v43, %v8765_v34  ;;  %v8826_v9 = vor.u32 %v9964_v11, %v8823_v49  ;;  %v8511_v11 = vld [vmem:[#allocation9 + $0x3b0] sm:$0xf0] }
 0x377   :  { %5354 = vmatmul.bf16.vlgmr.msrb.gmra.mxu0 %v10510_v47  ;;  %v9865_v52 = vld [vmem:[#allocation9 + $0x2ec] sm:$0xf0] }
 0x378   :  { %5398 = vmatpush.bf16.msra.mxu0 %v8286_v46  ;;  %5376 = vmatpush.bf16.msrb.mxu2 %v8666_v59  ;;  %v8446_v46 = vor.u32 %v9873_v37, %v8445_v35  ;;  %v9785_v59 = vld [vmem:[#allocation9 + $0x6c] sm:$0xf0]  ;;  %v8414_v61 = vor.u32 %v9865_v52, %v8413_v60  ;;  %v8226_v60 = vor.u32 %v9813_v36, %v8223_v41  ;;  %v9023_v36 = vld [vmem:[#allocation9 + $0x7b0] sm:$0xf0] }
 0x379   :  { %v8094_v12 = vor.u32 %v9785_v59, %v8093_v16  ;;  %v8989_v44 = vld [vmem:[#allocation9 + $0x750] sm:$0xf]  ;;  %v9773_v41 = vld [vmem:[#allocation9 + $0x14] sm:$0xf] }
 0x37a   :  { %5366 = vmatpush.bf16.msrb.mxu1 %v8314_v23  ;;  %5388 = vmatpush.bf16.msrb.mxu3 %v8954_v2  ;;  %v9857_v23 = vld [vmem:[#allocation9 + $0x2ac] sm:$0xf0] }
 0x37b   :  { %v9021_v2 = vld [vmem:[#allocation9 + $0x790] sm:$0xf]  ;;  %v8382_v45 = vor.u32 %v9857_v23, %v8381_v0 }
 0x37c   :  { %5399 = vmatpush.bf16.msra.mxu0 %v8254_v10  ;;  %5377 = vmatpush.bf16.msrb.mxu2 %v8634_v14  ;;  %v8733_v10 = vld [vmem:[#allocation9 + $0x550] sm:$0xf] }
 0x37d   :  { %5367 = vmatmul.bf16.vlgmr.msrb.gmra.mxu1 %v10514_v63  ;;  %v8734_v13 = vor.u32 %v9945_v18, %v8733_v10  ;;  %v8701_v14 = vld [vmem:[#allocation9 + $0x510] sm:$0xf] }
 0x37e   :  { %5411 = vmatpush.bf16.msra.mxu1 %v8542_v58  ;;  %5389 = vmatpush.bf16.msrb.mxu3 %v8922_v21  ;;  %v8061_v58 = vld [vmem:[#allocation9 + $0x10] sm:$0xf]  ;;  %v8702_v3 = vor.u32 %v9937_v15, %v8701_v14 }
 0x37f   :  { %v8349_v21 = vld [vmem:[#allocation9 + $0x250] sm:$0xf]  ;;  %v8062_v24 = vor.u32 %v9777_v48, %v8061_v58  ;;  %v8799_v48 = vld [vmem:[#allocation9 + $0x5f0] sm:$0xf0] }
 0x380   :  { %5400 = vmatpush.bf16.msra.mxu0 %v8222_v17  ;;  %5378 = vmatpush.bf16.msrb.mxu2 %v8602_v25  ;;  %v9022_v17 = vor.u32 %v10017_v8, %v9021_v2  ;;  %v8290_v25 = vor.u32 %v9829_v19, %v8287_v20  ;;  %v8669_v26 = vld [vmem:[#allocation9 + $0x4d0] sm:$0xf]  ;;  %v9797_v8 = vld [vmem:[#allocation9 + $0xd4] sm:$0xf] }
 0x381   :  { %v9929_v51 = vld [vmem:[#allocation9 + $0x4ec] sm:$0xf0] }
 0x382   :  { %5412 = vmatpush.bf16.msra.mxu1 %v8510_v22  ;;  %5390 = vmatpush.bf16.msrb.mxu3 %v8890_v30  ;;  %v10009_v22 = vld [vmem:[#allocation9 + $0x76c] sm:$0xf0]  ;;  %v8670_v33 = vor.u32 %v9929_v51, %v8669_v26 }
 0x383   :  { %v8990_v28 = vor.u32 %v10009_v22, %v8989_v44  ;;  %v8317_v30 = vld [vmem:[#allocation9 + $0x210] sm:$0xf]  ;;  %v8127_v44 = vld [vmem:[#allocation9 + $0xb0] sm:$0xf0] }
 0x384   :  { %5401 = vmatpush.bf16.msra.mxu0 %v8190_v27  ;;  %5379 = vmatpush.bf16.msrb.mxu2 %v8570_v4  ;;  %v8350_v27 = vor.u32 %v9849_v1, %v8349_v21  ;;  %v9841_v6 = vld [vmem:[#allocation9 + $0x22c] sm:$0xf0]  ;;  %v8258_v4 = vor.u32 %v9821_v29, %v8255_v54  ;;  %v9789_v1 = vld [vmem:[#allocation9 + $0x94] sm:$0xf] }
 0x385   :  { %v8957_v31 = vld [vmem:[#allocation9 + $0x710] sm:$0xf]  ;;  %v8318_v35 = vor.u32 %v9841_v6, %v8317_v30  ;;  %v10021_v29 = vld [vmem:[#allocation9 + $0x7d4] sm:$0xf]  ;;  %v8130_v30 = vor.u32 %v9789_v1, %v8127_v44  ;;  %v8229_v1 = vld [vmem:[#allocation9 + $0x158] sm:$0xf] }
 0x386   :  { %5413 = vmatpush.bf16.msra.mxu1 %v8478_v32  ;;  %5391 = vmatpush.bf16.msrb.mxu3 %v8858_v40  ;;  %v10001_v5 = vld [vmem:[#allocation9 + $0x72c] sm:$0xf0]  ;;  %v9893_v32 = vld [vmem:[#allocation9 + $0x3d4] sm:$0xf] }
 0x387   :  { %5380 = vmatmul.bf16.vlgmr.msrb.gmra.mxu2 %v10518_v42  ;;  %v8958_v37 = vor.u32 %v10001_v5, %v8957_v31  ;;  %v8546_v40 = vor.u32 %v9893_v32, %v8543_v53  ;;  %v8925_v34 = vld [vmem:[#allocation9 + $0x6d0] sm:$0xf]  ;;  %v9055_v54 = vld [vmem:[#allocation9 + $0x7f0] sm:$0xf0] }
 0x388   :  { %5402 = vmatpush.bf16.msra.mxu0 %v8158_v38  ;;  %5424 = vmatpush.bf16.msra.mxu2 %v8798_v39  ;;  %v8637_v38 = vld [vmem:[#allocation9 + $0x490] sm:$0xf]  ;;  %v9781_v32 = vld [vmem:[#allocation9 + $0x54] sm:$0xf] }
 0x389   :  { %v9921_v39 = vld [vmem:[#allocation9 + $0x4ac] sm:$0xf0]  ;;  %v8095_v53 = vld [vmem:[#allocation9 + $0x70] sm:$0xf0] }
 0x38a   :  { %5414 = vmatpush.bf16.msra.mxu1 %v8446_v46  ;;  %5392 = vmatpush.bf16.msrb.mxu3 %v8826_v9  ;;  %v9993_v43 = vld [vmem:[#allocation9 + $0x6ec] sm:$0xf0]  ;;  %v9885_v46 = vld [vmem:[#allocation9 + $0x394] sm:$0xf]  ;;  %v8638_v49 = vor.u32 %v9921_v39, %v8637_v38 }
 0x38b   :  { %v8926_v52 = vor.u32 %v9993_v43, %v8925_v34  ;;  %v8605_v55 = vld [vmem:[#allocation9 + $0x450] sm:$0xf]  ;;  %v8191_v9 = vld [vmem:[#allocation9 + $0x130] sm:$0xf0] }
 0x38c   :  { %5403 = vmatpush.bf16.msra.mxu0 %v8126_v57  ;;  %5425 = vmatpush.bf16.msra.mxu2 %v8766_v7  ;;  %v9913_v56 = vld [vmem:[#allocation9 + $0x46c] sm:$0xf0]  ;;  %v9805_v57 = vld [vmem:[#allocation9 + $0x114] sm:$0xf]  ;;  %v8514_v7 = vor.u32 %v9885_v46, %v8511_v11 }
 0x38d   :  { %5393 = vmatmul.bf16.vlgmr.msrb.gmra.mxu3 %v10522_v50  ;;  %v8893_v16 = vld [vmem:[#allocation9 + $0x690] sm:$0xf]  ;;  %v8606_v10 = vor.u32 %v9913_v56, %v8605_v55  ;;  %v8194_v0 = vor.u32 %v9805_v57, %v8191_v9  ;;  %v8383_v38 = vld [vmem:[#allocation9 + $0x2b0] sm:$0xf0]  ;;  %v9834_v55 = vld [vmem:[#allocation9 + $0x1f4] sm:$0xf0] }
 0x38e   :  { %5415 = vmatpush.bf16.msra.mxu1 %v8414_v61  ;;  %5437 = vmatpush.bf16.msra.mxu3 %v9054_v62  ;;  %v9985_v59 = vld [vmem:[#allocation9 + $0x6ac] sm:$0xf0]  ;;  %v9877_v61 = vld [vmem:[#allocation9 + $0x354] sm:$0xf] }
 0x38f   :  { %v8479_v62 = vld [vmem:[#allocation9 + $0x370] sm:$0xf0]  ;;  %v8573_v18 = vld [vmem:[#allocation9 + $0x410] sm:$0xf]  ;;  %v8894_v23 = vor.u32 %v9985_v59, %v8893_v16 }
 0x390   :  { %5404 = vmatpush.bf16.msra.mxu0 %v8094_v12  ;;  %5426 = vmatpush.bf16.msra.mxu2 %v8734_v13  ;;  %v9905_v2 = vld [vmem:[#allocation9 + $0x42c] sm:$0xf0]  ;;  %v8159_v12 = vld [vmem:[#allocation9 + $0xf0] sm:$0xf0]  ;;  %v8482_v58 = vor.u32 %v9877_v61, %v8479_v62 }
 0x391   :  { %v9957_v13 = vld [vmem:[#allocation9 + $0x5d4] sm:$0xf]  ;;  %v8861_v14 = vld [vmem:[#allocation9 + $0x650] sm:$0xf]  ;;  %v8574_v19 = vor.u32 %v9905_v2, %v8573_v18  ;;  %v8162_v20 = vor.u32 %v9797_v8, %v8159_v12  ;;  %v9826_v2 = vld [vmem:[#allocation9 + $0x1b4] sm:$0xf0] }
 0x392   :  { %5416 = vmatpush.bf16.msra.mxu1 %v8382_v45  ;;  %5438 = vmatpush.bf16.msra.mxu3 %v9022_v17  ;;  %v9977_v15 = vld [vmem:[#allocation9 + $0x66c] sm:$0xf0]  ;;  %v9869_v45 = vld [vmem:[#allocation9 + $0x314] sm:$0xf]  ;;  %v8802_v21 = vor.u32 %v9957_v13, %v8799_v48  ;;  %v8549_v48 = vld [vmem:[#allocation9 + $0x3d8] sm:$0xf] }
 0x393   :  { %v8447_v17 = vld [vmem:[#allocation9 + $0x330] sm:$0xf0]  ;;  %v8862_v22 = vor.u32 %v9977_v15, %v8861_v14  ;;  %v8829_v26 = vld [vmem:[#allocation9 + $0x610] sm:$0xf]  ;;  %v9898_v14 = vld [vmem:[#allocation9 + $0x3f4] sm:$0xf0] }
 0x394   :  { %5405 = vmatpush.bf16.msra.mxu0 %v8062_v24  ;;  %5427 = vmatpush.bf16.msra.mxu2 %v8702_v3  ;;  %v8450_v24 = vor.u32 %v9869_v45, %v8447_v17  ;;  %v9949_v3 = vld [vmem:[#allocation9 + $0x594] sm:$0xf]  ;;  %v9969_v51 = vld [vmem:[#allocation9 + $0x62c] sm:$0xf0]  ;;  %v8550_v44 = vor.u32 %v9898_v14, %v8549_v48  ;;  %v9866_v48 = vld [vmem:[#allocation9 + $0x2f4] sm:$0xf0] }
 0x395   :  { %v8830_v31 = vor.u32 %v9969_v51, %v8829_v26  ;;  %v10013_v39 = vld [vmem:[#allocation9 + $0x794] sm:$0xf]  ;;  %v9890_v26 = vld [vmem:[#allocation9 + $0x3b4] sm:$0xf0] }
 0x396   :  { %5417 = vmatpush.bf16.msra.mxu1 %v8350_v27  ;;  %5439 = vmatpush.bf16.msra.mxu3 %v8990_v28  ;;  %v9861_v27 = vld [vmem:[#allocation9 + $0x2d4] sm:$0xf]  ;;  %v9061_v14 = vld [vmem:[#allocation9 + $0x7d8] sm:$0xf] }
 0x397   :  { %5406 = vmatmul.bf16.vlgmr.msra.gmra.mxu0 %v10510_v47  ;;  %v8415_v28 = vld [vmem:[#allocation9 + $0x2f0] sm:$0xf0] }
 0x398   :  { %5450 = vmatpush.bf16.msrb.mxu0 %v8290_v25  ;;  %5428 = vmatpush.bf16.msra.mxu2 %v8670_v33  ;;  %v8767_v25 = vld [vmem:[#allocation9 + $0x5b0] sm:$0xf0]  ;;  %v8418_v5 = vor.u32 %v9861_v27, %v8415_v28  ;;  %v10544_v27 = vld [vmem:[%s10622_s10] sm:$0xff] }
 0x399   :  { %v8770_v6 = vor.u32 %v9949_v3, %v8767_v25  ;;  %v9941_v33 = vld [vmem:[#allocation9 + $0x554] sm:$0xf]  ;;  %v8517_v25 = vld [vmem:[#allocation9 + $0x398] sm:$0xf] }
 0x39a   :  { %5418 = vmatpush.bf16.msra.mxu1 %v8318_v35  ;;  %5440 = vmatpush.bf16.msra.mxu3 %v8958_v37  ;;  %v8735_v35 = vld [vmem:[#allocation9 + $0x570] sm:$0xf0] }
 0x39b   :  { %v9853_v37 = vld [vmem:[#allocation9 + $0x294] sm:$0xf]  ;;  %v8738_v34 = vor.u32 %v9941_v33, %v8735_v35  ;;  %v9882_v35 = vld [vmem:[#allocation9 + $0x374] sm:$0xf0] }
 0x39c   :  { %5451 = vmatpush.bf16.msrb.mxu0 %v8258_v4  ;;  %5429 = vmatpush.bf16.msra.mxu2 %v8638_v49  ;;  %v9058_v4 = vor.u32 %v10021_v29, %v9055_v54  ;;  %v8386_v43 = vor.u32 %v9853_v37, %v8383_v38  ;;  %v8063_v46 = vld [vmem:[#allocation9 + $0x30] sm:$0xf0]  ;;  %v3894_v37 = vperm.slane %v10544_v27, 0 }
 0x39d   :  { %5419 = vmatmul.bf16.vlgmr.msra.gmra.mxu1 %v10514_v63  ;;  %v9933_v11 = vld [vmem:[#allocation9 + $0x514] sm:$0xf]  ;;  %v8066_v16 = vor.u32 %v9773_v41, %v8063_v46 }
 0x39e   :  { %5463 = vmatpush.bf16.msrb.mxu1 %v8546_v40  ;;  %5441 = vmatpush.bf16.msra.mxu3 %v8926_v52  ;;  %v8098_v40 = vor.u32 %v9781_v32, %v8095_v53  ;;  %v8703_v49 = vld [vmem:[#allocation9 + $0x530] sm:$0xf0]  ;;  %v8293_v52 = vld [vmem:[#allocation9 + $0x1d8] sm:$0xf] }
 0x39f   :  { %v9845_v56 = vld [vmem:[#allocation9 + $0x254] sm:$0xf]  ;;  %v8706_v59 = vor.u32 %v9933_v11, %v8703_v49  ;;  %v8294_v61 = vor.u32 %v9834_v55, %v8293_v52  ;;  %v8805_v11 = vld [vmem:[#allocation9 + $0x5d8] sm:$0xf] }
 0x3a0   :  { %5452 = vmatpush.bf16.msrb.mxu0 %v8226_v60  ;;  %5430 = vmatpush.bf16.msra.mxu2 %v8606_v10  ;;  %v9026_v60 = vor.u32 %v10013_v39, %v9023_v36  ;;  %v8351_v57 = vld [vmem:[#allocation9 + $0x270] sm:$0xf0]  ;;  %v9962_v49 = vld [vmem:[#allocation9 + $0x5f4] sm:$0xf0] }
 0x3a1   :  { %v8991_v9 = vld [vmem:[#allocation9 + $0x770] sm:$0xf0]  ;;  %v8354_v18 = vor.u32 %v9845_v56, %v8351_v57  ;;  %v8453_v55 = vld [vmem:[#allocation9 + $0x318] sm:$0xf] }
 0x3a2   :  { %5464 = vmatpush.bf16.msrb.mxu1 %v8514_v7  ;;  %5442 = vmatpush.bf16.msra.mxu3 %v8894_v23  ;;  %v10005_v7 = vld [vmem:[#allocation9 + $0x754] sm:$0xf]  ;;  %v8261_v23 = vld [vmem:[#allocation9 + $0x198] sm:$0xf] }
 0x3a3   :  { %v9925_v62 = vld [vmem:[#allocation9 + $0x4d4] sm:$0xf]  ;;  %v8262_v45 = vor.u32 %v9826_v2, %v8261_v23  ;;  %v9874_v56 = vld [vmem:[#allocation9 + $0x334] sm:$0xf0] }
 0x3a4   :  { %5453 = vmatpush.bf16.msrb.mxu0 %v8194_v0  ;;  %5431 = vmatpush.bf16.msra.mxu2 %v8574_v19  ;;  %v8671_v10 = vld [vmem:[#allocation9 + $0x4f0] sm:$0xf0]  ;;  %v8994_v0 = vor.u32 %v10005_v7, %v8991_v9  ;;  %v8773_v23 = vld [vmem:[#allocation9 + $0x598] sm:$0xf] }
 0x3a5   :  { %v9837_v8 = vld [vmem:[#allocation9 + $0x214] sm:$0xf]  ;;  %v8674_v15 = vor.u32 %v9925_v62, %v8671_v10  ;;  %v9794_v62 = vld [vmem:[#allocation9 + $0xb4] sm:$0xf0] }
 0x3a6   :  { %5465 = vmatpush.bf16.msrb.mxu1 %v8482_v58  ;;  %5443 = vmatpush.bf16.msra.mxu3 %v8862_v22  ;;  %v8319_v12 = vld [vmem:[#allocation9 + $0x230] sm:$0xf0]  ;;  %v9818_v22 = vld [vmem:[#allocation9 + $0x174] sm:$0xf0] }
 0x3a7   :  { %5432 = vmatmul.bf16.vlgmr.msra.gmra.mxu2 %v10518_v42  ;;  %v9997_v58 = vld [vmem:[#allocation9 + $0x714] sm:$0xf]  ;;  %v8322_v17 = vor.u32 %v9837_v8, %v8319_v12  ;;  %v8230_v28 = vor.u32 %v9818_v22, %v8229_v1  ;;  %v9954_v2 = vld [vmem:[#allocation9 + $0x5b4] sm:$0xf0] }
 0x3a8   :  { %5454 = vmatpush.bf16.msrb.mxu0 %v8162_v20  ;;  %5476 = vmatpush.bf16.msrb.mxu2 %v8802_v21  ;;  %v8959_v13 = vld [vmem:[#allocation9 + $0x730] sm:$0xf0]  ;;  %v9786_v1 = vld [vmem:[#allocation9 + $0x74] sm:$0xf0] }
 0x3a9   :  { %v8962_v19 = vor.u32 %v9997_v58, %v8959_v13  ;;  %v9917_v20 = vld [vmem:[#allocation9 + $0x494] sm:$0xf]  ;;  %v8421_v13 = vld [vmem:[#allocation9 + $0x2d8] sm:$0xf] }
 0x3aa   :  { %5466 = vmatpush.bf16.msrb.mxu1 %v8450_v24  ;;  %5444 = vmatpush.bf16.msra.mxu3 %v8830_v31  ;;  %v8639_v21 = vld [vmem:[#allocation9 + $0x4b0] sm:$0xf0]  ;;  %v8518_v31 = vor.u32 %v9890_v26, %v8517_v25  ;;  %v9858_v25 = vld [vmem:[#allocation9 + $0x2b4] sm:$0xf0] }
 0x3ab   :  { %v9989_v24 = vld [vmem:[#allocation9 + $0x6d4] sm:$0xf]  ;;  %v8642_v51 = vor.u32 %v9917_v20, %v8639_v21  ;;  %v8422_v20 = vor.u32 %v9866_v48, %v8421_v13  ;;  %v8101_v21 = vld [vmem:[#allocation9 + $0x58] sm:$0xf]  ;;  %v8231_v48 = vld [vmem:[#allocation9 + $0x178] sm:$0xf0] }
 0x3ac   :  { %5455 = vmatpush.bf16.msrb.mxu0 %v8130_v30  ;;  %5477 = vmatpush.bf16.msrb.mxu2 %v8770_v6  ;;  %v8927_v3 = vld [vmem:[#allocation9 + $0x6f0] sm:$0xf0]  ;;  %v8197_v6 = vld [vmem:[#allocation9 + $0x118] sm:$0xf] }
 0x3ad   :  { %5445 = vmatmul.bf16.vlgmr.msra.gmra.mxu3 %v10522_v50  ;;  %v8930_v29 = vor.u32 %v9989_v24, %v8927_v3  ;;  %v9909_v54 = vld [vmem:[#allocation9 + $0x454] sm:$0xf]  ;;  %v9946_v24 = vld [vmem:[#allocation9 + $0x574] sm:$0xf0] }
 0x3ae   :  { %5467 = vmatpush.bf16.msrb.mxu1 %v8418_v5  ;;  %5489 = vmatpush.bf16.msrb.mxu3 %v9058_v4  ;;  %v8607_v30 = vld [vmem:[#allocation9 + $0x470] sm:$0xf0]  ;;  %v9810_v5 = vld [vmem:[#allocation9 + $0x134] sm:$0xf0] }
 0x3af   :  { %v9981_v32 = vld [vmem:[#allocation9 + $0x694] sm:$0xf]  ;;  %v8485_v4 = vld [vmem:[#allocation9 + $0x358] sm:$0xf]  ;;  %v8610_v38 = vor.u32 %v9909_v54, %v8607_v30  ;;  %v8198_v36 = vor.u32 %v9810_v5, %v8197_v6 }
 0x3b0   :  { %5456 = vmatpush.bf16.msrb.mxu0 %v8098_v40  ;;  %5478 = vmatpush.bf16.msrb.mxu2 %v8738_v34  ;;  %v8895_v53 = vld [vmem:[#allocation9 + $0x6b0] sm:$0xf0]  ;;  %v8165_v34 = vld [vmem:[#allocation9 + $0xd8] sm:$0xf]  ;;  %v8486_v46 = vor.u32 %v9882_v35, %v8485_v4  ;;  %v9830_v4 = vld [vmem:[#allocation9 + $0x1dc] sm:$0xf] }
 0x3b1   :  { %v9901_v39 = vld [vmem:[#allocation9 + $0x414] sm:$0xf]  ;;  %v8898_v40 = vor.u32 %v9981_v32, %v8895_v53  ;;  %v8389_v3 = vld [vmem:[#allocation9 + $0x298] sm:$0xf]  ;;  %v8295_v35 = vld [vmem:[#allocation9 + $0x1f8] sm:$0xf0] }
 0x3b2   :  { %5468 = vmatpush.bf16.msrb.mxu1 %v8386_v43  ;;  %5490 = vmatpush.bf16.msrb.mxu3 %v9026_v60  ;;  %v8575_v41 = vld [vmem:[#allocation9 + $0x430] sm:$0xf0]  ;;  %v9802_v43 = vld [vmem:[#allocation9 + $0xf4] sm:$0xf0]  ;;  %v8390_v6 = vor.u32 %v9858_v25, %v8389_v3  ;;  %v8199_v25 = vld [vmem:[#allocation9 + $0x138] sm:$0xf0] }
 0x3b3   :  { %v9973_v60 = vld [vmem:[#allocation9 + $0x654] sm:$0xf]  ;;  %v8578_v7 = vor.u32 %v9901_v39, %v8575_v41  ;;  %v9029_v26 = vld [vmem:[#allocation9 + $0x798] sm:$0xf] }
 0x3b4   :  { %5457 = vmatpush.bf16.msrb.mxu0 %v8066_v16  ;;  %5479 = vmatpush.bf16.msrb.mxu2 %v8706_v59  ;;  %v5199_v33 = vpop.f32.mrf.mxu0  ;;  %v8863_v52 = vld [vmem:[#allocation9 + $0x670] sm:$0xf0]  ;;  %v8166_v16 = vor.u32 %v9802_v43, %v8165_v34  ;;  %v8806_v59 = vor.u32 %v9962_v49, %v8805_v11  ;;  %v8069_v54 = vld [vmem:[#allocation9 + $0x18] sm:$0xf]  ;;  %v8298_v34 = vor.u32 %v9830_v4, %v8295_v35  ;;  %v9798_v35 = vld [vmem:[#allocation9 + $0xdc] sm:$0xf] }
 0x3b5   :  { %v5200_v57 = vadd.f32 %v5199_v33, %v3894_v37  ;;  %v9965_v8 = vld [vmem:[#allocation9 + $0x614] sm:$0xf]  ;;  %v8709_v5 = vld [vmem:[#allocation9 + $0x518] sm:$0xf] }
 0x3b6   :  { %5469 = vmatpush.bf16.msrb.mxu1 %v8354_v18  ;;  %5491 = vmatpush.bf16.msrb.mxu3 %v8994_v0  ;;  %v8866_v18 = vor.u32 %v9973_v60, %v8863_v52  ;;  %v8454_v0 = vor.u32 %v9874_v56, %v8453_v55  ;;  %v8831_v58 = vld [vmem:[#allocation9 + $0x630] sm:$0xf0]  ;;  %v9938_v32 = vld [vmem:[#allocation9 + $0x534] sm:$0xf0]  ;;  %v9822_v60 = vld [vmem:[#allocation9 + $0x19c] sm:$0xf] }
 0x3b7   :  { %5458 = vmatmul.bf16.vlgmr.msrb.gmra.mxu0 %v10510_v47  ;;  %v8357_v37 = vld [vmem:[#allocation9 + $0x258] sm:$0xf]  ;;  %v8710_v41 = vor.u32 %v9938_v32, %v8709_v5  ;;  %v8263_v52 = vld [vmem:[#allocation9 + $0x1b8] sm:$0xf0] }
 0x3b8   :  { %5502 = vmatpush.bf16.msra.mxu0 %v8294_v61  ;;  %5480 = vmatpush.bf16.msrb.mxu2 %v8674_v15  ;;  %v8133_v61 = vld [vmem:[#allocation9 + $0x98] sm:$0xf] }
 0x3b9   :  { %v10026_v15 = vld [vmem:[#allocation9 + $0x7f4] sm:$0xf0] }
 0x3ba   :  { %5470 = vmatpush.bf16.msrb.mxu1 %v8322_v17  ;;  %5492 = vmatpush.bf16.msrb.mxu3 %v8962_v19  ;;  %v5212_v9 = vpop.f32.mrf.mxu1  ;;  %v8774_v17 = vor.u32 %v9954_v2, %v8773_v23  ;;  %v8834_v19 = vor.u32 %v9965_v8, %v8831_v58  ;;  %v9062_v22 = vor.u32 %v10026_v15, %v9061_v14  ;;  %v8997_v39 = vld [vmem:[#allocation9 + $0x758] sm:$0xf]  ;;  %v9814_v58 = vld [vmem:[#allocation9 + $0x15c] sm:$0xf] }
 0x3bb   :  { %v10548_v10 = vadd.f32 %v5212_v9, %v5200_v57  ;;  %v8677_v43 = vld [vmem:[#allocation9 + $0x4d8] sm:$0xf] }
 0x3bc   :  { %5503 = vmatpush.bf16.msra.mxu0 %v8262_v45  ;;  %5481 = vmatpush.bf16.msrb.mxu2 %v8642_v51  ;;  %v5201_v12 = vpop.f32.mrf.mxu0  ;;  %v8134_v45 = vor.u32 %v9794_v62, %v8133_v61  ;;  %v10018_v51 = vld [vmem:[#allocation9 + $0x7b4] sm:$0xf0]  ;;  %v8551_v61 = vld [vmem:[#allocation9 + $0x3f8] sm:$0xf0] }
 0x3bd   :  { %5471 = vmatmul.bf16.vlgmr.msrb.gmra.mxu1 %v10514_v63  ;;  %v9030_v33 = vor.u32 %v10018_v51, %v9029_v26  ;;  %v8325_v55 = vld [vmem:[#allocation9 + $0x218] sm:$0xf] }
 0x3be   :  { %5515 = vmatpush.bf16.msra.mxu1 %v8550_v44  ;;  %5493 = vmatpush.bf16.msrb.mxu3 %v8930_v29  ;;  %v8741_v44 = vld [vmem:[#allocation9 + $0x558] sm:$0xf]  ;;  %v8102_v29 = vor.u32 %v9786_v1, %v8101_v21  ;;  %v8234_v21 = vor.u32 %v9814_v58, %v8231_v48 }
 0x3bf   :  { %v8742_v30 = vor.u32 %v9946_v24, %v8741_v44  ;;  %v9842_v56 = vld [vmem:[#allocation9 + $0x234] sm:$0xf0]  ;;  %v9806_v24 = vld [vmem:[#allocation9 + $0x11c] sm:$0xf] }
 0x3c0   :  { %5504 = vmatpush.bf16.msra.mxu0 %v8230_v28  ;;  %5482 = vmatpush.bf16.msrb.mxu2 %v8610_v38  ;;  %v9850_v38 = vld [vmem:[#allocation9 + $0x274] sm:$0xf0]  ;;  %v8326_v23 = vor.u32 %v9842_v56, %v8325_v55  ;;  %v8202_v32 = vor.u32 %v9806_v24, %v8199_v25  ;;  %v8135_v55 = vld [vmem:[#allocation9 + $0xb8] sm:$0xf0] }
 0x3c1   :  { %v8358_v11 = vor.u32 %v9850_v38, %v8357_v37  ;;  %v8965_v57 = vld [vmem:[#allocation9 + $0x718] sm:$0xf]  ;;  %v8167_v37 = vld [vmem:[#allocation9 + $0xf8] sm:$0xf0] }
 0x3c2   :  { %5516 = vmatpush.bf16.msra.mxu1 %v8518_v31  ;;  %5494 = vmatpush.bf16.msrb.mxu3 %v8898_v40  ;;  %v5214_v28 = vpop.f32.mrf.mxu1  ;;  %v9778_v31 = vld [vmem:[#allocation9 + $0x34] sm:$0xf0]  ;;  %v10014_v24 = vld [vmem:[#allocation9 + $0x79c] sm:$0xf] }
 0x3c3   :  { %v8070_v40 = vor.u32 %v9778_v31, %v8069_v54  ;;  %v8645_v8 = vld [vmem:[#allocation9 + $0x498] sm:$0xf]  ;;  %v9878_v54 = vld [vmem:[#allocation9 + $0x35c] sm:$0xf] }
 0x3c4   :  { %5505 = vmatpush.bf16.msra.mxu0 %v8198_v36  ;;  %5483 = vmatpush.bf16.msrb.mxu2 %v8578_v7  ;;  %v10551_v53 = vpop.f32.mrf.mxu0  ;;  %v10010_v36 = vld [vmem:[#allocation9 + $0x774] sm:$0xf0] }
 0x3c5   :  { %v8998_v49 = vor.u32 %v10010_v36, %v8997_v39  ;;  %v10002_v7 = vld [vmem:[#allocation9 + $0x734] sm:$0xf0]  ;;  %v9958_v39 = vld [vmem:[#allocation9 + $0x5dc] sm:$0xf] }
 0x3c6   :  { %5517 = vmatpush.bf16.msra.mxu1 %v8486_v46  ;;  %5495 = vmatpush.bf16.msrb.mxu3 %v8866_v18  ;;  %v9930_v46 = vld [vmem:[#allocation9 + $0x4f4] sm:$0xf0]  ;;  %v8266_v18 = vor.u32 %v9822_v60, %v8263_v52  ;;  %v8966_v2 = vor.u32 %v10002_v7, %v8965_v57  ;;  %v8807_v36 = vld [vmem:[#allocation9 + $0x5f8] sm:$0xf0] }
 0x3c7   :  { %5484 = vmatmul.bf16.vlgmr.msrb.gmra.mxu2 %v10518_v42  ;;  %v8678_v62 = vor.u32 %v9930_v46, %v8677_v43  ;;  %v9922_v12 = vld [vmem:[#allocation9 + $0x4b4] sm:$0xf0]  ;;  %v8455_v43 = vld [vmem:[#allocation9 + $0x338] sm:$0xf0]  ;;  %v8810_v60 = vor.u32 %v9958_v39, %v8807_v36 }
 0x3c8   :  { %5506 = vmatpush.bf16.msra.mxu0 %v8166_v16  ;;  %5528 = vmatpush.bf16.msra.mxu2 %v8806_v59  ;;  %v9894_v59 = vld [vmem:[#allocation9 + $0x3dc] sm:$0xf]  ;;  %v8933_v14 = vld [vmem:[#allocation9 + $0x6d8] sm:$0xf] }
 0x3c9   :  { %v8554_v13 = vor.u32 %v9894_v59, %v8551_v61  ;;  %v9994_v15 = vld [vmem:[#allocation9 + $0x6f4] sm:$0xf0]  ;;  %v9790_v52 = vld [vmem:[#allocation9 + $0x9c] sm:$0xf] }
 0x3ca   :  { %5518 = vmatpush.bf16.msra.mxu1 %v8454_v0  ;;  %5496 = vmatpush.bf16.msrb.mxu3 %v8834_v19  ;;  %v10554_v9 = vpop.f32.mrf.mxu2  ;;  %v10556_v16 = vpop.f32.mrf.mxu1  ;;  %v8646_v19 = vor.u32 %v9922_v12, %v8645_v8  ;;  %v8934_v1 = vor.u32 %v9994_v15, %v8933_v14  ;;  %v8613_v44 = vld [vmem:[#allocation9 + $0x458] sm:$0xf]  ;;  %v9950_v7 = vld [vmem:[#allocation9 + $0x59c] sm:$0xf] }
 0x3cb   :  { %v8901_v26 = vld [vmem:[#allocation9 + $0x698] sm:$0xf]  ;;  %v8775_v59 = vld [vmem:[#allocation9 + $0x5b8] sm:$0xf0] }
 0x3cc   :  { %5507 = vmatpush.bf16.msra.mxu0 %v8134_v45  ;;  %5529 = vmatpush.bf16.msra.mxu2 %v8774_v17  ;;  %v5253_v0 = vpop.f32.mrf.mxu0  ;;  %v9886_v45 = vld [vmem:[#allocation9 + $0x39c] sm:$0xf]  ;;  %v9986_v51 = vld [vmem:[#allocation9 + $0x6b4] sm:$0xf0]  ;;  %v8778_v48 = vor.u32 %v9950_v7, %v8775_v59 }
 0x3cd   :  { %5497 = vmatmul.bf16.vlgmr.msrb.gmra.mxu3 %v10522_v50  ;;  %v8519_v17 = vld [vmem:[#allocation9 + $0x3b8] sm:$0xf0]  ;;  %v8581_v31 = vld [vmem:[#allocation9 + $0x418] sm:$0xf] }
 0x3ce   :  { %5519 = vmatpush.bf16.msra.mxu1 %v8422_v20  ;;  %5541 = vmatpush.bf16.msra.mxu3 %v9062_v22  ;;  %v9914_v22 = vld [vmem:[#allocation9 + $0x474] sm:$0xf0]  ;;  %v8522_v3 = vor.u32 %v9886_v45, %v8519_v17  ;;  %v9862_v0 = vld [vmem:[#allocation9 + $0x2dc] sm:$0xf] }
 0x3cf   :  { %v9906_v4 = vld [vmem:[#allocation9 + $0x434] sm:$0xf0]  ;;  %v10022_v8 = vld [vmem:[#allocation9 + $0x7dc] sm:$0xf] }
 0x3d0   :  { %5508 = vmatpush.bf16.msra.mxu0 %v8102_v29  ;;  %5530 = vmatpush.bf16.msra.mxu2 %v8742_v30  ;;  %v10559_v20 = vpop.f32.mrf.mxu3  ;;  %v8487_v30 = vld [vmem:[#allocation9 + $0x378] sm:$0xf0]  ;;  %v8582_v46 = vor.u32 %v9906_v4, %v8581_v31  ;;  %v8837_v61 = vld [vmem:[#allocation9 + $0x618] sm:$0xf] }
 0x3d1   :  { %v8490_v38 = vor.u32 %v9878_v54, %v8487_v30  ;;  %v9063_v12 = vld [vmem:[#allocation9 + $0x7f8] sm:$0xf0] }
 0x3d2   :  { %5520 = vmatpush.bf16.msra.mxu1 %v8390_v6  ;;  %5542 = vmatpush.bf16.msra.mxu3 %v9030_v33  ;;  %v5227_v28 = vpop.f32.mrf.mxu2  ;;  %v5266_v29 = vpop.f32.mrf.mxu1  ;;  %v8614_v6 = vor.u32 %v9914_v22, %v8613_v44  ;;  %v8902_v33 = vor.u32 %v9986_v51, %v8901_v26  ;;  %v9782_v45 = vld [vmem:[#allocation9 + $0x5c] sm:$0xf] }
 0x3d3   :  { %v8103_v17 = vld [vmem:[#allocation9 + $0x78] sm:$0xf0] }
 0x3d4   :  { %5509 = vmatpush.bf16.msra.mxu0 %v8070_v40  ;;  %5531 = vmatpush.bf16.msra.mxu2 %v8710_v41  ;;  %v10562_v5 = vpop.f32.mrf.mxu0  ;;  %v8869_v40 = vld [vmem:[#allocation9 + $0x658] sm:$0xf]  ;;  %v9854_v44 = vld [vmem:[#allocation9 + $0x29c] sm:$0xf]  ;;  %v8106_v26 = vor.u32 %v9782_v45, %v8103_v17  ;;  %v10041_v45 = vld [vmem:[#allocation10 + $0x70] sm:$0xff] }
 0x3d5   :  { %v9978_v41 = vld [vmem:[#allocation9 + $0x674] sm:$0xf0]  ;;  %v8391_v22 = vld [vmem:[#allocation9 + $0x2b8] sm:$0xf0] }
 0x3d6   :  { %5521 = vmatpush.bf16.msra.mxu1 %v8358_v11  ;;  %5543 = vmatpush.bf16.msra.mxu3 %v8998_v49  ;;  %v8170_v49 = vor.u32 %v9798_v35, %v8167_v37  ;;  %v8870_v56 = vor.u32 %v9978_v41, %v8869_v40  ;;  %v8394_v28 = vor.u32 %v9854_v44, %v8391_v22  ;;  %v9774_v29 = vld [vmem:[#allocation9 + $0x1c] sm:$0xf]  ;;  %v10031_v44 = vld [vmem:[#allocation10 + $0x20] sm:$0xff] }
 0x3d7   :  { %5510 = vmatmul.bf16.vlgmr.msra.gmra.mxu0 %v10510_v47  ;;  %v8071_v54 = vld [vmem:[#allocation9 + $0x38] sm:$0xf0] }
 0x3d8   :  { %5554 = vmatpush.bf16.msrb.mxu0 %v8298_v34  ;;  %5532 = vmatpush.bf16.msra.mxu2 %v8678_v62  ;;  %v9870_v34 = vld [vmem:[#allocation9 + $0x31c] sm:$0xf]  ;;  %v5240_v11 = vpop.f32.mrf.mxu3  ;;  %v8074_v39 = vor.u32 %v9774_v29, %v8071_v54 }
 0x3d9   :  { %v8458_v57 = vor.u32 %v9870_v34, %v8455_v43  ;;  %v9934_v31 = vld [vmem:[#allocation9 + $0x51c] sm:$0xf] }
 0x3da   :  { %5522 = vmatpush.bf16.msra.mxu1 %v8326_v23  ;;  %5544 = vmatpush.bf16.msra.mxu3 %v8966_v2  ;;  %v10564_v62 = vpop.f32.mrf.mxu2  ;;  %v8423_v23 = vld [vmem:[#allocation9 + $0x2f8] sm:$0xf0]  ;;  %v10566_v2 = vpop.f32.mrf.mxu1 }
 0x3db   :  { %v8426_v15 = vor.u32 %v9862_v0, %v8423_v23  ;;  %v8359_v35 = vld [vmem:[#allocation9 + $0x278] sm:$0xf0] }
 0x3dc   :  { %5555 = vmatpush.bf16.msrb.mxu0 %v8266_v18  ;;  %5533 = vmatpush.bf16.msra.mxu2 %v8646_v19  ;;  %v9970_v18 = vld [vmem:[#allocation9 + $0x634] sm:$0xf0]  ;;  %v5305_v58 = vpop.f32.mrf.mxu0  ;;  %v9942_v19 = vld [vmem:[#allocation9 + $0x55c] sm:$0xf] }
 0x3dd   :  { %5523 = vmatmul.bf16.vlgmr.msra.gmra.mxu1 %v10514_v63  ;;  %v8838_v14 = vor.u32 %v9970_v18, %v8837_v61  ;;  %v10006_v37 = vld [vmem:[#allocation9 + $0x75c] sm:$0xf] }
 0x3de   :  { %5567 = vmatpush.bf16.msrb.mxu1 %v8554_v13  ;;  %5545 = vmatpush.bf16.msra.mxu3 %v8934_v1  ;;  %v8138_v13 = vor.u32 %v9790_v52, %v8135_v55  ;;  %v8743_v1 = vld [vmem:[#allocation9 + $0x578] sm:$0xf0] }
 0x3df   :  { %v8746_v51 = vor.u32 %v9942_v19, %v8743_v1  ;;  %v10034_v40 = vld [vmem:[#allocation10 + $0x38] sm:$0xff] }
 0x3e0   :  { %5556 = vmatpush.bf16.msrb.mxu0 %v8234_v21  ;;  %5534 = vmatpush.bf16.msra.mxu2 %v8614_v6  ;;  %v9066_v21 = vor.u32 %v10022_v8, %v9063_v12  ;;  %v10569_v25 = vpop.f32.mrf.mxu3  ;;  %v9926_v43 = vld [vmem:[#allocation9 + $0x4dc] sm:$0xf] }
 0x3e1   :  { %v9838_v11 = vld [vmem:[#allocation9 + $0x21c] sm:$0xf] }
 0x3e2   :  { %5568 = vmatpush.bf16.msrb.mxu1 %v8522_v3  ;;  %5546 = vmatpush.bf16.msra.mxu3 %v8902_v33  ;;  %v9031_v3 = vld [vmem:[#allocation9 + $0x7b8] sm:$0xf0]  ;;  %v5279_v30 = vpop.f32.mrf.mxu2  ;;  %v5318_v4 = vpop.f32.mrf.mxu1 }
 0x3e3   :  { %v9034_v6 = vor.u32 %v10014_v24, %v9031_v3  ;;  %v9846_v33 = vld [vmem:[#allocation9 + $0x25c] sm:$0xf] }
 0x3e4   :  { %5557 = vmatpush.bf16.msrb.mxu0 %v8202_v32  ;;  %5535 = vmatpush.bf16.msra.mxu2 %v8582_v46  ;;  %v8711_v32 = vld [vmem:[#allocation9 + $0x538] sm:$0xf0]  ;;  %v8362_v41 = vor.u32 %v9846_v33, %v8359_v35 }
 0x3e5   :  { %v8714_v36 = vor.u32 %v9934_v31, %v8711_v32  ;;  %v8679_v46 = vld [vmem:[#allocation9 + $0x4f8] sm:$0xf0]  ;;  %v10039_v32 = vld [vmem:[#allocation10 + $0x60] sm:$0xff] }
 0x3e6   :  { %5569 = vmatpush.bf16.msrb.mxu1 %v8490_v38  ;;  %5547 = vmatpush.bf16.msra.mxu3 %v8870_v56  ;;  %v8999_v38 = vld [vmem:[#allocation9 + $0x778] sm:$0xf0]  ;;  %v8682_v56 = vor.u32 %v9926_v43, %v8679_v46  ;;  %v5226_v43 = vadd.f32 %v10554_v9, %v10548_v10  ;;  %v10027_v10 = vld [vmem:[#allocation10] sm:$0xff] }
 0x3e7   :  { %5536 = vmatmul.bf16.vlgmr.msra.gmra.mxu2 %v10518_v42  ;;  %v9002_v34 = vor.u32 %v10006_v37, %v8999_v38  ;;  %v8967_v52 = vld [vmem:[#allocation9 + $0x738] sm:$0xf0]  ;;  %v3895_v38 = vperm.slane %v10544_v27, 1  ;;  %v10047_v9 = vld [vmem:[#allocation10 + $0xa0] sm:$0xff] }
 0x3e8   :  { %5558 = vmatpush.bf16.msrb.mxu0 %v8170_v49  ;;  %5580 = vmatpush.bf16.msrb.mxu2 %v8810_v60  ;;  %v8327_v49 = vld [vmem:[#allocation9 + $0x238] sm:$0xf0]  ;;  %v5292_v55 = vpop.f32.mrf.mxu3 }
 0x3e9   :  { %v9998_v60 = vld [vmem:[#allocation9 + $0x71c] sm:$0xf]  ;;  %v8330_v59 = vor.u32 %v9838_v11, %v8327_v49  ;;  %v5252_v46 = vadd.f32 %v10551_v53, %v3895_v38  ;;  %v10028_v11 = vld [vmem:[#allocation10 + $0x8] sm:$0xff]  ;;  %v5239_v49 = vadd.f32 %v10559_v20, %v5226_v43  ;;  %v10037_v55 = vld [vmem:[#allocation10 + $0x50] sm:$0xff] }
 0x3ea   :  { %5570 = vmatpush.bf16.msrb.mxu1 %v8458_v57  ;;  %5548 = vmatpush.bf16.msra.mxu3 %v8838_v14  ;;  %v10033_v57 = vld [vmem:[#allocation10 + $0x30] sm:$0xff]  ;;  %v10572_v7 = vpop.f32.mrf.mxu2  ;;  %v8970_v61 = vor.u32 %v9998_v60, %v8967_v52  ;;  %v9918_v18 = vld [vmem:[#allocation9 + $0x49c] sm:$0xf]  ;;  %v10048_v60 = vld [vmem:[#allocation10 + $0xa8] sm:$0xff] }
 0x3eb   :  { %v8647_v0 = vld [vmem:[#allocation9 + $0x4b8] sm:$0xf0]  ;;  %v5606_v53 = vmax.f32 %v5239_v49, 0.0  ;;  %v10036_v20 = vld [vmem:[#allocation10 + $0x48] sm:$0xff]  ;;  %v10059_v43 = vld [vmem:[#allocation10 + $0x100] sm:$0xff] }
 0x3ec   :  { %5559 = vmatpush.bf16.msrb.mxu0 %v8138_v13  ;;  %5581 = vmatpush.bf16.msrb.mxu2 %v8778_v48  ;;  %v10042_v23 = vld [vmem:[#allocation10 + $0x78] sm:$0xff]  ;;  %v8650_v58 = vor.u32 %v9918_v18, %v8647_v0  ;;  %v10032_v13 = vld [vmem:[#allocation10 + $0x28] sm:$0xff] }
 0x3ed   :  { %5549 = vmatmul.bf16.vlgmr.msra.gmra.mxu3 %v10522_v50  ;;  %v9990_v8 = vld [vmem:[#allocation9 + $0x6dc] sm:$0xf]  ;;  %v5614_v0 = vpack.c.bf16 %v5606_v53, %v5606_v53 }
 0x3ee   :  { %5571 = vmatpush.bf16.msrb.mxu1 %v8426_v15  ;;  %5593 = vmatpush.bf16.msrb.mxu3 %v9066_v21  ;;  %v8935_v12 = vld [vmem:[#allocation9 + $0x6f8] sm:$0xf0] }
 0x3ef   :  { %v8938_v48 = vor.u32 %v9990_v8, %v8935_v12  ;;  %v9910_v14 = vld [vmem:[#allocation9 + $0x45c] sm:$0xf]  ;;  %v10055_v12 = vld [vmem:[#allocation10 + $0xe0] sm:$0xff] }
 0x3f0   :  { %5560 = vmatpush.bf16.msrb.mxu0 %v8106_v26  ;;  %5582 = vmatpush.bf16.msrb.mxu2 %v8746_v51  ;;  %v8615_v15 = vld [vmem:[#allocation9 + $0x478] sm:$0xf0]  ;;  %v10040_v51 = vld [vmem:[#allocation10 + $0x68] sm:$0xff] }
 0x3f1   :  { %v9982_v17 = vld [vmem:[#allocation9 + $0x69c] sm:$0xf]  ;;  %v8618_v1 = vor.u32 %v9910_v14, %v8615_v15 }
 0x3f2   :  { %5572 = vmatpush.bf16.msrb.mxu1 %v8394_v28  ;;  %5594 = vmatpush.bf16.msrb.mxu3 %v9034_v6  ;;  %v8903_v19 = vld [vmem:[#allocation9 + $0x6b8] sm:$0xf0]  ;;  %v5331_v22 = vpop.f32.mrf.mxu2 }
 0x3f3   :  { %v8906_v24 = vor.u32 %v9982_v17, %v8903_v19  ;;  %v9902_v3 = vld [vmem:[#allocation9 + $0x41c] sm:$0xf]  ;;  %v10064_v17 = vld [vmem:[#allocation10 + $0x128] sm:$0xff] }
 0x3f4   :  { %5561 = vmatpush.bf16.msrb.mxu0 %v8074_v39  ;;  %5583 = vmatpush.bf16.msrb.mxu2 %v8714_v36  ;;  %v10578_v21 = vpop.f32.mrf.mxu0  ;;  %v8583_v26 = vld [vmem:[#allocation9 + $0x438] sm:$0xf0]  ;;  %v10029_v39 = vld [vmem:[#allocation10 + $0x10] sm:$0xff] }
 0x3f5   :  { %v9974_v28 = vld [vmem:[#allocation9 + $0x65c] sm:$0xf]  ;;  %v8586_v54 = vor.u32 %v9902_v3, %v8583_v26  ;;  %v10049_v36 = vld [vmem:[#allocation10 + $0xb0] sm:$0xff] }
 0x3f6   :  { %5573 = vmatpush.bf16.msrb.mxu1 %v8362_v41  ;;  %5595 = vmatpush.bf16.msrb.mxu3 %v9002_v34  ;;  %v8871_v29 = vld [vmem:[#allocation9 + $0x678] sm:$0xf0]  ;;  %v10053_v26 = vld [vmem:[#allocation10 + $0xd0] sm:$0xff] }
 0x3f7   :  { %5562 = vmatmul.bf16.vlgmr.msrb.gmra.mxu0 %v10510_v47  ;;  %v10576_v47 = vpop.f32.mrf.mxu3  ;;  %v10050_v30 = vld [vmem:[#allocation10 + $0xb8] sm:$0xff]  ;;  %v8874_v31 = vor.u32 %v9974_v28, %v8871_v29 }
 0x3f8   :  { %6138 = vmatpush.bf16.msra.mxu0 %v10034_v40  ;;  %5584 = vmatpush.bf16.msrb.mxu2 %v8682_v56  ;;  %v9966_v33 = vld [vmem:[#allocation9 + $0x61c] sm:$0xf]  ;;  %v5265_v56 = vadd.f32 %v10556_v16, %v5252_v46  ;;  %v3896_v16 = vperm.slane %v10544_v27, 2  ;;  %v3898_v46 = vperm.slane %v10544_v27, 4 }
 0x3f9   :  { %v8839_v4 = vld [vmem:[#allocation9 + $0x638] sm:$0xf0] }
 0x3fa   :  { %5574 = vmatpush.bf16.msrb.mxu1 %v8330_v59  ;;  %5596 = vmatpush.bf16.msrb.mxu3 %v8970_v61  ;;  %v10580_v6 = vpop.f32.mrf.mxu1  ;;  %v8842_v40 = vor.u32 %v9966_v33, %v8839_v4  ;;  %v10038_v41 = vld [vmem:[#allocation10 + $0x58] sm:$0xff]  ;;  %v10056_v61 = vld [vmem:[#allocation10 + $0xe8] sm:$0xff] }
 0x3fb   :  { %v10058_v34 = vld [vmem:[#allocation10 + $0xf8] sm:$0xff]  ;;  %v10072_v4 = vld [vmem:[#allocation10 + $0x168] sm:$0xff] }
 0x3fc   :  { %6139 = vmatpush.bf16.msra.mxu0 %v10033_v57  ;;  %5585 = vmatpush.bf16.msrb.mxu2 %v8650_v58  ;;  %v5357_v37 = vpop.f32.mrf.mxu0  ;;  %v5278_v57 = vadd.f32 %v10564_v62, %v5265_v56  ;;  %v10066_v18 = vld [vmem:[#allocation10 + $0x138] sm:$0xff]  ;;  %v10065_v58 = vld [vmem:[#allocation10 + $0x130] sm:$0xff]  ;;  %v10068_v56 = vld [vmem:[#allocation10 + $0x148] sm:$0xff] }
 0x3fd   :  { %5575 = vmatmul.bf16.vlgmr.msrb.gmra.mxu1 %v10514_v63  ;;  %v10030_v63 = vld [vmem:[#allocation10 + $0x18] sm:$0xff]  ;;  %v10061_v37 = vld [vmem:[#allocation10 + $0x110] sm:$0xff] }
 0x3fe   :  { %6151 = vmatpush.bf16.msra.mxu1 %v10042_v23  ;;  %5597 = vmatpush.bf16.msrb.mxu3 %v8938_v48  ;;  %v5291_v59 = vadd.f32 %v10569_v25, %v5278_v57  ;;  %v10046_v62 = vld [vmem:[#allocation10 + $0x98] sm:$0xff]  ;;  %v10035_v23 = vld [vmem:[#allocation10 + $0x40] sm:$0xff]  ;;  %v5304_v25 = vadd.f32 %v10562_v5, %v3896_v16  ;;  %v10045_v48 = vld [vmem:[#allocation10 + $0x90] sm:$0xff] }
 0x3ff   :  { %v5344_v35 = vpop.f32.mrf.mxu3  ;;  %v10044_v5 = vld [vmem:[#allocation10 + $0x88] sm:$0xff]  ;;  %v10081_v16 = vld [vmem:[#allocation10 + $0x1b0] sm:$0xff] }
 0x400   :  { %6140 = vmatpush.bf16.msra.mxu0 %v10032_v13  ;;  %5586 = vmatpush.bf16.msrb.mxu2 %v8618_v1  ;;  %v5607_v8 = vmax.f32 %v5291_v59, 0.0  ;;  %v3897_v13 = vperm.slane %v10544_v27, 3  ;;  %v5317_v14 = vadd.f32 %v10566_v2, %v5304_v25  ;;  %v10063_v2 = vld [vmem:[#allocation10 + $0x120] sm:$0xff]  ;;  %v10082_v59 = vld [vmem:[#allocation10 + $0x1b8] sm:$0xff]  ;;  %v10077_v25 = vld [vmem:[#allocation10 + $0x190] sm:$0xff] }
 0x402   :  { %6152 = vmatpush.bf16.msra.mxu1 %v10041_v45  ;;  %5598 = vmatpush.bf16.msrb.mxu3 %v8906_v24  ;;  %v5370_v52 = vpop.f32.mrf.mxu1  ;;  %v5615_v15 = vpack.c.bf16 %v5607_v8, %v5607_v8  ;;  %v10054_v45 = vld [vmem:[#allocation10 + $0xd8] sm:$0xff]  ;;  %v5330_v1 = vadd.f32 %v10572_v7, %v5317_v14  ;;  %v5356_v22 = vadd.f32 %v10578_v21, %v3897_v13  ;;  %v10043_v7 = vld [vmem:[#allocation10 + $0x80] sm:$0xff]  ;;  %v10052_v21 = vld [vmem:[#allocation10 + $0xc8] sm:$0xff] }
 0x404   :  { %6141 = vmatpush.bf16.msra.mxu0 %v10031_v44  ;;  %5587 = vmatpush.bf16.msrb.mxu2 %v8586_v54  ;;  %v5343_v3 = vadd.f32 %v10576_v47, %v5330_v1  ;;  %v5369_v28 = vadd.f32 %v10580_v6, %v5356_v22  ;;  %v10051_v6 = vld [vmem:[#allocation10 + $0xc0] sm:$0xff] }
 0x405   :  { %v10075_v22 = vld [vmem:[#allocation10 + $0x180] sm:$0xff] }
 0x406   :  { %6153 = vmatpush.bf16.msra.mxu1 %v10040_v51  ;;  %5599 = vmatpush.bf16.msrb.mxu3 %v8874_v31  ;;  %v10074_v51 = vld [vmem:[#allocation10 + $0x178] sm:$0xff]  ;;  %v5608_v54 = vmax.f32 %v5343_v3, 0.0  ;;  %v10073_v31 = vld [vmem:[#allocation10 + $0x170] sm:$0xff] }
 0x407   :  { %5588 = vmatmul.bf16.vlgmr.msrb.gmra.mxu2 %v10518_v42  ;;  %v10057_v42 = vld [vmem:[#allocation10 + $0xf0] sm:$0xff] }
 0x408   :  { %6142 = vmatpush.bf16.msra.mxu0 %v10030_v63  ;;  %6164 = vmatpush.bf16.msra.mxu2 %v10050_v30  ;;  %v10062_v30 = vld [vmem:[#allocation10 + $0x118] sm:$0xff]  ;;  %v5616_v35 = vpack.c.bf16 %v5608_v54, %v5608_v54 }
 0x40a   :  { %6154 = vmatpush.bf16.msra.mxu1 %v10039_v32  ;;  %5600 = vmatpush.bf16.msrb.mxu3 %v8842_v40  ;;  %v10060_v40 = vld [vmem:[#allocation10 + $0x108] sm:$0xff] }
 0x40c   :  { %6143 = vmatpush.bf16.msra.mxu0 %v10029_v39  ;;  %6165 = vmatpush.bf16.msra.mxu2 %v10049_v36  ;;  %v10071_v39 = vld [vmem:[#allocation10 + $0x160] sm:$0xff] }
 0x40d   :  { %5601 = vmatmul.bf16.vlgmr.msrb.gmra.mxu3 %v10522_v50  ;;  %v5381_v50 = vpop.f32.mrf.mxu2 }
 0x40e   :  { %6155 = vmatpush.bf16.msra.mxu1 %v10038_v41  ;;  %6177 = vmatpush.bf16.msra.mxu3 %v10058_v34  ;;  %v5382_v29 = vadd.f32 %v5381_v50, %v5369_v28  ;;  %v10070_v34 = vld [vmem:[#allocation10 + $0x158] sm:$0xff]  ;;  %v10080_v50 = vld [vmem:[#allocation10 + $0x1a8] sm:$0xff] }
 0x410   :  { %6144 = vmatpush.bf16.msra.mxu0 %v10028_v11  ;;  %6166 = vmatpush.bf16.msra.mxu2 %v10048_v60  ;;  %v5394_v19 = vpop.f32.mrf.mxu3  ;;  %v10069_v11 = vld [vmem:[#allocation10 + $0x150] sm:$0xff] }
 0x411   :  { %v5395_v32 = vadd.f32 %v5394_v19, %v5382_v29  ;;  %v10088_v29 = vld [vmem:[#allocation10 + $0x1e8] sm:$0xff] }
 0x412   :  { %6156 = vmatpush.bf16.msra.mxu1 %v10037_v55  ;;  %6178 = vmatpush.bf16.msra.mxu3 %v10057_v42 }
 0x413   :  { %v5609_v38 = vmax.f32 %v5395_v32, 0.0 }
 0x414   :  { %6145 = vmatpush.bf16.msra.mxu0 %v10027_v10  ;;  %6167 = vmatpush.bf16.msra.mxu2 %v10047_v9  ;;  %v5407_v44 = vpop.f32.mrf.mxu0 }
 0x415   :  { %v5383_v24 = vpop.f32.mrf.mxu2  ;;  %v5617_v41 = vpack.c.bf16 %v5609_v38, %v5609_v38  ;;  %v5408_v60 = vadd.f32 %v5407_v44, %v3898_v46  ;;  %v10083_v38 = vld [vmem:[#allocation10 + $0x1c0] sm:$0xff] }
 0x416   :  { %6157 = vmatpush.bf16.msra.mxu1 %v10036_v20  ;;  %6179 = vmatpush.bf16.msra.mxu3 %v10056_v61  ;;  %v10067_v20 = vld [vmem:[#allocation10 + $0x140] sm:$0xff]  ;;  %v10090_v24 = vld [vmem:[#allocation10 + $0x1f8] sm:$0xff] }
 0x417   :  { %6146 = vmatmul.bf16.vlgmr.msra.gmra.mxu0 %v5614_v0  ;;  %v10106_v46 = vld [vmem:[%s10622_s10] sm:$0xff] }
 0x418   :  { %6190 = vmatpush.bf16.msrb.mxu0 %v10066_v18  ;;  %6168 = vmatpush.bf16.msra.mxu2 %v10046_v62  ;;  %v5396_v47 = vpop.f32.mrf.mxu3 }
 0x41a   :  { %6158 = vmatpush.bf16.msra.mxu1 %v10035_v23  ;;  %6180 = vmatpush.bf16.msra.mxu3 %v10055_v12  ;;  %v5420_v63 = vpop.f32.mrf.mxu1  ;;  %v10079_v23 = vld [vmem:[#allocation10 + $0x1a0] sm:$0xff]  ;;  %v10078_v12 = vld [vmem:[#allocation10 + $0x198] sm:$0xff] }
 0x41b   :  { %v5421_v52 = vadd.f32 %v5420_v63, %v5408_v60  ;;  %v10086_v63 = vld [vmem:[#allocation10 + $0x1d8] sm:$0xff] }
 0x41c   :  { %6191 = vmatpush.bf16.msrb.mxu0 %v10065_v58  ;;  %6169 = vmatpush.bf16.msra.mxu2 %v10045_v48  ;;  %v5409_v33 = vpop.f32.mrf.mxu0  ;;  %v3899_v58 = vperm.slane %v10544_v27, 5 }
 0x41d   :  { %6159 = vmatmul.bf16.vlgmr.msra.gmra.mxu1 %v5615_v15  ;;  %v10076_v15 = vld [vmem:[#allocation10 + $0x188] sm:$0xff] }
 0x41e   :  { %6181 = vmatpush.bf16.msra.mxu3 %v10054_v45  ;;  %6203 = vmatpush.bf16.msrb.mxu1 %v10074_v51  ;;  %v10084_v33 = vld [vmem:[#allocation10 + $0x1c8] sm:$0xff] }
 0x420   :  { %6192 = vmatpush.bf16.msrb.mxu0 %v10064_v17  ;;  %6170 = vmatpush.bf16.msra.mxu2 %v10044_v5 }
 0x422   :  { %6182 = vmatpush.bf16.msra.mxu3 %v10053_v26  ;;  %6204 = vmatpush.bf16.msrb.mxu1 %v10073_v31  ;;  %v5422_v36 = vpop.f32.mrf.mxu1 }
 0x424   :  { %6193 = vmatpush.bf16.msrb.mxu0 %v10063_v2  ;;  %6171 = vmatpush.bf16.msra.mxu2 %v10043_v7  ;;  %v10089_v2 = vld [vmem:[#allocation10 + $0x1f0] sm:$0xff]  ;;  %v10087_v7 = vld [vmem:[#allocation10 + $0x1e0] sm:$0xff] }
 0x426   :  { %6183 = vmatpush.bf16.msra.mxu3 %v10052_v21  ;;  %6205 = vmatpush.bf16.msrb.mxu1 %v10072_v4  ;;  %v3900_v21 = vperm.slane %v10544_v27, 6 }
 0x427   :  { %6172 = vmatmul.bf16.vlgmr.msra.gmra.mxu2 %v5616_v35 }
 0x428   :  { %6194 = vmatpush.bf16.msrb.mxu0 %v10062_v30  ;;  %6216 = vmatpush.bf16.msrb.mxu2 %v10082_v59  ;;  %v10085_v30 = vld [vmem:[#allocation10 + $0x1d0] sm:$0xff] }
 0x42a   :  { %6184 = vmatpush.bf16.msra.mxu3 %v10051_v6  ;;  %6206 = vmatpush.bf16.msrb.mxu1 %v10071_v39  ;;  %v5433_v49 = vpop.f32.mrf.mxu2 }
 0x42b   :  { %v5434_v55 = vadd.f32 %v5433_v49, %v5421_v52 }
 0x42c   :  { %6195 = vmatpush.bf16.msrb.mxu0 %v10061_v37  ;;  %6217 = vmatpush.bf16.msrb.mxu2 %v10081_v16 }
 0x42d   :  { %6185 = vmatmul.bf16.vlgmr.msra.gmra.mxu3 %v5617_v41 }
 0x42e   :  { %6207 = vmatpush.bf16.msrb.mxu1 %v10070_v34  ;;  %6229 = vmatpush.bf16.msrb.mxu3 %v10090_v24 }
 0x430   :  { %6196 = vmatpush.bf16.msrb.mxu0 %v10060_v40  ;;  %v5446_v42 = vpop.f32.mrf.mxu3  ;;  %6218 = vmatpush.bf16.msrb.mxu2 %v10080_v50 }
 0x431   :  { %v5447_v57 = vadd.f32 %v5446_v42, %v5434_v55 }
 0x432   :  { %6208 = vmatpush.bf16.msrb.mxu1 %v10069_v11  ;;  %v5435_v53 = vpop.f32.mrf.mxu2  ;;  %6230 = vmatpush.bf16.msrb.mxu3 %v10089_v2  ;;  %v3901_v11 = vperm.slane %v10106_v46, 7 }
 0x433   :  { %v5610_v9 = vmax.f32 %v5447_v57, 0.0  ;;  %v10105_v57 = vld [vmem:[%s10624_s12] ss:$0 sm:$0xff] }
 0x434   :  { %6197 = vmatpush.bf16.msrb.mxu0 %v10059_v43  ;;  %v5459_v10 = vpop.f32.mrf.mxu0  ;;  %6219 = vmatpush.bf16.msrb.mxu2 %v10079_v23 }
 0x435   :  { %v5618_v61 = vpack.c.bf16 %v5610_v9, %v5610_v9  ;;  %v5460_v48 = vadd.f32 %v5459_v10, %v3899_v58 }
 0x436   :  { %6209 = vmatpush.bf16.msrb.mxu1 %v10068_v56  ;;  %6231 = vmatpush.bf16.msrb.mxu3 %v10088_v29 }
 0x437   :  { %6198 = vmatmul.bf16.vlgmr.msrb.gmra.mxu0 %v5618_v61 }
 0x438   :  { %v5448_v0 = vpop.f32.mrf.mxu3  ;;  %6220 = vmatpush.bf16.msrb.mxu2 %v10078_v12 }
 0x43a   :  { %6210 = vmatpush.bf16.msrb.mxu1 %v10067_v20  ;;  %v5472_v18 = vpop.f32.mrf.mxu1  ;;  %6232 = vmatpush.bf16.msrb.mxu3 %v10087_v7 }
 0x43b   :  { %v5473_v14 = vadd.f32 %v5472_v18, %v5460_v48 }
 0x43c   :  { %v5461_v62 = vpop.f32.mrf.mxu0  ;;  %6221 = vmatpush.bf16.msrb.mxu2 %v10077_v25 }
 0x43e   :  { %6233 = vmatpush.bf16.msrb.mxu3 %v10086_v63 }
 0x440   :  { %6222 = vmatpush.bf16.msrb.mxu2 %v10076_v15 }
 0x442   :  { %v5474_v8 = vpop.f32.mrf.mxu1  ;;  %6234 = vmatpush.bf16.msrb.mxu3 %v10085_v30 }
 0x444   :  { %6223 = vmatpush.bf16.msrb.mxu2 %v10075_v22 }
 0x446   :  { %6235 = vmatpush.bf16.msrb.mxu3 %v10084_v33 }
 0x44a   :  { %v5485_v13 = vpop.f32.mrf.mxu2  ;;  %6236 = vmatpush.bf16.msrb.mxu3 %v10083_v38 }
 0x44b   :  { %v5486_v45 = vadd.f32 %v5485_v13, %v5473_v14 }
 0x450   :  { %v5498_v17 = vpop.f32.mrf.mxu3 }
 0x451   :  { %v5499_v19 = vadd.f32 %v5498_v17, %v5486_v45 }
 0x452   :  { %v5487_v44 = vpop.f32.mrf.mxu2 }
 0x453   :  { %v5611_v5 = vmax.f32 %v5499_v19, 0.0 }
 0x454   :  { %v5511_v1 = vpop.f32.mrf.mxu0 }
 0x455   :  { %v5619_v3 = vpack.c.bf16 %v5611_v5, %v5611_v5  ;;  %v5512_v32 = vadd.f32 %v5511_v1, %v3900_v21 }
 0x457   :  { %6211 = vmatmul.bf16.vlgmr.msrb.gmra.mxu1 %v5619_v3 }
 0x458   :  { %v5500_v51 = vpop.f32.mrf.mxu3 }
 0x45a   :  { %v5524_v26 = vpop.f32.mrf.mxu1 }
 0x45b   :  { %v5525_v47 = vadd.f32 %v5524_v26, %v5512_v32 }
 0x45c   :  { %v5513_v28 = vpop.f32.mrf.mxu0 }
 0x462   :  { %v5526_v54 = vpop.f32.mrf.mxu1 }
 0x46a   :  { %v5537_v31 = vpop.f32.mrf.mxu2 }
 0x46b   :  { %v5538_v4 = vadd.f32 %v5537_v31, %v5525_v47 }
 0x470   :  { %v5550_v35 = vpop.f32.mrf.mxu3 }
 0x471   :  { %v5551_v6 = vadd.f32 %v5550_v35, %v5538_v4 }
 0x472   :  { %v5539_v39 = vpop.f32.mrf.mxu2 }
 0x473   :  { %v5612_v36 = vmax.f32 %v5551_v6, 0.0 }
 0x474   :  { %v5563_v37 = vpop.f32.mrf.mxu0 }
 0x475   :  { %v5620_v40 = vpack.c.bf16 %v5612_v36, %v5612_v36  ;;  %v5564_v60 = vadd.f32 %v5563_v37, %v3901_v11 }
 0x477   :  { %6224 = vmatmul.bf16.vlgmr.msrb.gmra.mxu2 %v5620_v40 }
 0x478   :  { %v5552_v27 = vpop.f32.mrf.mxu3 }
 0x47a   :  { %v5576_v41 = vpop.f32.mrf.mxu1 }
 0x47b   :  { %v5577_v52 = vadd.f32 %v5576_v41, %v5564_v60 }
 0x47c   :  { %v5565_v34 = vpop.f32.mrf.mxu0 }
 0x482   :  { %v5578_v43 = vpop.f32.mrf.mxu1 }
 0x48a   :  { %v5589_v49 = vpop.f32.mrf.mxu2 }
 0x48b   :  { %v5590_v55 = vadd.f32 %v5589_v49, %v5577_v52 }
 0x490   :  { %v5602_v56 = vpop.f32.mrf.mxu3 }
 0x491   :  { %v5603_v42 = vadd.f32 %v5602_v56, %v5590_v55 }
 0x492   :  { %v5591_v53 = vpop.f32.mrf.mxu2 }
 0x493   :  { %v5613_v9 = vmax.f32 %v5603_v42, 0.0 }
 0x494   :  { %v6147_v10 = vpop.f32.mrf.mxu0 }
 0x495   :  { %v5621_v20 = vpack.c.bf16 %v5613_v9, %v5613_v9  ;;  %v6148_v59 = vadd.f32 %v10105_v57, %v6147_v10 }
 0x497   :  { %6237 = vmatmul.bf16.vlgmr.msrb.gmra.mxu3 %v5621_v20 }
 0x498   :  { %v5604_v16 = vpop.f32.mrf.mxu3 }
 0x49a   :  { %v6160_v61 = vpop.f32.mrf.mxu1 }
 0x49b   :  { %v6161_v18 = vadd.f32 %v6160_v61, %v6148_v59 }
 0x49c   :  { %v6149_v0 = vpop.f32.mrf.mxu0 }
 0x4a2   :  { %v6162_v62 = vpop.f32.mrf.mxu1 }
 0x4aa   :  { %v6173_v50 = vpop.f32.mrf.mxu2 }
 0x4ab   :  { %v6174_v23 = vadd.f32 %v6173_v50, %v6161_v18 }
 0x4b0   :  { %v6186_v8 = vpop.f32.mrf.mxu3 }
 0x4b1   :  { %v6187_v12 = vadd.f32 %v6186_v8, %v6174_v23 }
 0x4b2   :  { %v6175_v58 = vpop.f32.mrf.mxu2 }
 0x4b4   :  { %v6199_v13 = vpop.f32.mrf.mxu0 }
 0x4b5   :  { %v6200_v48 = vadd.f32 %v6199_v13, %v6187_v12 }
 0x4b8   :  { %v6188_v25 = vpop.f32.mrf.mxu3 }
 0x4bc   :  { %v6201_v14 = vpop.f32.mrf.mxu0 }
 0x4d4   :  { %v6212_v15 = vpop.f32.mrf.mxu1 }
 0x4d5   :  { %v6213_v1 = vadd.f32 %v6212_v15, %v6200_v48 }
 0x4dc   :  { %v6214_v45 = vpop.f32.mrf.mxu1 }
 0x4fa   :  { %v6225_v17 = vpop.f32.mrf.mxu2 }
 0x4fb   :  { %v6226_v44 = vadd.f32 %v6225_v17, %v6213_v1 }
 0x502   :  { %v6227_v19 = vpop.f32.mrf.mxu2 }
 0x51a   :  { %v6238_v22 = vpop.f32.mrf.mxu3 }
 0x51b   :  { %v6239_v5 = vadd.f32 %v6238_v22, %v6226_v44 }
 0x51d   :  { %6242 = vst [vmem:[%s10625_s13] sm:$0xff] %v6239_v5 }
 0x522   :  { %v6240_v24 = vpop.f32.mrf.mxu3 }
 0x523   :  { %6247 = vsyncpa [#allocation3], 1 }
 0x524   :  { %6248 = vsyncpa [#allocation5], 1 }
 0x525   :  { %6249 = vsyncpa [#allocation8], 1 }
 0x526   :  { %6250 = vsyncpa [#allocation11], 1 }

</bundles_post_ra>
